<compile_context>
chip_gen: v7x
topology: tpu7x:2x2x1
jax: 0.10.0
libtpu: 0.0.40
codegen_flags: <defaults>
</compile_context>

<pallas_src>
import jax
import jax.numpy as jnp
from jax.experimental import pallas as pl
from jax.experimental.pallas import tpu as pltpu


# ----------------------------------------------------------------------------
# In-kernel helper: 3x3 "same" conv (zero pad=1) + folded BN + ReLU on a tile
# ----------------------------------------------------------------------------
def _conv3x3_bn_relu_tile(xp_ref, x_hwc, w_ref, s_ref, b_ref):
    """One (H, W, C) tile -> (H*W, Cout) f32.

    xp_ref : VMEM scratch (H+2, W+2, C) f32 -- in-kernel zero-padding buffer.
    x_hwc  : (H, W, C) f32 value (the unpadded tile).
    w_ref  : (9*C, Cout) bf16 -- conv weight, rows ordered (kh, kw, cin),
             matching the im2col column order built below.
    s_ref, b_ref : (1, Cout) f32 folded BatchNorm scale / bias.
    """
    H, W, C = x_hwc.shape
    M = H * W
    Cout = w_ref.shape[1]

    # In-kernel zero padding: zero the scratch, write the interior.
    xp_ref[...] = jnp.zeros_like(xp_ref)
    xp_ref[1:H + 1, 1:W + 1, :] = x_hwc
    xp = xp_ref[...]

    if C >= 8:
        # im2col: one big-K MXU matmul with K = 9*C.
        cols = [xp[kh:kh + H, kw:kw + W, :].reshape(M, C)
                for kh in range(3) for kw in range(3)]
        patches = jnp.concatenate(cols, axis=-1).astype(jnp.bfloat16)  # (M, 9C)
        acc = jnp.dot(patches, w_ref[...],
                      preferred_element_type=jnp.float32)              # (M, Cout)
    else:
        # Tiny-C path (e.g. the 4-channel first conv): 9 shifted matmuls
        # accumulated in f32; avoids concatenating <8-lane-wide pieces.
        wv = w_ref[...]
        acc = jnp.zeros((M, Cout), jnp.float32)
        taps = [(kh, kw) for kh in range(3) for kw in range(3)]
        for t, (kh, kw) in enumerate(taps):
            patch = xp[kh:kh + H, kw:kw + W, :].reshape(M, C)
            acc = acc + jnp.dot(patch.astype(jnp.bfloat16),
                                wv[t * C:(t + 1) * C, :],
                                preferred_element_type=jnp.float32)

    # Folded BN (eval mode, conv bias included) + ReLU, in f32.
    return jnp.maximum(acc * s_ref[...] + b_ref[...], 0.0)


# ----------------------------------------------------------------------------
# Fused double_conv kernel: (conv -> BN -> ReLU) x 2, intermediate in VMEM
# ----------------------------------------------------------------------------
def _double_conv_kernel(x_ref, w1_ref, s1_ref, b1_ref,
                        w2_ref, s2_ref, b2_ref,
                        o_ref, xp1_ref, xp2_ref):
    # x_ref : (H, W, Cin)   one image (batch dim squeezed by the BlockSpec)
    # o_ref : (H*W, Cout)   lane-dense output tile
    H, W, _ = x_ref.shape
    Cmid = w1_ref.shape[1]

    h = _conv3x3_bn_relu_tile(xp1_ref, x_ref[...], w1_ref, s1_ref, b1_ref)
    out = _conv3x3_bn_relu_tile(xp2_ref, h.reshape(H, W, Cmid),
                                w2_ref, s2_ref, b2_ref)
    o_ref[...] = out.astype(o_ref.dtype)


@jax.jit
def double_conv(x_nchw, params):
    """double_conv forward: (N, in_ch, H, W) f32 -> (N, out_ch, H, W) f32."""
    (w1, s1, b1), (w2, s2, b2) = params
    x = jnp.transpose(x_nchw, (0, 2, 3, 1)).astype(jnp.float32)   # NCHW -> NHWC
    N, H, W, Cin = x.shape
    Cmid = w1.shape[-1]
    Cout = w2.shape[-1]

    # Pre-reshape / pre-cast weights once: rows ordered (kh, kw, cin), bf16.
    w1r = w1.reshape(9 * Cin, Cmid).astype(jnp.bfloat16)
    w2r = w2.reshape(9 * Cmid, Cout).astype(jnp.bfloat16)

    out = pl.pallas_call(
        _double_conv_kernel,
        out_shape=jax.ShapeDtypeStruct((N, H * W, Cout), jnp.float32),
        grid=(N,),
        in_specs=[
            pl.BlockSpec((None, H, W, Cin), lambda n: (n, 0, 0, 0)),
            pl.BlockSpec((9 * Cin, Cmid), lambda n: (0, 0)),   # constant blocks:
            pl.BlockSpec((1, Cmid), lambda n: (0, 0)),         #  weights/BN stay
            pl.BlockSpec((1, Cmid), lambda n: (0, 0)),         #  resident in VMEM
            pl.BlockSpec((9 * Cmid, Cout), lambda n: (0, 0)),
            pl.BlockSpec((1, Cout), lambda n: (0, 0)),
            pl.BlockSpec((1, Cout), lambda n: (0, 0)),
        ],
        out_specs=pl.BlockSpec((None, H * W, Cout), lambda n: (n, 0, 0)),
        scratch_shapes=[
            pltpu.VMEM((H + 2, W + 2, Cin), jnp.float32),   # padded conv1 input
            pltpu.VMEM((H + 2, W + 2, Cmid), jnp.float32),  # padded conv2 input
        ],
        compiler_params=pltpu.CompilerParams(
            dimension_semantics=("parallel",),      # v7x: batch over the 2 TCs
            vmem_limit_bytes=48 * 1024 * 1024,      # < 64 MiB v7x physical VMEM
        ),
    )(x, w1r, s1.reshape(1, Cmid), b1.reshape(1, Cmid),
      w2r, s2.reshape(1, Cout), b2.reshape(1, Cout))

    y = out.reshape(N, H, W, Cout)                  # lane-dense -> NHWC
    return jnp.transpose(y, (0, 3, 1, 2))           # NHWC -> NCHW


# ----------------------------------------------------------------------------
# Deterministic parameter construction (BN eval-mode + conv bias folded)
# ----------------------------------------------------------------------------
def init_double_conv_params(key, in_ch, out_ch, eps=1e-5):
    """y = relu(conv(x, w) * scale + bias) per stage, with
       scale = gamma / sqrt(var + eps),  bias = beta + (conv_bias - mean) * scale."""
    def conv_bn(k, cin, cout):
        kw_, kb, kg, kbt, km, kv = jax.random.split(k, 6)
        std = (2.0 / (9.0 * cin)) ** 0.5
        w = jax.random.normal(kw_, (3, 3, cin, cout), jnp.float32) * std
        conv_b = 0.05 * jax.random.normal(kb, (cout,), jnp.float32)
        gamma = 1.0 + 0.1 * jax.random.normal(kg, (cout,), jnp.float32)
        beta = 0.1 * jax.random.normal(kbt, (cout,), jnp.float32)
        mean = 0.05 * jax.random.normal(km, (cout,), jnp.float32)
        var = 1.0 + 0.1 * jnp.abs(jax.random.normal(kv, (cout,), jnp.float32))
        scale = gamma / jnp.sqrt(var + eps)
        bias = beta + (conv_b - mean) * scale
        return (w, scale, bias)

    k1, k2 = jax.random.split(key)
    return (conv_bn(k1, in_ch, out_ch), conv_bn(k2, out_ch, out_ch))


# ----------------------------------------------------------------------------
# Pure-JAX/XLA reference (for correctness checking)
# ----------------------------------------------------------------------------
def _ref_conv_bn_relu(x_nhwc, w, scale, bias):
    y = jax.lax.conv_general_dilated(
        x_nhwc, w, window_strides=(1, 1), padding=((1, 1), (1, 1)),
        dimension_numbers=("NHWC", "HWIO", "NHWC"))
    return jnp.maximum(y * scale + bias, 0.0)


def ref_double_conv(x_nchw, params):
    (w1, s1, b1), (w2, s2, b2) = params
    x = jnp.transpose(x_nchw, (0, 2, 3, 1))
    x = _ref_conv_bn_relu(x, w1, s1, b1)
    x = _ref_conv_bn_relu(x, w2, s2, b2)
    return jnp.transpose(x, (0, 3, 1, 2))


if __name__ == "__main__":
    key = jax.random.PRNGKey(0)
    kx, kp = jax.random.split(key)

    N, in_ch, out_ch, H, W = 2, 4, 64, 16, 16
    x = jax.random.normal(kx, (N, in_ch, H, W), jnp.float32)      # NCHW input
    params = init_double_conv_params(kp, in_ch, out_ch)

    y = jax.block_until_ready(double_conv(x, params))
    assert y.shape == (N, out_ch, H, W), y.shape
    assert bool(jnp.all(jnp.isfinite(y)))

    # Compare against the XLA reference. The kernel uses bf16 matmul operands
    # (f32 accumulation), so use a loose absolute tolerance; a tap/weight
    # ordering bug would produce O(1) errors.
    y_ref = jax.block_until_ready(ref_double_conv(x, params))
    max_err = float(jnp.max(jnp.abs(y - y_ref)))
    assert max_err < 0.2, f"max abs error {max_err}"

    print("KERNEL_OK")
</pallas_src>

<mosaic_0001>
module attributes {stable_mosaic.version = 11 : i64} {
  func.func @_double_conv_kernel(%arg0: i32, %arg1: memref<1x16x16x4xf32, #tpu.memory_space<vmem>>, %arg2: memref<36x64xbf16, #tpu.memory_space<vmem>>, %arg3: memref<1x64xf32, #tpu.memory_space<vmem>>, %arg4: memref<1x64xf32, #tpu.memory_space<vmem>>, %arg5: memref<576x64xbf16, #tpu.memory_space<vmem>>, %arg6: memref<1x64xf32, #tpu.memory_space<vmem>>, %arg7: memref<1x64xf32, #tpu.memory_space<vmem>>, %arg8: memref<1x256x64xf32, #tpu.memory_space<vmem>>, %arg9: memref<18x18x4xf32, #tpu.memory_space<vmem>>, %arg10: memref<18x18x64xf32, #tpu.memory_space<vmem>>) attributes {dimension_semantics = [#tpu.dimension_semantics<parallel>], iteration_bounds = array<i64: 2>, scalar_prefetch = 0 : i64, scratch_operands = 2 : i64, tpu.core_type = #tpu.core_type<tc>, window_params = [{transform_indices = @transform_0, window_bounds = array<i64: 1, 16, 16, 4>}, {pipeline_mode = #tpu.pipeline_mode<synchronous>, transform_indices = @transform_1, window_bounds = array<i64: 36, 64>}, {pipeline_mode = #tpu.pipeline_mode<synchronous>, transform_indices = @transform_2, window_bounds = array<i64: 1, 64>}, {pipeline_mode = #tpu.pipeline_mode<synchronous>, transform_indices = @transform_3, window_bounds = array<i64: 1, 64>}, {pipeline_mode = #tpu.pipeline_mode<synchronous>, transform_indices = @transform_4, window_bounds = array<i64: 576, 64>}, {pipeline_mode = #tpu.pipeline_mode<synchronous>, transform_indices = @transform_5, window_bounds = array<i64: 1, 64>}, {pipeline_mode = #tpu.pipeline_mode<synchronous>, transform_indices = @transform_6, window_bounds = array<i64: 1, 64>}, {transform_indices = @transform_7, window_bounds = array<i64: 1, 256, 64>}]} {
    %c0 = arith.constant 0 : index
    %c0_0 = arith.constant 0 : index
    %c0_1 = arith.constant 0 : index
    %c0_2 = arith.constant 0 : index
    %0 = vector.load %arg1[%c0, %c0_0, %c0_1, %c0_2] : memref<1x16x16x4xf32, #tpu.memory_space<vmem>>, vector<1x16x16x4xf32>
    %1 = vector.shape_cast %0 : vector<1x16x16x4xf32> to vector<16x16x4xf32>
    %cst = arith.constant 0.000000e+00 : f32
    %2 = vector.broadcast %cst : f32 to vector<18x18x4xf32>
    %c0_3 = arith.constant 0 : index
    %c0_4 = arith.constant 0 : index
    %c0_5 = arith.constant 0 : index
    %3 = vector.load %arg9[%c0_3, %c0_4, %c0_5] : memref<18x18x4xf32, #tpu.memory_space<vmem>>, vector<18x18x4xf32>
    tpu.vector_store %arg9[%c0_3, %c0_4, %c0_5], %2 {strides = array<i32>} : memref<18x18x4xf32, #tpu.memory_space<vmem>>, vector<18x18x4xf32>,
    %c1 = arith.constant 1 : index
    %c1_6 = arith.constant 1 : index
    %c0_7 = arith.constant 0 : index
    %4 = vector.load %arg9[%c1, %c1_6, %c0_7] : memref<18x18x4xf32, #tpu.memory_space<vmem>>, vector<16x16x4xf32>
    tpu.vector_store %arg9[%c1, %c1_6, %c0_7], %1 {strides = array<i32>} : memref<18x18x4xf32, #tpu.memory_space<vmem>>, vector<16x16x4xf32>,
    %c0_8 = arith.constant 0 : index
    %c0_9 = arith.constant 0 : index
    %c0_10 = arith.constant 0 : index
    %5 = vector.load %arg9[%c0_8, %c0_9, %c0_10] : memref<18x18x4xf32, #tpu.memory_space<vmem>>, vector<18x18x4xf32>
    %c0_11 = arith.constant 0 : index
    %c0_12 = arith.constant 0 : index
    %6 = vector.load %arg2[%c0_11, %c0_12] : memref<36x64xbf16, #tpu.memory_space<vmem>>, vector<36x64xbf16>
    %cst_13 = arith.constant 0.000000e+00 : f32
    %7 = vector.broadcast %cst_13 : f32 to vector<256x64xf32>
    %8 = vector.extract_strided_slice %5 {offsets = [0, 0, 0], sizes = [16, 16, 4], strides = [1, 1, 1]} : vector<18x18x4xf32> to vector<16x16x4xf32>
    %9 = vector.shape_cast %8 : vector<16x16x4xf32> to vector<256x4xf32>
    %10 = arith.truncf %9 : vector<256x4xf32> to vector<256x4xbf16>
    %11 = vector.extract_strided_slice %6 {offsets = [0, 0], sizes = [4, 64], strides = [1, 1]} : vector<36x64xbf16> to vector<4x64xbf16>
    %cst_14 = arith.constant dense<0.000000e+00> : vector<256x64xf32>
    %12 = tpu.matmul %10, %11, %cst_14 {dimension_numbers = #tpu.dot_dimension_numbers<[1], [0], [0], [1], [0, 0, 1, 1], [], []>} : vector<256x4xbf16>, vector<4x64xbf16>, vector<256x64xf32> -> vector<256x64xf32>
    %13 = arith.addf %7, %12 : vector<256x64xf32>
    %14 = vector.extract_strided_slice %5 {offsets = [0, 1, 0], sizes = [16, 16, 4], strides = [1, 1, 1]} : vector<18x18x4xf32> to vector<16x16x4xf32>
    %15 = vector.shape_cast %14 : vector<16x16x4xf32> to vector<256x4xf32>
    %16 = arith.truncf %15 : vector<256x4xf32> to vector<256x4xbf16>
    %17 = vector.extract_strided_slice %6 {offsets = [4, 0], sizes = [4, 64], strides = [1, 1]} : vector<36x64xbf16> to vector<4x64xbf16>
    %cst_15 = arith.constant dense<0.000000e+00> : vector<256x64xf32>
    %18 = tpu.matmul %16, %17, %cst_15 {dimension_numbers = #tpu.dot_dimension_numbers<[1], [0], [0], [1], [0, 0, 1, 1], [], []>} : vector<256x4xbf16>, vector<4x64xbf16>, vector<256x64xf32> -> vector<256x64xf32>
    %19 = arith.addf %13, %18 : vector<256x64xf32>
    %20 = vector.extract_strided_slice %5 {offsets = [0, 2, 0], sizes = [16, 16, 4], strides = [1, 1, 1]} : vector<18x18x4xf32> to vector<16x16x4xf32>
    %21 = vector.shape_cast %20 : vector<16x16x4xf32> to vector<256x4xf32>
    %22 = arith.truncf %21 : vector<256x4xf32> to vector<256x4xbf16>
    %23 = vector.extract_strided_slice %6 {offsets = [8, 0], sizes = [4, 64], strides = [1, 1]} : vector<36x64xbf16> to vector<4x64xbf16>
    %cst_16 = arith.constant dense<0.000000e+00> : vector<256x64xf32>
    %24 = tpu.matmul %22, %23, %cst_16 {dimension_numbers = #tpu.dot_dimension_numbers<[1], [0], [0], [1], [0, 0, 1, 1], [], []>} : vector<256x4xbf16>, vector<4x64xbf16>, vector<256x64xf32> -> vector<256x64xf32>
    %25 = arith.addf %19, %24 : vector<256x64xf32>
    %26 = vector.extract_strided_slice %5 {offsets = [1, 0, 0], sizes = [16, 16, 4], strides = [1, 1, 1]} : vector<18x18x4xf32> to vector<16x16x4xf32>
    %27 = vector.shape_cast %26 : vector<16x16x4xf32> to vector<256x4xf32>
    %28 = arith.truncf %27 : vector<256x4xf32> to vector<256x4xbf16>
    %29 = vector.extract_strided_slice %6 {offsets = [12, 0], sizes = [4, 64], strides = [1, 1]} : vector<36x64xbf16> to vector<4x64xbf16>
    %cst_17 = arith.constant dense<0.000000e+00> : vector<256x64xf32>
    %30 = tpu.matmul %28, %29, %cst_17 {dimension_numbers = #tpu.dot_dimension_numbers<[1], [0], [0], [1], [0, 0, 1, 1], [], []>} : vector<256x4xbf16>, vector<4x64xbf16>, vector<256x64xf32> -> vector<256x64xf32>
    %31 = arith.addf %25, %30 : vector<256x64xf32>
    %32 = vector.extract_strided_slice %5 {offsets = [1, 1, 0], sizes = [16, 16, 4], strides = [1, 1, 1]} : vector<18x18x4xf32> to vector<16x16x4xf32>
    %33 = vector.shape_cast %32 : vector<16x16x4xf32> to vector<256x4xf32>
    %34 = arith.truncf %33 : vector<256x4xf32> to vector<256x4xbf16>
    %35 = vector.extract_strided_slice %6 {offsets = [16, 0], sizes = [4, 64], strides = [1, 1]} : vector<36x64xbf16> to vector<4x64xbf16>
    %cst_18 = arith.constant dense<0.000000e+00> : vector<256x64xf32>
    %36 = tpu.matmul %34, %35, %cst_18 {dimension_numbers = #tpu.dot_dimension_numbers<[1], [0], [0], [1], [0, 0, 1, 1], [], []>} : vector<256x4xbf16>, vector<4x64xbf16>, vector<256x64xf32> -> vector<256x64xf32>
    %37 = arith.addf %31, %36 : vector<256x64xf32>
    %38 = vector.extract_strided_slice %5 {offsets = [1, 2, 0], sizes = [16, 16, 4], strides = [1, 1, 1]} : vector<18x18x4xf32> to vector<16x16x4xf32>
    %39 = vector.shape_cast %38 : vector<16x16x4xf32> to vector<256x4xf32>
    %40 = arith.truncf %39 : vector<256x4xf32> to vector<256x4xbf16>
    %41 = vector.extract_strided_slice %6 {offsets = [20, 0], sizes = [4, 64], strides = [1, 1]} : vector<36x64xbf16> to vector<4x64xbf16>
    %cst_19 = arith.constant dense<0.000000e+00> : vector<256x64xf32>
    %42 = tpu.matmul %40, %41, %cst_19 {dimension_numbers = #tpu.dot_dimension_numbers<[1], [0], [0], [1], [0, 0, 1, 1], [], []>} : vector<256x4xbf16>, vector<4x64xbf16>, vector<256x64xf32> -> vector<256x64xf32>
    %43 = arith.addf %37, %42 : vector<256x64xf32>
    %44 = vector.extract_strided_slice %5 {offsets = [2, 0, 0], sizes = [16, 16, 4], strides = [1, 1, 1]} : vector<18x18x4xf32> to vector<16x16x4xf32>
    %45 = vector.shape_cast %44 : vector<16x16x4xf32> to vector<256x4xf32>
    %46 = arith.truncf %45 : vector<256x4xf32> to vector<256x4xbf16>
    %47 = vector.extract_strided_slice %6 {offsets = [24, 0], sizes = [4, 64], strides = [1, 1]} : vector<36x64xbf16> to vector<4x64xbf16>
    %cst_20 = arith.constant dense<0.000000e+00> : vector<256x64xf32>
    %48 = tpu.matmul %46, %47, %cst_20 {dimension_numbers = #tpu.dot_dimension_numbers<[1], [0], [0], [1], [0, 0, 1, 1], [], []>} : vector<256x4xbf16>, vector<4x64xbf16>, vector<256x64xf32> -> vector<256x64xf32>
    %49 = arith.addf %43, %48 : vector<256x64xf32>
    %50 = vector.extract_strided_slice %5 {offsets = [2, 1, 0], sizes = [16, 16, 4], strides = [1, 1, 1]} : vector<18x18x4xf32> to vector<16x16x4xf32>
    %51 = vector.shape_cast %50 : vector<16x16x4xf32> to vector<256x4xf32>
    %52 = arith.truncf %51 : vector<256x4xf32> to vector<256x4xbf16>
    %53 = vector.extract_strided_slice %6 {offsets = [28, 0], sizes = [4, 64], strides = [1, 1]} : vector<36x64xbf16> to vector<4x64xbf16>
    %cst_21 = arith.constant dense<0.000000e+00> : vector<256x64xf32>
    %54 = tpu.matmul %52, %53, %cst_21 {dimension_numbers = #tpu.dot_dimension_numbers<[1], [0], [0], [1], [0, 0, 1, 1], [], []>} : vector<256x4xbf16>, vector<4x64xbf16>, vector<256x64xf32> -> vector<256x64xf32>
    %55 = arith.addf %49, %54 : vector<256x64xf32>
    %56 = vector.extract_strided_slice %5 {offsets = [2, 2, 0], sizes = [16, 16, 4], strides = [1, 1, 1]} : vector<18x18x4xf32> to vector<16x16x4xf32>
    %57 = vector.shape_cast %56 : vector<16x16x4xf32> to vector<256x4xf32>
    %58 = arith.truncf %57 : vector<256x4xf32> to vector<256x4xbf16>
    %59 = vector.extract_strided_slice %6 {offsets = [32, 0], sizes = [4, 64], strides = [1, 1]} : vector<36x64xbf16> to vector<4x64xbf16>
    %cst_22 = arith.constant dense<0.000000e+00> : vector<256x64xf32>
    %60 = tpu.matmul %58, %59, %cst_22 {dimension_numbers = #tpu.dot_dimension_numbers<[1], [0], [0], [1], [0, 0, 1, 1], [], []>} : vector<256x4xbf16>, vector<4x64xbf16>, vector<256x64xf32> -> vector<256x64xf32>
    %61 = arith.addf %55, %60 : vector<256x64xf32>
    %c0_23 = arith.constant 0 : index
    %c0_24 = arith.constant 0 : index
    %62 = vector.load %arg3[%c0_23, %c0_24] : memref<1x64xf32, #tpu.memory_space<vmem>>, vector<1x64xf32>
    %63 = vector.broadcast %62 : vector<1x64xf32> to vector<256x64xf32>
    %64 = arith.mulf %61, %63 : vector<256x64xf32>
    %c0_25 = arith.constant 0 : index
    %c0_26 = arith.constant 0 : index
    %65 = vector.load %arg4[%c0_25, %c0_26] : memref<1x64xf32, #tpu.memory_space<vmem>>, vector<1x64xf32>
    %66 = vector.broadcast %65 : vector<1x64xf32> to vector<256x64xf32>
    %67 = arith.addf %64, %66 : vector<256x64xf32>
    %cst_27 = arith.constant 0.000000e+00 : f32
    %68 = vector.broadcast %cst_27 : f32 to vector<256x64xf32>
    %69 = arith.maximumf %67, %68 : vector<256x64xf32>
    %70 = vector.shape_cast %69 : vector<256x64xf32> to vector<16x16x64xf32>
    %cst_28 = arith.constant 0.000000e+00 : f32
    %71 = vector.broadcast %cst_28 : f32 to vector<18x18x64xf32>
    %c0_29 = arith.constant 0 : index
    %c0_30 = arith.constant 0 : index
    %c0_31 = arith.constant 0 : index
    %72 = vector.load %arg10[%c0_29, %c0_30, %c0_31] : memref<18x18x64xf32, #tpu.memory_space<vmem>>, vector<18x18x64xf32>
    tpu.vector_store %arg10[%c0_29, %c0_30, %c0_31], %71 {strides = array<i32>} : memref<18x18x64xf32, #tpu.memory_space<vmem>>, vector<18x18x64xf32>,
    %c1_32 = arith.constant 1 : index
    %c1_33 = arith.constant 1 : index
    %c0_34 = arith.constant 0 : index
    %73 = vector.load %arg10[%c1_32, %c1_33, %c0_34] : memref<18x18x64xf32, #tpu.memory_space<vmem>>, vector<16x16x64xf32>
    tpu.vector_store %arg10[%c1_32, %c1_33, %c0_34], %70 {strides = array<i32>} : memref<18x18x64xf32, #tpu.memory_space<vmem>>, vector<16x16x64xf32>,
    %c0_35 = arith.constant 0 : index
    %c0_36 = arith.constant 0 : index
    %c0_37 = arith.constant 0 : index
    %74 = vector.load %arg10[%c0_35, %c0_36, %c0_37] : memref<18x18x64xf32, #tpu.memory_space<vmem>>, vector<18x18x64xf32>
    %75 = vector.extract_strided_slice %74 {offsets = [0, 0, 0], sizes = [16, 16, 64], strides = [1, 1, 1]} : vector<18x18x64xf32> to vector<16x16x64xf32>
    %76 = vector.shape_cast %75 : vector<16x16x64xf32> to vector<256x64xf32>
    %77 = vector.extract_strided_slice %74 {offsets = [0, 1, 0], sizes = [16, 16, 64], strides = [1, 1, 1]} : vector<18x18x64xf32> to vector<16x16x64xf32>
    %78 = vector.shape_cast %77 : vector<16x16x64xf32> to vector<256x64xf32>
    %79 = vector.extract_strided_slice %74 {offsets = [0, 2, 0], sizes = [16, 16, 64], strides = [1, 1, 1]} : vector<18x18x64xf32> to vector<16x16x64xf32>
    %80 = vector.shape_cast %79 : vector<16x16x64xf32> to vector<256x64xf32>
    %81 = vector.extract_strided_slice %74 {offsets = [1, 0, 0], sizes = [16, 16, 64], strides = [1, 1, 1]} : vector<18x18x64xf32> to vector<16x16x64xf32>
    %82 = vector.shape_cast %81 : vector<16x16x64xf32> to vector<256x64xf32>
    %83 = vector.extract_strided_slice %74 {offsets = [1, 1, 0], sizes = [16, 16, 64], strides = [1, 1, 1]} : vector<18x18x64xf32> to vector<16x16x64xf32>
    %84 = vector.shape_cast %83 : vector<16x16x64xf32> to vector<256x64xf32>
    %85 = vector.extract_strided_slice %74 {offsets = [1, 2, 0], sizes = [16, 16, 64], strides = [1, 1, 1]} : vector<18x18x64xf32> to vector<16x16x64xf32>
    %86 = vector.shape_cast %85 : vector<16x16x64xf32> to vector<256x64xf32>
    %87 = vector.extract_strided_slice %74 {offsets = [2, 0, 0], sizes = [16, 16, 64], strides = [1, 1, 1]} : vector<18x18x64xf32> to vector<16x16x64xf32>
    %88 = vector.shape_cast %87 : vector<16x16x64xf32> to vector<256x64xf32>
    %89 = vector.extract_strided_slice %74 {offsets = [2, 1, 0], sizes = [16, 16, 64], strides = [1, 1, 1]} : vector<18x18x64xf32> to vector<16x16x64xf32>
    %90 = vector.shape_cast %89 : vector<16x16x64xf32> to vector<256x64xf32>
    %91 = vector.extract_strided_slice %74 {offsets = [2, 2, 0], sizes = [16, 16, 64], strides = [1, 1, 1]} : vector<18x18x64xf32> to vector<16x16x64xf32>
    %92 = vector.shape_cast %91 : vector<16x16x64xf32> to vector<256x64xf32>
    %93 = tpu.concatenate %76, %78, %80, %82, %84, %86, %88, %90, %92 in 1 : vector<256x64xf32>, vector<256x64xf32>, vector<256x64xf32>, vector<256x64xf32>, vector<256x64xf32>, vector<256x64xf32>, vector<256x64xf32>, vector<256x64xf32>, vector<256x64xf32> -> vector<256x576xf32>
    %94 = arith.truncf %93 : vector<256x576xf32> to vector<256x576xbf16>
    %c0_38 = arith.constant 0 : index
    %c0_39 = arith.constant 0 : index
    %95 = vector.load %arg5[%c0_38, %c0_39] : memref<576x64xbf16, #tpu.memory_space<vmem>>, vector<576x64xbf16>
    %cst_40 = arith.constant dense<0.000000e+00> : vector<256x64xf32>
    %96 = tpu.matmul %94, %95, %cst_40 {dimension_numbers = #tpu.dot_dimension_numbers<[1], [0], [0], [1], [0, 0, 1, 1], [], []>} : vector<256x576xbf16>, vector<576x64xbf16>, vector<256x64xf32> -> vector<256x64xf32>
    %c0_41 = arith.constant 0 : index
    %c0_42 = arith.constant 0 : index
    %97 = vector.load %arg6[%c0_41, %c0_42] : memref<1x64xf32, #tpu.memory_space<vmem>>, vector<1x64xf32>
    %98 = vector.broadcast %97 : vector<1x64xf32> to vector<256x64xf32>
    %99 = arith.mulf %96, %98 : vector<256x64xf32>
    %c0_43 = arith.constant 0 : index
    %c0_44 = arith.constant 0 : index
    %100 = vector.load %arg7[%c0_43, %c0_44] : memref<1x64xf32, #tpu.memory_space<vmem>>, vector<1x64xf32>
    %101 = vector.broadcast %100 : vector<1x64xf32> to vector<256x64xf32>
    %102 = arith.addf %99, %101 : vector<256x64xf32>
    %cst_45 = arith.constant 0.000000e+00 : f32
    %103 = vector.broadcast %cst_45 : f32 to vector<256x64xf32>
    %104 = arith.maximumf %102, %103 : vector<256x64xf32>
    %c0_46 = arith.constant 0 : index
    %c0_47 = arith.constant 0 : index
    %c0_48 = arith.constant 0 : index
    %105 = vector.load %arg8[%c0_46, %c0_47, %c0_48] : memref<1x256x64xf32, #tpu.memory_space<vmem>>, vector<1x256x64xf32>
    %106 = vector.shape_cast %105 : vector<1x256x64xf32> to vector<256x64xf32>
    %107 = vector.shape_cast %104 : vector<256x64xf32> to vector<1x256x64xf32>
    tpu.vector_store %arg8[%c0_46, %c0_47, %c0_48], %107 {strides = array<i32>} : memref<1x256x64xf32, #tpu.memory_space<vmem>>, vector<1x256x64xf32>,
    return
  }
  func.func @transform_0(%arg0: i32) -> (i32, i32, i32, i32) {
    %c0_i32 = arith.constant 0 : i32
    %c0_i32_0 = arith.constant 0 : i32
    %c0_i32_1 = arith.constant 0 : i32
    %c0_i32_2 = arith.constant 0 : i32
    return %arg0, %c0_i32, %c0_i32_0, %c0_i32_1 : i32, i32, i32, i32
  }
  func.func @transform_1(%arg0: i32) -> (i32, i32) {
    %c0_i32 = arith.constant 0 : i32
    %c0_i32_0 = arith.constant 0 : i32
    %c0_i32_1 = arith.constant 0 : i32
    return %c0_i32, %c0_i32_0 : i32, i32
  }
  func.func @transform_2(%arg0: i32) -> (i32, i32) {
    %c0_i32 = arith.constant 0 : i32
    %c0_i32_0 = arith.constant 0 : i32
    %c0_i32_1 = arith.constant 0 : i32
    return %c0_i32, %c0_i32_0 : i32, i32
  }
  func.func @transform_3(%arg0: i32) -> (i32, i32) {
    %c0_i32 = arith.constant 0 : i32
    %c0_i32_0 = arith.constant 0 : i32
    %c0_i32_1 = arith.constant 0 : i32
    return %c0_i32, %c0_i32_0 : i32, i32
  }
  func.func @transform_4(%arg0: i32) -> (i32, i32) {
    %c0_i32 = arith.constant 0 : i32
    %c0_i32_0 = arith.constant 0 : i32
    %c0_i32_1 = arith.constant 0 : i32
    return %c0_i32, %c0_i32_0 : i32, i32
  }
  func.func @transform_5(%arg0: i32) -> (i32, i32) {
    %c0_i32 = arith.constant 0 : i32
    %c0_i32_0 = arith.constant 0 : i32
    %c0_i32_1 = arith.constant 0 : i32
    return %c0_i32, %c0_i32_0 : i32, i32
  }
  func.func @transform_6(%arg0: i32) -> (i32, i32) {
    %c0_i32 = arith.constant 0 : i32
    %c0_i32_0 = arith.constant 0 : i32
    %c0_i32_1 = arith.constant 0 : i32
    return %c0_i32, %c0_i32_0 : i32, i32
  }
  func.func @transform_7(%arg0: i32) -> (i32, i32, i32) {
    %c0_i32 = arith.constant 0 : i32
    %c0_i32_0 = arith.constant 0 : i32
    %c0_i32_1 = arith.constant 0 : i32
    return %arg0, %c0_i32, %c0_i32_0 : i32, i32, i32
  }
}

</mosaic_0001>

<bundles_post_ra>
// kernel: double_conv.1
= control target key start
LH: loop header
LB: loop body
LE: loop exit
PB: predicated region body
PF: predicated region fallthrough
CT: control target
= control target key end

     0   :  { %12 = vsyncpa [#allocation5], 0  ;;  %s9087_s0 = inlined_call_operand.vmem [shape: f32[2,16,16,4], index: 0, kind: input, shape index: {}]   ;;  %s9088_s1 = inlined_call_operand.vmem [shape: bf16[36,64], index: 1, kind: input, shape index: {}]   ;;  %s9089_s2 = inlined_call_operand.vmem [shape: f32[1,64], index: 2, kind: input, shape index: {}]   ;;  %s9090_s3 = inlined_call_operand.vmem [shape: f32[1,64], index: 3, kind: input, shape index: {}]   ;;  %s9091_s4 = inlined_call_operand.vmem [shape: bf16[576,64], index: 4, kind: input, shape index: {}]   ;;  %s9092_s5 = inlined_call_operand.vmem [shape: f32[1,64], index: 5, kind: input, shape index: {}]   ;;  %s9093_s6 = inlined_call_operand.vmem [shape: f32[1,64], index: 6, kind: input, shape index: {}]   ;;  %s9094_s7 = inlined_call_operand.hbm [shape: f32[2,256,64], index: 7, kind: output, shape index: {}]  }
   0x1   :  { %14 = vsyncpa [#allocation5 + $0x1], 0  ;;  %s6432_s24 = smov 0   ;;  %s6434_s25 = smov 0  }
   0x2   :  { %s6436_s26 = smov 0   ;;  %s6438_s27 = smov 0  }
   0x3 LB: > { %s6453_s28 = sadd.s32 4294967295, %s6385_s27   ;;  %s4757_s29 = sadd.s32 4294967294, %s6385_s27   ;;  %s6385_s27 = sphi %s6438_s27, %s9332_s27   ;;  %s6381_s26 = sphi %s6436_s26, %s9331_s26   ;;  %s6377_s25 = sphi %s6434_s25, %s9330_s25   ;;  %s6373_s24 = sphi %s6432_s24, %s9329_s24  }
   0x4   : > { %s6457_s30 = sadd.s32 1, %s6385_s27   ;;  %s179_s8 = sadd.s32 1, %s6381_s26 }
   0x5   : > { %s176_s9 = ssub.s32 %s6385_s27, %s6457_s30  ;;  %p189_p0 = scmp.ne.s32.totalorder %s6381_s26, %s6377_s25 }
   0x6   : > { %p177_p1 = scmp.eq.s32.totalorder %s176_s9, 0  ;;  %p190_p2 = scmp.eq.s32.totalorder %s6453_s28, 1 }
   0x7   : > { %p195_p3 = scmp.ne.s32.totalorder %s6377_s25, %s6373_s24  ;;  %p196_p4 = scmp.eq.s32.totalorder %s4757_s29, 1 }
   0x8   : > { %s6468_s10 = scalar_select %p177_p1, %s6381_s26, %s179_s8  }
   0x9   : > { %p6470_p5 = por %p190_p2, %p189_p0  ;;  %p6474_p6 = por %p196_p4, %p195_p3 }
   0xa   : > { %p4760_p7 = scmp.ge.s32.totalorder %s6385_s27, 1  ;;  %p240_p8 = scmp.lt.s32.totalorder %s6385_s27, 3 }
   0xc   : > { %p241_p9 = pnand %p4760_p7, %p240_p8 }
   0xe   : > { %244 = sbr.rel (%p241_p9) target bundleno = 1355 (0x54b), region = 48 }
  0x15   : > { %v6483_v0 = vld [vmem:[%s9088_s1 + $0x4] sm:$0xf]  ;;  %vm703_vm0 = vcmask 1041408   ;;  %vm310_vm1 = vcmask 31744   ;;  %vm313_vm2 = vcmask 25600   ;;  %v9095_v3 = vmov 0.0  }
  0x16   : > { %5976 = vmatprep.subr.msk.bf16.mxu0 %vm703_vm0, %v6483_v0  ;;  %v4813_v1 = vcombine.low %v6483_v0, %v6483_v0  ;;  %v1258_v2 = vsel %vm703_vm0, %v6483_v0, 0  ;;  %311 = vst.msk [vmem:[#allocation2] sm:$0xff] %vm310_vm1, %v9095_v3  ;;  %312 = vst.msk [vmem:[#allocation2 + $0x8] sm:$0xff] %vm310_vm1, %v9095_v3  ;;  %p272_p10 = scmp.lt.s32.totalorder %s6453_s28, 1  ;;  %vm1080_vm3 = vcmask 1045504   ;;  %vm522_vm4 = vcmask 1046528  }
  0x17   : > { %314 = vst.msk [vmem:[#allocation2 + $0x10] sm:$0x3] %vm313_vm2, %v9095_v3  ;;  %317 = vst.msk [vmem:[#allocation2 + $0x28] sm:$0x3] %vm313_vm2, %v9095_v3  ;;  %5441 = vmatpush3.bf16.msra.mxu0 %v1258_v2  ;;  %v6712_v0 = vld [vmem:[%s9088_s1 + $0x8] sm:$0xf] }
  0x18   : > { %315 = vst.msk [vmem:[#allocation2 + $0x18] sm:$0xff] %vm310_vm1, %v9095_v3  ;;  %316 = vst.msk [vmem:[#allocation2 + $0x20] sm:$0xff] %vm310_vm1, %v9095_v3  ;;  %v6600_v4 = vrot.slane %v4813_v1, 2  ;;  %s273_s15 = scalar_select %p272_p10, %s6453_s28, 1  ;;  %vm2809_vm5 = vcmask 523264   ;;  %vm2812_vm6 = vcmask 517120  }
  0x19   : > { %318 = vst.msk [vmem:[#allocation2 + $0x30] sm:$0xff] %vm310_vm1, %v9095_v3  ;;  %319 = vst.msk [vmem:[#allocation2 + $0x38] sm:$0xff] %vm310_vm1, %v9095_v3  ;;  %s6388_s29 = smov 64   ;;  %s269_s21 = sand.u32 1, %s6377_s25  }
  0x1a   : > { %320 = vst.msk [vmem:[#allocation2 + $0x40] sm:$0x3] %vm313_vm2, %v9095_v3  ;;  %323 = vst.msk [vmem:[#allocation2 + $0x58] sm:$0x3] %vm313_vm2, %v9095_v3  ;;  %5977 = vmatprep.subr.msk.bf16.mxu0 %vm703_vm0, %v6600_v4  ;;  %s4973_s16 = sshll.u32 %s273_s15, 8  ;;  %v1462_v50 = vsel %vm703_vm0, %v6600_v4, 0 }
  0x1b   : > { %321 = vst.msk [vmem:[#allocation2 + $0x48] sm:$0xff] %vm310_vm1, %v9095_v3  ;;  %322 = vst.msk [vmem:[#allocation2 + $0x50] sm:$0xff] %vm310_vm1, %v9095_v3  ;;  %s6608_s19 = scalar_lea.vmem %s9087_s0, %s4973_s16  ;;  %s4761_s9 = sshll.u32 %s269_s21, 8 }
  0x1c   : > { %324 = vst.msk [vmem:[#allocation2 + $0x60] sm:$0xff] %vm310_vm1, %v9095_v3  ;;  %325 = vst.msk [vmem:[#allocation2 + $0x68] sm:$0xff] %vm310_vm1, %v9095_v3  ;;  %v278_v5 = vld [vmem:[%s6608_s19] sm:$0xff]  ;;  %v279_v6 = vld [vmem:[%s6608_s19 + $0x8] sm:$0xff]  ;;  %s8885_s13 = scalar_lea.vmem [#allocation4], %s4761_s9  ;;  %s4974_s14 = sshll.u32 %s6453_s28, 12 }
  0x1d   : > { %326 = vst.msk [vmem:[#allocation2 + $0x70] sm:$0x3] %vm313_vm2, %v9095_v3  ;;  %329 = vst.msk [vmem:[#allocation2 + $0x88] sm:$0x3] %vm313_vm2, %v9095_v3  ;;  %v280_v7 = vld [vmem:[%s6608_s19 + $0x10] sm:$0xff]  ;;  %v6613_v8 = vld [vmem:[#allocation2] sm:$0xff]  ;;  %s9034_s18 = scalar_lea.hbm %s9094_s7, %s4974_s14 }
  0x1e   : > { %327 = vst.msk [vmem:[#allocation2 + $0x78] sm:$0xff] %vm310_vm1, %v9095_v3  ;;  %328 = vst.msk [vmem:[#allocation2 + $0x80] sm:$0xff] %vm310_vm1, %v9095_v3  ;;  %v6615_v9 = vld [vmem:[#allocation2 + $0x8] sm:$0xff]  ;;  %v6617_v10 = vld [vmem:[#allocation2 + $0x10] sm:$0x3]  ;;  %v1081_v11 = vrot.slane %v6613_v8, 2 }
  0x1f   : > { %330 = vst.msk [vmem:[#allocation2 + $0x90] sm:$0xff] %vm310_vm1, %v9095_v3  ;;  %331 = vst.msk [vmem:[#allocation2 + $0x98] sm:$0xff] %vm310_vm1, %v9095_v3  ;;  %v1082_v12 = vrot.slane %v6615_v9, 2  ;;  %v1084_v13 = vrot.slane %v6617_v10, 2  ;;  %v281_v14 = vld [vmem:[%s6608_s19 + $0x18] sm:$0xff]  ;;  %v282_v15 = vld [vmem:[%s6608_s19 + $0x20] sm:$0xff] }
  0x20   : > { %332 = vst.msk [vmem:[#allocation2 + $0xa0] sm:$0x3] %vm313_vm2, %v9095_v3  ;;  %335 = vst.msk [vmem:[#allocation2 + $0xb8] sm:$0x3] %vm313_vm2, %v9095_v3  ;;  %v283_v16 = vld [vmem:[%s6608_s19 + $0x28] sm:$0xff]  ;;  %v284_v17 = vld [vmem:[%s6608_s19 + $0x30] sm:$0xff] }
  0x21   : > { %333 = vst.msk [vmem:[#allocation2 + $0xa8] sm:$0xff] %vm310_vm1, %v9095_v3  ;;  %334 = vst.msk [vmem:[#allocation2 + $0xb0] sm:$0xff] %vm310_vm1, %v9095_v3  ;;  %v285_v18 = vld [vmem:[%s6608_s19 + $0x38] sm:$0xff]  ;;  %v286_v19 = vld [vmem:[%s6608_s19 + $0x40] sm:$0xff]  ;;  %v1083_v20 = vsel %vm1080_vm3, %v1081_v11, %v1082_v12  ;;  %v1085_v21 = vsel %vm1080_vm3, %v1082_v12, %v1084_v13  ;;  %s4695_s15 = sshll.u32 %s8885_s13, 4  ;;  %s9046_s28 = scalar_lea.sflag [#allocation5], %s269_s21  ;;  %s9036_s15 = int_to_ptr.vmem [resolvable:$true] %s4695_s15 }
  0x22   : > { %336 = vst.msk [vmem:[#allocation2 + $0xc0] sm:$0xff] %vm310_vm1, %v9095_v3  ;;  %337 = vst.msk [vmem:[#allocation2 + $0xc8] sm:$0xff] %vm310_vm1, %v9095_v3  ;;  %v287_v22 = vld [vmem:[%s6608_s19 + $0x48] sm:$0xff]  ;;  %v288_v23 = vld [vmem:[%s6608_s19 + $0x50] sm:$0xff]  ;;  %v1193_v25 = vpack.c.bf16 %v1085_v21, %v1083_v20  ;;  %s6389_s20 = smov [#allocation4]  }
  0x23   : > { %338 = vst.msk [vmem:[#allocation2 + $0xd0] sm:$0x3] %vm313_vm2, %v9095_v3  ;;  %341 = vst.msk [vmem:[#allocation2 + $0xe8] sm:$0x3] %vm313_vm2, %v9095_v3  ;;  %v289_v24 = vld [vmem:[%s6608_s19 + $0x58] sm:$0xff]  ;;  %v290_v26 = vld [vmem:[%s6608_s19 + $0x60] sm:$0xff] }
  0x24   : > { %339 = vst.msk [vmem:[#allocation2 + $0xd8] sm:$0xff] %vm310_vm1, %v9095_v3  ;;  %340 = vst.msk [vmem:[#allocation2 + $0xe0] sm:$0xff] %vm310_vm1, %v9095_v3  ;;  %v291_v27 = vld [vmem:[%s6608_s19 + $0x68] sm:$0xff]  ;;  %v292_v28 = vld [vmem:[%s6608_s19 + $0x70] sm:$0xff]  ;;  %5442 = vmatprep.mubr.msk.bf16.mxu0 %vm310_vm1, %v1193_v25  ;;  %s6327_s22 = sshll.u32 %s6389_s20, 4  ;;  %s6328_s22 = int_to_ptr.vmem [resolvable:$false] %s6327_s22 }
  0x25   : > { %342 = vst.msk [vmem:[#allocation2 + $0xf0] sm:$0xff] %vm310_vm1, %v9095_v3  ;;  %343 = vst.msk [vmem:[#allocation2 + $0xf8] sm:$0xff] %vm310_vm1, %v9095_v3  ;;  %v293_v29 = vld [vmem:[%s6608_s19 + $0x78] sm:$0xff]  ;;  %v294_v30 = vld [vmem:[%s6608_s19 + $0x80] sm:$0xff]  ;;  %s6329_s23 = scalar_lea.vmem %s6328_s22, 8192  ;;  %p6330_p0 = scmp.lt.s32.totalorder %s9036_s15, %s6328_s22 }
  0x26   : > { %344 = vst.msk [vmem:[#allocation2 + $0x100] sm:$0x3] %vm313_vm2, %v9095_v3  ;;  %347 = vst.msk [vmem:[#allocation2 + $0x118] sm:$0x3] %vm313_vm2, %v9095_v3  ;;  %v295_v31 = vld [vmem:[%s6608_s19 + $0x88] sm:$0xff]  ;;  %v296_v32 = vld [vmem:[%s6608_s19 + $0x90] sm:$0xff] }
  0x27   : > { %345 = vst.msk [vmem:[#allocation2 + $0x108] sm:$0xff] %vm310_vm1, %v9095_v3  ;;  %346 = vst.msk [vmem:[#allocation2 + $0x110] sm:$0xff] %vm310_vm1, %v9095_v3  ;;  %v297_v33 = vld [vmem:[%s6608_s19 + $0x98] sm:$0xff]  ;;  %v298_v34 = vld [vmem:[%s6608_s19 + $0xa0] sm:$0xff] }
  0x28   : > { %348 = vst.msk [vmem:[#allocation2 + $0x120] sm:$0xff] %vm310_vm1, %v9095_v3  ;;  %349 = vst.msk [vmem:[#allocation2 + $0x128] sm:$0xff] %vm310_vm1, %v9095_v3  ;;  %v299_v42 = vld [vmem:[%s6608_s19 + $0xa8] sm:$0xff]  ;;  %v300_v43 = vld [vmem:[%s6608_s19 + $0xb0] sm:$0xff] }
  0x29   : > { %350 = vst.msk [vmem:[#allocation2 + $0x130] sm:$0x3] %vm313_vm2, %v9095_v3  ;;  %353 = vst.msk [vmem:[#allocation2 + $0x148] sm:$0x3] %vm313_vm2, %v9095_v3 }
  0x2a   : > { %351 = vst.msk [vmem:[#allocation2 + $0x138] sm:$0xff] %vm310_vm1, %v9095_v3  ;;  %352 = vst.msk [vmem:[#allocation2 + $0x140] sm:$0xff] %vm310_vm1, %v9095_v3 }
  0x2b   : > { %354 = vst.msk [vmem:[#allocation2 + $0x150] sm:$0xff] %vm310_vm1, %v9095_v3  ;;  %355 = vst.msk [vmem:[#allocation2 + $0x158] sm:$0xff] %vm310_vm1, %v9095_v3 }
  0x2c   : > { %356 = vst.msk [vmem:[#allocation2 + $0x160] sm:$0x3] %vm313_vm2, %v9095_v3  ;;  %359 = vst.msk [vmem:[#allocation2 + $0x178] sm:$0x3] %vm313_vm2, %v9095_v3 }
  0x2d   : > { %357 = vst.msk [vmem:[#allocation2 + $0x168] sm:$0xff] %vm310_vm1, %v9095_v3  ;;  %358 = vst.msk [vmem:[#allocation2 + $0x170] sm:$0xff] %vm310_vm1, %v9095_v3 }
  0x2e   : > { %360 = vst.msk [vmem:[#allocation2 + $0x180] sm:$0xff] %vm310_vm1, %v9095_v3  ;;  %361 = vst.msk [vmem:[#allocation2 + $0x188] sm:$0xff] %vm310_vm1, %v9095_v3 }
  0x2f   : > { %362 = vst.msk [vmem:[#allocation2 + $0x190] sm:$0x3] %vm313_vm2, %v9095_v3  ;;  %365 = vst.msk [vmem:[#allocation2 + $0x1a8] sm:$0x3] %vm313_vm2, %v9095_v3 }
  0x30   : > { %363 = vst.msk [vmem:[#allocation2 + $0x198] sm:$0xff] %vm310_vm1, %v9095_v3  ;;  %364 = vst.msk [vmem:[#allocation2 + $0x1a0] sm:$0xff] %vm310_vm1, %v9095_v3 }
  0x31   : > { %9183 = vst [vmem:[#allocation7_spill] sm:$0xff] %v6613_v8  ;;  %9184 = vst [vmem:[#allocation8_spill] sm:$0xff] %v6615_v9 }
  0x32   : > { %9185 = vst [vmem:[#allocation9_spill] sm:$0xff] %v6617_v10  ;;  %367 = vst.msk [vmem:[#allocation2 + $0x19] sm:$0xff] %vm310_vm1, %v278_v5 }
  0x33   : > { %368 = vst.msk [vmem:[#allocation2 + $0x21] sm:$0xff] %vm310_vm1, %v279_v6  ;;  %369 = vst.msk [vmem:[#allocation2 + $0x31] sm:$0xff] %vm310_vm1, %v280_v7 }
  0x34   : > { %370 = vst.msk [vmem:[#allocation2 + $0x39] sm:$0xff] %vm310_vm1, %v281_v14  ;;  %371 = vst.msk [vmem:[#allocation2 + $0x49] sm:$0xff] %vm310_vm1, %v282_v15 }
  0x35   : > { %372 = vst.msk [vmem:[#allocation2 + $0x51] sm:$0xff] %vm310_vm1, %v283_v16  ;;  %373 = vst.msk [vmem:[#allocation2 + $0x61] sm:$0xff] %vm310_vm1, %v284_v17  ;;  %v309_v17 = vld [vmem:[%s6608_s19 + $0xf8] sm:$0xff] }
  0x36   : > { %374 = vst.msk [vmem:[#allocation2 + $0x69] sm:$0xff] %vm310_vm1, %v285_v18  ;;  %375 = vst.msk [vmem:[#allocation2 + $0x79] sm:$0xff] %vm310_vm1, %v286_v19 }
  0x37   : > { %376 = vst.msk [vmem:[#allocation2 + $0x81] sm:$0xff] %vm310_vm1, %v287_v22  ;;  %377 = vst.msk [vmem:[#allocation2 + $0x91] sm:$0xff] %vm310_vm1, %v288_v23 }
  0x38   : > { %378 = vst.msk [vmem:[#allocation2 + $0x99] sm:$0xff] %vm310_vm1, %v289_v24  ;;  %379 = vst.msk [vmem:[#allocation2 + $0xa9] sm:$0xff] %vm310_vm1, %v290_v26 }
  0x39   : > { %380 = vst.msk [vmem:[#allocation2 + $0xb1] sm:$0xff] %vm310_vm1, %v291_v27  ;;  %381 = vst.msk [vmem:[#allocation2 + $0xc1] sm:$0xff] %vm310_vm1, %v292_v28  ;;  %v6661_v35 = vld [vmem:[#allocation2 + $0x18] sm:$0xff] }
  0x3a   : > { %382 = vst.msk [vmem:[#allocation2 + $0xc9] sm:$0xff] %vm310_vm1, %v293_v29  ;;  %383 = vst.msk [vmem:[#allocation2 + $0xd9] sm:$0xff] %vm310_vm1, %v294_v30  ;;  %v6663_v36 = vld [vmem:[#allocation2 + $0x20] sm:$0xff]  ;;  %v6665_v37 = vld [vmem:[#allocation2 + $0x28] sm:$0x3]  ;;  %v1086_v38 = vrot.slane %v6661_v35, 2 }
  0x3b   : > { %384 = vst.msk [vmem:[#allocation2 + $0xe1] sm:$0xff] %vm310_vm1, %v295_v31  ;;  %385 = vst.msk [vmem:[#allocation2 + $0xf1] sm:$0xff] %vm310_vm1, %v296_v32  ;;  %v1087_v39 = vrot.slane %v6663_v36, 2  ;;  %v1089_v40 = vrot.slane %v6665_v37, 2  ;;  %v6673_v41 = vld [vmem:[#allocation2 + $0x30] sm:$0xff]  ;;  %v6677_v44 = vld [vmem:[#allocation2 + $0x38] sm:$0xff] }
  0x3c   : > { %386 = vst.msk [vmem:[#allocation2 + $0xf9] sm:$0xff] %vm310_vm1, %v297_v33  ;;  %387 = vst.msk [vmem:[#allocation2 + $0x109] sm:$0xff] %vm310_vm1, %v298_v34  ;;  %v6679_v45 = vld [vmem:[#allocation2 + $0x40] sm:$0x3]  ;;  %v1091_v46 = vrot.slane %v6673_v41, 2  ;;  %v6682_v47 = vld [vmem:[#allocation2 + $0x48] sm:$0xff] }
  0x3d   : > { %388 = vst.msk [vmem:[#allocation2 + $0x111] sm:$0xff] %vm310_vm1, %v299_v42  ;;  %389 = vst.msk [vmem:[#allocation2 + $0x121] sm:$0xff] %vm310_vm1, %v300_v43  ;;  %v1088_v48 = vsel %vm1080_vm3, %v1086_v38, %v1087_v39  ;;  %v1090_v49 = vsel %vm1080_vm3, %v1087_v39, %v1089_v40  ;;  %v6690_v51 = vld [vmem:[#allocation2 + $0x50] sm:$0xff]  ;;  %v6692_v52 = vld [vmem:[#allocation2 + $0x58] sm:$0x3]  ;;  %v1092_v55 = vrot.slane %v6677_v44, 2 }
  0x3e   : > { %v6694_v53 = vld [vmem:[#allocation2 + $0x60] sm:$0xff]  ;;  %v6696_v54 = vpack.c.bf16 %v1090_v49, %v1088_v48  ;;  %v1094_v56 = vrot.slane %v6679_v45, 2  ;;  %v1096_v57 = vrot.slane %v6682_v47, 2  ;;  %v6701_v58 = vld [vmem:[#allocation2 + $0x68] sm:$0xff]  ;;  %v6703_v59 = vld [vmem:[#allocation2 + $0x70] sm:$0x3] }
  0x3f   : > { %v1097_v60 = vrot.slane %v6690_v51, 2  ;;  %v1099_v61 = vrot.slane %v6692_v52, 2  ;;  %v1101_v62 = vrot.slane %v6694_v53, 2  ;;  %v1102_v63 = vrot.slane %v6701_v58, 2  ;;  %9187 = vst [vmem:[#allocation11_spill] sm:$0xff] %v6712_v0  ;;  %v6719_v5 = vld [vmem:[#allocation2 + $0x78] sm:$0xff] }
  0x40   : > { %9186 = vst [vmem:[#allocation10_spill] sm:$0xff] %v6696_v54  ;;  %5443 = vmatmul.mubr.msk.bf16.vlgmr.msra.gmra.mrb[0].mxu0 %vm310_vm1, %v6696_v54  ;;  %v1093_v1 = vsel %vm1080_vm3, %v1091_v46, %v1092_v55  ;;  %v1095_v2 = vsel %vm1080_vm3, %v1092_v55, %v1094_v56  ;;  %v1104_v4 = vrot.slane %v6703_v59, 2  ;;  %v6721_v6 = vld [vmem:[#allocation2 + $0x80] sm:$0xff]  ;;  %v6727_v13 = vld [vmem:[#allocation2 + $0x88] sm:$0x3]  ;;  %v6729_v14 = vld [vmem:[#allocation2 + $0x90] sm:$0xff] }
  0x41   : > { %5475 = vmatpush3.bf16.msra.mxu0 %v1462_v50  ;;  %v6723_v7 = vpack.c.bf16 %v1095_v2, %v1093_v1  ;;  %v1098_v11 = vsel %vm1080_vm3, %v1096_v57, %v1097_v60  ;;  %v1100_v12 = vsel %vm1080_vm3, %v1097_v60, %v1099_v61  ;;  %v6731_v15 = vld [vmem:[#allocation2 + $0x98] sm:$0xff]  ;;  %v1103_v18 = vsel %vm1080_vm3, %v1101_v62, %v1102_v63  ;;  %v6737_v20 = vld [vmem:[#allocation2 + $0xa0] sm:$0x3]  ;;  %v6739_v21 = vld [vmem:[#allocation2 + $0xa8] sm:$0xff] }
  0x42   : > { %v1105_v19 = vsel %vm1080_vm3, %v1102_v63, %v1104_v4  ;;  %v6741_v22 = vld [vmem:[#allocation2 + $0xb0] sm:$0xff]  ;;  %5978 = vmatprep.subr.msk.bf16.mxu0 %vm703_vm0, %v6712_v0  ;;  %v1106_v24 = vrot.slane %v6719_v5, 2  ;;  %v6749_v25 = vld [vmem:[#allocation2 + $0xb8] sm:$0x3]  ;;  %v6751_v26 = vld [vmem:[#allocation2 + $0xc0] sm:$0xff]  ;;  %v6755_v28 = vpack.c.bf16 %v1100_v12, %v1098_v11  ;;  %v1107_v29 = vrot.slane %v6721_v6, 2 }
  0x43   : > { %9188 = vst [vmem:[#allocation12_spill] sm:$0xff] %v6723_v7  ;;  %5446 = vmatprep.mubr.msk.bf16.mxu0 %vm310_vm1, %v6723_v7  ;;  %v6753_v27 = vld [vmem:[#allocation2 + $0xc8] sm:$0xff]  ;;  %v1109_v30 = vrot.slane %v6727_v13, 2  ;;  %v6759_v31 = vld [vmem:[#allocation2 + $0xd0] sm:$0x3]  ;;  %v6761_v32 = vld [vmem:[#allocation2 + $0xd8] sm:$0xff]  ;;  %v6765_v34 = vpack.c.bf16 %v1105_v19, %v1103_v18 }
  0x44   : > { %9189 = vst [vmem:[#allocation13_spill] sm:$0xff] %v6755_v28  ;;  %v6763_v33 = vld [vmem:[#allocation2 + $0xe0] sm:$0xff]  ;;  %v1111_v38 = vrot.slane %v6729_v14, 2  ;;  %v1112_v39 = vrot.slane %v6731_v15, 2  ;;  %v6769_v40 = vld [vmem:[#allocation2 + $0xe8] sm:$0x3]  ;;  %v1108_v1 = vsel %vm1080_vm3, %v1106_v24, %v1107_v29  ;;  %v6850_v54 = vpack.c.bf16 %v6753_v27, %v6751_v26 }
  0x45   : > { %9190 = vst [vmem:[#allocation14_spill] sm:$0xff] %v6765_v34  ;;  %v6771_v42 = vld [vmem:[#allocation2 + $0xf0] sm:$0xff]  ;;  %v6773_v43 = vld [vmem:[#allocation2 + $0xf8] sm:$0xff]  ;;  %v1114_v46 = vrot.slane %v6737_v20, 2  ;;  %v1116_v48 = vrot.slane %v6739_v21, 2  ;;  %v6779_v50 = vld [vmem:[#allocation2 + $0x108] sm:$0xff]  ;;  %v1110_v24 = vsel %vm1080_vm3, %v1107_v29, %v1109_v30 }
  0x46   : > { %v6777_v49 = vld [vmem:[#allocation2 + $0x100] sm:$0x3]  ;;  %9191 = vst [vmem:[#allocation15_spill] sm:$0xff] %v6779_v50  ;;  %v301_v55 = vld [vmem:[%s6608_s19 + $0xb8] sm:$0xff]  ;;  %v1117_v56 = vrot.slane %v6741_v22, 2  ;;  %v1119_v57 = vrot.slane %v6749_v25, 2 }
  0x47   : > { %v6784_v60 = vld [vmem:[#allocation2 + $0x110] sm:$0xff]  ;;  %v6786_v61 = vld [vmem:[#allocation2 + $0x118] sm:$0x3]  ;;  %390 = vst.msk [vmem:[#allocation2 + $0x129] sm:$0xff] %vm310_vm1, %v301_v55  ;;  %v302_v62 = vld [vmem:[%s6608_s19 + $0xc0] sm:$0xff]  ;;  %v1121_v2 = vrot.slane %v6751_v26, 2  ;;  %v1115_v29 = vsel %vm1080_vm3, %v1112_v39, %v1114_v46  ;;  %v6831_v46 = vpack.c.bf16 %v6677_v44, %v6673_v41 }
  0x48   : > { %9192 = vst [vmem:[#allocation16_spill] sm:$0xff] %v6784_v60  ;;  %9193 = vst [vmem:[#allocation17_spill] sm:$0xff] %v6786_v61  ;;  %v303_v63 = vld [vmem:[%s6608_s19 + $0xc8] sm:$0xff]  ;;  %5447 = vmatmul.mubr.msk.bf16.gmra.mrb[4].mxu0 %vm310_vm1, %v6755_v28  ;;  %v1122_v4 = vrot.slane %v6753_v27, 2  ;;  %v1124_v11 = vrot.slane %v6759_v31, 2  ;;  %v304_v12 = vld [vmem:[%s6608_s19 + $0xd0] sm:$0xff] }
  0x49   : > { %391 = vst.msk [vmem:[#allocation2 + $0x139] sm:$0xff] %vm310_vm1, %v302_v62  ;;  %392 = vst.msk [vmem:[#allocation2 + $0x141] sm:$0xff] %vm310_vm1, %v303_v63  ;;  %v305_v18 = vld [vmem:[%s6608_s19 + $0xd8] sm:$0xff]  ;;  %v306_v19 = vld [vmem:[%s6608_s19 + $0xe0] sm:$0xff]  ;;  %5450 = vmatprep.mubr.msk.bf16.mxu0 %vm310_vm1, %v6765_v34  ;;  %v1126_v55 = vrot.slane %v6761_v32, 2  ;;  %v1127_v3 = vrot.slane %v6763_v33, 2  ;;  %v1113_v34 = vsel %vm1080_vm3, %v1111_v38, %v1112_v39 }
  0x4a   : > { %v1129_v23 = vrot.slane %v6769_v40, 2  ;;  %v6808_v16 = vld [vmem:[#allocation2 + $0x120] sm:$0xff]  ;;  %393 = vst.msk [vmem:[#allocation2 + $0x151] sm:$0xff] %vm310_vm1, %v304_v12  ;;  %394 = vst.msk [vmem:[#allocation2 + $0x159] sm:$0xff] %vm310_vm1, %v305_v18  ;;  %v307_v62 = vld [vmem:[%s6608_s19 + $0xe8] sm:$0xff]  ;;  %v1131_v30 = vrot.slane %v6771_v42, 2  ;;  %v6833_v7 = vpack.c.bf16 %v1115_v29, %v1113_v34  ;;  %v1118_v34 = vsel %vm1080_vm3, %v1116_v48, %v1117_v56 }
  0x4b   : > { %395 = vst.msk [vmem:[#allocation2 + $0x169] sm:$0xff] %vm310_vm1, %v306_v19  ;;  %v308_v63 = vld [vmem:[%s6608_s19 + $0xf0] sm:$0xff]  ;;  %v1132_v28 = vrot.slane %v6773_v43, 2  ;;  %396 = vst.msk [vmem:[#allocation2 + $0x171] sm:$0xff] %vm310_vm1, %v307_v62  ;;  %v1134_v12 = vrot.slane %v6777_v49, 2  ;;  %v1136_v18 = vrot.slane %v6779_v50, 2  ;;  %v6825_v19 = vpack.c.bf16 %v1110_v24, %v1108_v1 }
  0x4c   : > { %397 = vst.msk [vmem:[#allocation2 + $0x181] sm:$0xff] %vm310_vm1, %v308_v63  ;;  %398 = vst.msk [vmem:[#allocation2 + $0x189] sm:$0xff] %vm310_vm1, %v309_v17  ;;  %v1137_v38 = vrot.slane %v6784_v60, 2  ;;  %v1139_v39 = vrot.slane %v6786_v61, 2  ;;  %v6837_v62 = vpack.c.bf16 %v6701_v58, %v6694_v53  ;;  %v1141_v1 = vrot.slane %v6808_v16, 2  ;;  %s6323_s19 = scalar_lea.vmem %s9036_s15, 4096 }
  0x4d   : > { %9194 = vst [vmem:[#allocation18_spill] sm:$0xff] %v6825_v19  ;;  %9195 = vst [vmem:[#allocation19_spill] sm:$0xff] %v6831_v46  ;;  %v6846_v24 = vpack.c.bf16 %v6731_v15, %v6729_v14  ;;  %v6863_v46 = vpack.c.bf16 %v6773_v43, %v6771_v42  ;;  %v1123_v48 = vsel %vm1080_vm3, %v1121_v2, %v1122_v4  ;;  %p6324_p11 = scmp.ne.s32.totalorder %s9036_s15, %s6323_s19  ;;  %p6331_p1 = scmp.lt.s32.totalorder %s6329_s23, %s6323_s19 }
  0x4e   : > { %9196 = vst [vmem:[#allocation20_spill] sm:$0xff] %v6833_v7  ;;  %9197 = vst [vmem:[#allocation21_spill] sm:$0xff] %v6837_v62  ;;  %v6839_v17 = vld [vmem:[#allocation2 + $0x128] sm:$0xff]  ;;  %v6841_v63 = vld [vmem:[#allocation2 + $0x130] sm:$0x3]  ;;  %v1128_v0 = vsel %vm1080_vm3, %v1126_v55, %v1127_v3  ;;  %v1133_v60 = vsel %vm1080_vm3, %v1131_v30, %v1132_v28  ;;  %v1140_v2 = vsel %vm1080_vm3, %v1137_v38, %v1139_v39 }
  0x4f   : > { %9198 = vst [vmem:[#allocation22_spill] sm:$0xff] %v6841_v63  ;;  %9199 = vst [vmem:[#allocation23_spill] sm:$0xff] %v6846_v24  ;;  %v1142_v29 = vrot.slane %v6839_v17, 2  ;;  %v1144_v10 = vrot.slane %v6841_v63, 2  ;;  %v1125_v24 = vsel %vm1080_vm3, %v1122_v4, %v1124_v11  ;;  %v6900_v39 = vpack.c.bf16 %v6839_v17, %v6808_v16  ;;  %p6325_p12 = pnand %p6324_p11, %p6470_p5  ;;  %p6332_p2 = por %p6331_p1, %p6330_p0 }
  0x50   : > { %9200 = vst [vmem:[#allocation24_spill] sm:$0xff] %v6850_v54  ;;  %v6855_v9 = vld [vmem:[#allocation2 + $0x138] sm:$0xff]  ;;  %v6857_v8 = vld [vmem:[#allocation2 + $0x140] sm:$0xff]  ;;  %v6859_v62 = vld [vmem:[#allocation2 + $0x148] sm:$0x3]  ;;  %5451 = vmatmul.mubr.msk.bf16.gmra.mrb[8].mxu0 %vm310_vm1, %v6825_v19  ;;  %v1120_v54 = vsel %vm1080_vm3, %v1117_v56, %v1119_v57  ;;  %v1135_v19 = vsel %vm1080_vm3, %v1132_v28, %v1134_v12  ;;  %v1138_v56 = vsel %vm1080_vm3, %v1136_v18, %v1137_v38 }
  0x51   : > { %9201 = vst [vmem:[#allocation25_spill] sm:$0xff] %v6859_v62  ;;  %9202 = vst [vmem:[#allocation26_spill] sm:$0xff] %v6863_v46  ;;  %v6871_v63 = vld [vmem:[#allocation2 + $0x150] sm:$0xff]  ;;  %v6873_v61 = vld [vmem:[#allocation2 + $0x158] sm:$0xff]  ;;  %5454 = vmatprep.mubr.msk.bf16.mxu0 %vm310_vm1, %v6833_v7  ;;  %v1130_v46 = vsel %vm1080_vm3, %v1127_v3, %v1129_v23  ;;  %v1146_v4 = vrot.slane %v6855_v9, 2  ;;  %v1147_v11 = vrot.slane %v6857_v8, 2  ;;  %v1143_v3 = vsel %vm1080_vm3, %v1141_v1, %v1142_v29  ;;  %p6326_p13 = pneg %p6325_p12 }
  0x52   : > { %v6881_v57 = vld [vmem:[#allocation2 + $0x160] sm:$0x3]  ;;  %v1149_v55 = vrot.slane %v6859_v62, 2  ;;  %v6887_v50 = vld [vmem:[#allocation2 + $0x168] sm:$0xff]  ;;  %v1145_v23 = vsel %vm1080_vm3, %v1142_v29, %v1144_v10  ;;  %v1151_v28 = vrot.slane %v6871_v63, 2  ;;  %v1152_v30 = vrot.slane %v6873_v61, 2 }
  0x53   : > { %9203 = vst [vmem:[#allocation27_spill] sm:$0xff] %v6881_v57  ;;  %v6893_v12 = vpack.c.bf16 %v1120_v54, %v1118_v34  ;;  %v1154_v18 = vrot.slane %v6881_v57, 2  ;;  %v6896_v38 = vld [vmem:[#allocation2 + $0x170] sm:$0xff]  ;;  %v6902_v7 = vpack.c.bf16 %v1125_v24, %v1123_v48  ;;  %v6904_v62 = vpack.c.bf16 %v1130_v46, %v1128_v0  ;;  %p6333_p3 = pnand %p6332_p2, %p6326_p13 }
  0x54   : > { %v6906_v1 = vpack.c.bf16 %v1135_v19, %v1133_v60  ;;  %v6910_v10 = vpack.c.bf16 %v6873_v61, %v6871_v63  ;;  %v6912_v54 = vpack.c.bf16 %v1140_v2, %v1138_v56  ;;  %v6914_v34 = vpack.c.bf16 %v1145_v23, %v1143_v3 }
  0x55   : > { %v6917_v29 = vsel %vm1080_vm3, %v1146_v4, %v1147_v11  ;;  %v6920_v57 = vsel %vm1080_vm3, %v1147_v11, %v1149_v55  ;;  %v6923_v24 = vsel %vm1080_vm3, %v1151_v28, %v1152_v30  ;;  %v1156_v0 = vrot.slane %v6887_v50, 2 }
  0x56   : > { %v1157_v60 = vrot.slane %v6896_v38, 2  ;;  %v528_v19 = vrot.slane %v6661_v35, 1  ;;  %v529_v46 = vrot.slane %v6663_v36, 1  ;;  %v531_v48 = vrot.slane %v6665_v37, 1 }
  0x57   : > { %v9204_v56 = vrot.slane %v6677_v44, 1  ;;  %v9205_v2 = vrot.slane %v6673_v41, 1  ;;  %v9206_v11 = vrot.slane %v6679_v45, 1  ;;  %v6945_v23 = vsel %vm1080_vm3, %v1152_v30, %v1154_v18 }
  0x58   : > { %5455 = vmatmul.mubr.msk.bf16.gmra.mrb[12].mxu0 %vm310_vm1, %v6893_v12  ;;  %v538_v37 = vrot.slane %v6682_v47, 1  ;;  %v539_v41 = vrot.slane %v6690_v51, 1  ;;  %v532_v45 = vsel %vm522_vm4, %v529_v46, %v531_v48  ;;  %v541_v44 = vrot.slane %v6692_v52, 1 }
  0x59   : > { %v535_v4 = vsel %vm522_vm4, %v9205_v2, %v9204_v56  ;;  %v9207_v55 = vmov %v9204_v56  ;;  %5458 = vmatprep.mubr.msk.bf16.mxu0 %vm310_vm1, %v6902_v7  ;;  %v530_v56 = vsel %vm522_vm4, %v528_v19, %v529_v46  ;;  %v543_v2 = vrot.slane %v6694_v53, 1 }
  0x5a   : > { %v537_v3 = vsel %vm522_vm4, %v9207_v55, %v9206_v11  ;;  %v6955_v11 = vpack.c.bf16 %v532_v45, %v530_v56  ;;  %v540_v55 = vsel %vm522_vm4, %v538_v37, %v539_v41  ;;  %v544_v30 = vrot.slane %v6701_v58, 1 }
  0x5b   : > { %v6947_v28 = vpack.c.bf16 %v537_v3, %v535_v4  ;;  %v546_v18 = vrot.slane %v6703_v59, 1  ;;  %v542_v4 = vsel %vm522_vm4, %v539_v41, %v541_v44  ;;  %v548_v3 = vrot.slane %v6719_v5, 1 }
  0x5c   : > { %v549_v19 = vrot.slane %v6721_v6, 1  ;;  %v551_v46 = vrot.slane %v6727_v13, 1  ;;  %v6964_v48 = vpack.c.bf16 %v542_v4, %v540_v55  ;;  %v545_v52 = vsel %vm522_vm4, %v543_v2, %v544_v30 }
  0x5d   : > { %v547_v53 = vsel %vm522_vm4, %v544_v30, %v546_v18  ;;  %v553_v37 = vrot.slane %v6729_v14, 1  ;;  %v554_v41 = vrot.slane %v6731_v15, 1  ;;  %v556_v13 = vrot.slane %v6737_v20, 1 }
  0x5e   : > { %v6969_v56 = vpack.c.bf16 %v547_v53, %v545_v52  ;;  %v550_v58 = vsel %vm522_vm4, %v548_v3, %v549_v19  ;;  %v552_v59 = vsel %vm522_vm4, %v549_v19, %v551_v46  ;;  %v558_v44 = vrot.slane %v6739_v21, 1 }
  0x5f   : > { %v6974_v45 = vpack.c.bf16 %v552_v59, %v550_v58  ;;  %v559_v2 = vrot.slane %v6741_v22, 1  ;;  %v555_v14 = vsel %vm522_vm4, %v553_v37, %v554_v41  ;;  %v561_v55 = vrot.slane %v6749_v25, 1 }
  0x60   : > { %5459 = vmatmul.mubr.msk.bf16.gmra.mrb[16].mxu0 %vm310_vm1, %v6904_v62  ;;  %v563_v30 = vrot.slane %v6751_v26, 1  ;;  %v564_v18 = vrot.slane %v6753_v27, 1  ;;  %v557_v15 = vsel %vm522_vm4, %v554_v41, %v556_v13  ;;  %v566_v4 = vrot.slane %v6759_v31, 1  ;;  %v446_v13 = vld [vmem:[#allocation2 + $0x178] sm:$0x3] }
  0x61   : > { %5462 = vmatprep.mubr.msk.bf16.mxu0 %vm310_vm1, %v6906_v1  ;;  %v560_v20 = vsel %vm522_vm4, %v558_v44, %v559_v2  ;;  %v568_v3 = vrot.slane %v6761_v32, 1  ;;  %v6991_v19 = vpack.c.bf16 %v557_v15, %v555_v14  ;;  %v562_v46 = vsel %vm522_vm4, %v559_v2, %v561_v55  ;;  %v9208_v2 = vld [vmem:[#allocation15_spill] sm:$0xff]  ;;  %v9209_v55 = vld [vmem:[#allocation16_spill] sm:$0xff] }
  0x62   : > { %v565_v25 = vsel %vm522_vm4, %v563_v30, %v564_v18  ;;  %v569_v26 = vrot.slane %v6763_v33, 1  ;;  %v6996_v27 = vpack.c.bf16 %v562_v46, %v560_v20  ;;  %v567_v52 = vsel %vm522_vm4, %v564_v18, %v566_v4  ;;  %v9210_v18 = vld [vmem:[#allocation17_spill] sm:$0xff] }
  0x63   : > { %v571_v53 = vrot.slane %v6769_v40, 1  ;;  %v573_v37 = vrot.slane %v6771_v42, 1  ;;  %v7001_v58 = vpack.c.bf16 %v567_v52, %v565_v25  ;;  %v574_v59 = vrot.slane %v6773_v43, 1 }
  0x64   : > { %v570_v31 = vsel %vm522_vm4, %v568_v3, %v569_v26  ;;  %v576_v41 = vrot.slane %v6777_v49, 1  ;;  %v578_v14 = vrot.slane %v9208_v2, 1  ;;  %v579_v30 = vrot.slane %v9209_v55, 1 }
  0x65   : > { %v572_v44 = vsel %vm522_vm4, %v569_v26, %v571_v53  ;;  %v581_v15 = vrot.slane %v9210_v18, 1  ;;  %v575_v42 = vsel %vm522_vm4, %v573_v37, %v574_v59  ;;  %v583_v4 = vrot.slane %v6808_v16, 1  ;;  %v9211_v26 = vld [vmem:[#allocation22_spill] sm:$0xff]  ;;  %v9213_v18 = vld [vmem:[#allocation27_spill] sm:$0xff] }
  0x66   : > { %v7010_v40 = vpack.c.bf16 %v572_v44, %v570_v31  ;;  %v577_v20 = vsel %vm522_vm4, %v574_v59, %v576_v41  ;;  %v580_v49 = vsel %vm522_vm4, %v578_v14, %v579_v30  ;;  %v584_v46 = vrot.slane %v6839_v17, 1  ;;  %v9212_v31 = vld [vmem:[#allocation25_spill] sm:$0xff] }
  0x67   : > { %v7015_v43 = vpack.c.bf16 %v577_v20, %v575_v42  ;;  %v582_v3 = vsel %vm522_vm4, %v579_v30, %v581_v15  ;;  %v586_v52 = vrot.slane %v9211_v26, 1  ;;  %v588_v53 = vrot.slane %v6855_v9, 1 }
  0x68   : > { %5463 = vmatmul.mubr.msk.bf16.gmra.mrb[20].mxu0 %vm310_vm1, %v6912_v54  ;;  %v7022_v25 = vpack.c.bf16 %v582_v3, %v580_v49  ;;  %v589_v37 = vrot.slane %v6857_v8, 1  ;;  %v585_v16 = vsel %vm522_vm4, %v583_v4, %v584_v46  ;;  %v591_v59 = vrot.slane %v9212_v31, 1 }
  0x69   : > { %5466 = vmatprep.mubr.msk.bf16.mxu0 %vm310_vm1, %v6914_v34  ;;  %v593_v17 = vrot.slane %v6871_v63, 1  ;;  %v594_v41 = vrot.slane %v6873_v61, 1  ;;  %v1159_v44 = vrot.slane %v446_v13, 2  ;;  %v587_v14 = vsel %vm522_vm4, %v584_v46, %v586_v52 }
  0x6a   : > { %v590_v30 = vsel %vm522_vm4, %v588_v53, %v589_v37  ;;  %v596_v15 = vrot.slane %v9213_v18, 1  ;;  %v7036_v42 = vpack.c.bf16 %v587_v14, %v585_v16  ;;  %v592_v20 = vsel %vm522_vm4, %v589_v37, %v591_v59 }
  0x6b   : > { %v595_v49 = vsel %vm522_vm4, %v593_v17, %v594_v41  ;;  %v7042_v4 = vpack.c.bf16 %v6920_v57, %v6917_v29  ;;  %v7044_v63 = vpack.c.bf16 %v592_v20, %v590_v30  ;;  %v7049_v3 = vpack.c.bf16 %v6945_v23, %v6923_v24 }
  0x6c   : > { %v597_v61 = vsel %vm522_vm4, %v594_v41, %v596_v15  ;;  %v598_v26 = vrot.slane %v6887_v50, 1  ;;  %v599_v52 = vrot.slane %v6896_v38, 1  ;;  %v601_v53 = vrot.slane %v446_v13, 1  ;;  %v9215_v41 = vld [vmem:[#allocation19_spill] sm:$0xff] }
  0x6d   : > { %v7051_v46 = vpack.c.bf16 %v597_v61, %v595_v49  ;;  %v1158_v57 = vsel %vm1080_vm3, %v1156_v0, %v1157_v60  ;;  %v1160_v29 = vsel %vm1080_vm3, %v1157_v60, %v1159_v44  ;;  %v7075_v16 = vpack.c.bf16 %v6663_v36, %v6661_v35  ;;  %v9214_v0 = vld [vmem:[#allocation11_spill] sm:$0xff]  ;;  %v9216_v36 = vld [vmem:[#allocation21_spill] sm:$0xff] }
  0x6e   : > { %v600_v24 = vsel %vm522_vm4, %v598_v26, %v599_v52  ;;  %v602_v23 = vsel %vm522_vm4, %v599_v52, %v601_v53  ;;  %v7071_v13 = vpack.c.bf16 %v1160_v29, %v1158_v57  ;;  %v4846_v60 = vcombine.low %v9214_v0, %v9214_v0  ;;  %v453_v15 = vld [vmem:[%s9088_s1] sm:$0xf]  ;;  %v9221_v52 = vld [vmem:[#allocation8_spill] sm:$0xff]  ;;  %v9222_v57 = vld [vmem:[#allocation9_spill] sm:$0xff] }
  0x6f   : > { %v7069_v37 = vpack.c.bf16 %v602_v23, %v600_v24  ;;  %v7085_v31 = vpack.c.bf16 %v6690_v51, %v6682_v47  ;;  %v1672_v17 = vsel %vm703_vm0, %v9214_v0, 0  ;;  %v7096_v35 = vpack.c.bf16 %v6721_v6, %v6719_v5  ;;  %v9217_v51 = vld [vmem:[#allocation23_spill] sm:$0xff]  ;;  %v9218_v6 = vld [vmem:[#allocation24_spill] sm:$0xff] }
  0x70   : > { %5467 = vmatmul.mubr.msk.bf16.gmra.mrb[24].mxu0 %vm310_vm1, %v7042_v4  ;;  %v1878_v59 = vrot.slane %v4846_v60, 2  ;;  %v7104_v47 = vpack.c.bf16 %v6741_v22, %v6739_v21  ;;  %v7112_v5 = vpack.c.bf16 %v6763_v33, %v6761_v32  ;;  %v7120_v21 = vpack.c.bf16 %v9209_v55, %v9208_v2  ;;  %v9219_v22 = vld [vmem:[#allocation26_spill] sm:$0xff]  ;;  %v7134_v33 = vld [vmem:[#allocation2 + $0x180] sm:$0xff]  ;;  %v7136_v2 = vld [vmem:[#allocation2 + $0x188] sm:$0xff] }
  0x71   : > { %5470 = vmatprep.mubr.msk.bf16.mxu0 %vm310_vm1, %v7049_v3  ;;  %v7128_v32 = vpack.c.bf16 %v6857_v8, %v6855_v9  ;;  %v7140_v55 = vpack.c.bf16 %v6896_v38, %v6887_v50  ;;  %v1867_v44 = vrot.slane %v7134_v33, 2  ;;  %v1868_v14 = vrot.slane %v7136_v2, 2  ;;  %v449_v8 = vld [vmem:[#allocation2 + $0x190] sm:$0x3]  ;;  %v9220_v61 = vld [vmem:[#allocation7_spill] sm:$0xff] }
  0x72   : > { %v1870_v30 = vrot.slane %v449_v8, 2  ;;  %v7152_v50 = vpack.c.bf16 %v7136_v2, %v7134_v33  ;;  %v4764_v20 = vcombine.low %v453_v15, %v453_v15  ;;  %v523_v26 = vrot.slane %v9220_v61, 1 }
  0x73   : > { %v1869_v9 = vsel %vm1080_vm3, %v1867_v44, %v1868_v14  ;;  %v524_v53 = vrot.slane %v9221_v52, 1  ;;  %v526_v29 = vrot.slane %v9222_v57, 1  ;;  %v456_v44 = vld [vmem:[%s9088_s1 + $0xc] sm:$0xf] }
  0x74   : > { %v1871_v18 = vsel %vm1080_vm3, %v1868_v14, %v1870_v30  ;;  %v654_v49 = vrot.slane %v4764_v20, 2  ;;  %v1663_v14 = vrot.slane %v449_v8, 1  ;;  %v917_v8 = vsel %vm703_vm0, %v453_v15, 0 }
  0x75   : > { %v7154_v38 = vpack.c.bf16 %v1871_v18, %v1869_v9  ;;  %v525_v23 = vsel %vm522_vm4, %v523_v26, %v524_v53  ;;  %v527_v0 = vsel %vm522_vm4, %v524_v53, %v526_v29  ;;  %v458_v18 = vpack.c.bf16 %v9221_v52, %v9220_v61  ;;  %v9224_v53 = vld [vmem:[#allocation12_spill] sm:$0xff]  ;;  %v9227_v61 = vld [vmem:[#allocation18_spill] sm:$0xff]  ;;  %v457_v29 = vld [vmem:[%s9088_s1 + $0x10] sm:$0x3] }
  0x76   : > { %5974 = vmatprep.subr.msk.bf16.mxu1 %vm703_vm0, %v654_v49  ;;  %v705_v24 = vsel %vm703_vm0, %v654_v49, 0  ;;  %v635_v60 = vpack.c.bf16 %v527_v0, %v525_v23  ;;  %v4879_v20 = vcombine.low %v456_v44, %v456_v44  ;;  %v2083_v26 = vsel %vm703_vm0, %v456_v44, 0  ;;  %v9228_v52 = vld [vmem:[#allocation20_spill] sm:$0xff] }
  0x77   : > { %5373 = vmatpush3.bf16.msra.mxu1 %v705_v24 }
  0x78   : > { %5471 = vmatmul.mubr.msk.bf16.gmra.mrb[28].mxu0 %vm310_vm1, %v7071_v13  ;;  %5975 = vmatprep.subr.msk.bf16.mxu1 %vm703_vm0, %v453_v15  ;;  %v2292_v49 = vrot.slane %v4879_v20, 2  ;;  %v9225_v15 = vld [vmem:[#allocation13_spill] sm:$0xff] }
  0x79   : > { %5476 = vmatprep.mubr.msk.bf16.mxu0 %vm310_vm1, %v7075_v16  ;;  %5374 = vmatprep.mubr.msk.bf16.mxu1 %vm310_vm1, %v635_v60  ;;  %v6284_v20 = vld [vmem:[%s9091_s4 + $0x50] sm:$0xff]  }
  0x7a   : > { %5375 = vmatmul.mubr.msk.bf16.vlgmr.msra.gmra.mrb[0].mxu1 %vm310_vm1, %v6955_v11  ;;  %v2297_v57 = vsel %vm703_vm0, %v2292_v49, 0 }
  0x7b   : > { %5378 = vmatprep.mubr.msk.bf16.mxu1 %vm310_vm1, %v6947_v28  ;;  %5407 = vmatpush3.bf16.msra.mxu1 %v917_v8  ;;  %v6282_v8 = vld [vmem:[%s9091_s4 + $0x48] sm:$0xff]  }
  0x80   : > { %5477 = vmatmul.mubr.msk.bf16.vlgmr.msra.gmra.mrb[0].mxu0 %vm310_vm1, %v9215_v41 }
  0x81   : > { %5509 = vmatpush3.bf16.msra.mxu0 %v1672_v17  ;;  %5480 = vmatprep.mubr.msk.bf16.mxu0 %vm310_vm1, %v7085_v31  ;;  %v1883_v17 = vsel %vm703_vm0, %v1878_v59, 0 }
  0x82   : > { %5979 = vmatprep.subr.msk.bf16.mxu0 %vm703_vm0, %v1878_v59  ;;  %5379 = vmatmul.mubr.msk.bf16.gmra.mrb[4].mxu1 %vm310_vm1, %v6964_v48  ;;  %v1661_v59 = vrot.slane %v7136_v2, 1  ;;  %v9223_v2 = vld [vmem:[#allocation10_spill] sm:$0xff] }
  0x83   : > { %5382 = vmatprep.mubr.msk.bf16.mxu1 %vm310_vm1, %v6969_v56 }
  0x84   : > { %v1664_v30 = vsel %vm522_vm4, %v1661_v59, %v1663_v14 }
  0x88   : > { %5481 = vmatmul.mubr.msk.bf16.gmra.mrb[4].mxu0 %vm310_vm1, %v9216_v36 }
  0x89   : > { %5484 = vmatprep.mubr.msk.bf16.mxu0 %vm310_vm1, %v7096_v35 }
  0x8a   : > { %5383 = vmatmul.mubr.msk.bf16.gmra.mrb[8].mxu1 %vm310_vm1, %v6974_v45 }
  0x8b   : > { %5386 = vmatprep.mubr.msk.bf16.mxu1 %vm310_vm1, %v6991_v19 }
  0x90   : > { %5485 = vmatmul.mubr.msk.bf16.gmra.mrb[8].mxu0 %vm310_vm1, %v9217_v51 }
  0x91   : > { %5488 = vmatprep.mubr.msk.bf16.mxu0 %vm310_vm1, %v7104_v47 }
  0x92   : > { %5387 = vmatmul.mubr.msk.bf16.gmra.mrb[12].mxu1 %vm310_vm1, %v6996_v27 }
  0x93   : > { %5390 = vmatprep.mubr.msk.bf16.mxu1 %vm310_vm1, %v7001_v58 }
  0x98   : > { %5489 = vmatmul.mubr.msk.bf16.gmra.mrb[12].mxu0 %vm310_vm1, %v9218_v6 }
  0x99   : > { %5492 = vmatprep.mubr.msk.bf16.mxu0 %vm310_vm1, %v7112_v5 }
  0x9a   : > { %5391 = vmatmul.mubr.msk.bf16.gmra.mrb[16].mxu1 %vm310_vm1, %v7010_v40 }
  0x9b   : > { %5394 = vmatprep.mubr.msk.bf16.mxu1 %vm310_vm1, %v7015_v43 }
  0xa0   : > { %5493 = vmatmul.mubr.msk.bf16.gmra.mrb[16].mxu0 %vm310_vm1, %v9219_v22 }
  0xa1   : > { %5496 = vmatprep.mubr.msk.bf16.mxu0 %vm310_vm1, %v7120_v21 }
  0xa2   : > { %5395 = vmatmul.mubr.msk.bf16.gmra.mrb[20].mxu1 %vm310_vm1, %v7022_v25 }
  0xa3   : > { %5398 = vmatprep.mubr.msk.bf16.mxu1 %vm310_vm1, %v7036_v42 }
  0xa8   : > { %5497 = vmatmul.mubr.msk.bf16.gmra.mrb[20].mxu0 %vm310_vm1, %v6900_v39 }
  0xa9   : > { %5500 = vmatprep.mubr.msk.bf16.mxu0 %vm310_vm1, %v7128_v32 }
  0xaa   : > { %5399 = vmatmul.mubr.msk.bf16.gmra.mrb[24].mxu1 %vm310_vm1, %v7044_v63 }
  0xab   : > { %5402 = vmatprep.mubr.msk.bf16.mxu1 %vm310_vm1, %v7051_v46 }
  0xb0   : > { %5501 = vmatmul.mubr.msk.bf16.gmra.mrb[24].mxu0 %vm310_vm1, %v6910_v10 }
  0xb1   : > { %5504 = vmatprep.mubr.msk.bf16.mxu0 %vm310_vm1, %v7140_v55 }
  0xb2   : > { %5403 = vmatmul.mubr.msk.bf16.gmra.mrb[28].mxu1 %vm310_vm1, %v7069_v37 }
  0xb3   : > { %5408 = vmatprep.mubr.msk.bf16.mxu1 %vm310_vm1, %v458_v18  ;;  %v6283_v18 = vld [vmem:[%s9091_s4 + $0x8] sm:$0xff]  }
  0xb8   : > { %5505 = vmatmul.mubr.msk.bf16.gmra.mrb[28].mxu0 %vm310_vm1, %v7152_v50 }
  0xb9   : > { %5510 = vmatprep.mubr.msk.bf16.mxu0 %vm310_vm1, %v6955_v11  ;;  %v1660_v11 = vrot.slane %v7134_v33, 1 }
  0xba   : > { %5409 = vmatmul.mubr.msk.bf16.vlgmr.msra.gmra.mrb[0].mxu1 %vm310_vm1, %v7075_v16  ;;  %v9226_v16 = vld [vmem:[#allocation14_spill] sm:$0xff] }
  0xbb   : > { %v1662_v9 = vsel %vm522_vm4, %v1660_v11, %v1661_v59  ;;  %5412 = vmatprep.mubr.msk.bf16.mxu1 %vm310_vm1, %v9215_v41 }
  0xbc   : > { %v7237_v33 = vpack.c.bf16 %v1664_v30, %v1662_v9  ;;  %v9229_v30 = vmov 0.0  }
  0xbd   : > { %2817 = vst.msk [vmem:[#allocation3 + $0x30] sm:$0xff] %vm2809_vm5, %v9229_v30  ;;  %2818 = vst.msk [vmem:[#allocation3 + $0x38] sm:$0xff] %vm2809_vm5, %v9229_v30 }
  0xbe   : > { %2810 = vst.msk [vmem:[#allocation3] sm:$0xff] %vm2809_vm5, %v9229_v30  ;;  %2811 = vst.msk [vmem:[#allocation3 + $0x8] sm:$0xff] %vm2809_vm5, %v9229_v30 }
  0xbf   : > { %2814 = vst.msk [vmem:[#allocation3 + $0x18] sm:$0xff] %vm2809_vm5, %v9229_v30  ;;  %2815 = vst.msk [vmem:[#allocation3 + $0x20] sm:$0xff] %vm2809_vm5, %v9229_v30 }
  0xc0   : > { %5511 = vmatmul.mubr.msk.bf16.vlgmr.msra.gmra.mrb[0].mxu0 %vm310_vm1, %v6947_v28  ;;  %2820 = vst.msk [vmem:[#allocation3 + $0x48] sm:$0xff] %vm2809_vm5, %v9229_v30  ;;  %2821 = vst.msk [vmem:[#allocation3 + $0x50] sm:$0xff] %vm2809_vm5, %v9229_v30 }
  0xc1   : > { %5543 = vmatpush3.bf16.msra.mxu0 %v1883_v17  ;;  %5514 = vmatprep.mubr.msk.bf16.mxu0 %vm310_vm1, %v6964_v48  ;;  %2823 = vst.msk [vmem:[#allocation3 + $0x60] sm:$0xff] %vm2809_vm5, %v9229_v30  ;;  %2824 = vst.msk [vmem:[#allocation3 + $0x68] sm:$0xff] %vm2809_vm5, %v9229_v30 }
  0xc2   : > { %5980 = vmatprep.subr.msk.bf16.mxu0 %vm703_vm0, %v456_v44  ;;  %5413 = vmatmul.mubr.msk.bf16.gmra.mrb[4].mxu1 %vm310_vm1, %v7085_v31  ;;  %2826 = vst.msk [vmem:[#allocation3 + $0x78] sm:$0xff] %vm2809_vm5, %v9229_v30  ;;  %2827 = vst.msk [vmem:[#allocation3 + $0x80] sm:$0xff] %vm2809_vm5, %v9229_v30 }
  0xc3   : > { %5416 = vmatprep.mubr.msk.bf16.mxu1 %vm310_vm1, %v9216_v36  ;;  %2829 = vst.msk [vmem:[#allocation3 + $0x90] sm:$0xff] %vm2809_vm5, %v9229_v30  ;;  %2830 = vst.msk [vmem:[#allocation3 + $0x98] sm:$0xff] %vm2809_vm5, %v9229_v30 }
  0xc4   : > { %2832 = vst.msk [vmem:[#allocation3 + $0xa8] sm:$0xff] %vm2809_vm5, %v9229_v30  ;;  %2833 = vst.msk [vmem:[#allocation3 + $0xb0] sm:$0xff] %vm2809_vm5, %v9229_v30 }
  0xc5   : > { %2835 = vst.msk [vmem:[#allocation3 + $0xc0] sm:$0xff] %vm2809_vm5, %v9229_v30  ;;  %2836 = vst.msk [vmem:[#allocation3 + $0xc8] sm:$0xff] %vm2809_vm5, %v9229_v30 }
  0xc6   : > { %2838 = vst.msk [vmem:[#allocation3 + $0xd8] sm:$0xff] %vm2809_vm5, %v9229_v30  ;;  %2839 = vst.msk [vmem:[#allocation3 + $0xe0] sm:$0xff] %vm2809_vm5, %v9229_v30 }
  0xc7   : > { %2841 = vst.msk [vmem:[#allocation3 + $0xf0] sm:$0xff] %vm2809_vm5, %v9229_v30  ;;  %2842 = vst.msk [vmem:[#allocation3 + $0xf8] sm:$0xff] %vm2809_vm5, %v9229_v30 }
  0xc8   : > { %5515 = vmatmul.mubr.msk.bf16.gmra.mrb[4].mxu0 %vm310_vm1, %v6969_v56  ;;  %2844 = vst.msk [vmem:[#allocation3 + $0x108] sm:$0xff] %vm2809_vm5, %v9229_v30  ;;  %2845 = vst.msk [vmem:[#allocation3 + $0x110] sm:$0xff] %vm2809_vm5, %v9229_v30 }
  0xc9   : > { %5518 = vmatprep.mubr.msk.bf16.mxu0 %vm310_vm1, %v6974_v45  ;;  %2847 = vst.msk [vmem:[#allocation3 + $0x120] sm:$0xff] %vm2809_vm5, %v9229_v30  ;;  %2848 = vst.msk [vmem:[#allocation3 + $0x128] sm:$0xff] %vm2809_vm5, %v9229_v30 }
  0xca   : > { %5417 = vmatmul.mubr.msk.bf16.gmra.mrb[8].mxu1 %vm310_vm1, %v7096_v35  ;;  %2850 = vst.msk [vmem:[#allocation3 + $0x138] sm:$0xff] %vm2809_vm5, %v9229_v30  ;;  %2851 = vst.msk [vmem:[#allocation3 + $0x140] sm:$0xff] %vm2809_vm5, %v9229_v30 }
  0xcb   : > { %5420 = vmatprep.mubr.msk.bf16.mxu1 %vm310_vm1, %v9217_v51  ;;  %2853 = vst.msk [vmem:[#allocation3 + $0x150] sm:$0xff] %vm2809_vm5, %v9229_v30  ;;  %2854 = vst.msk [vmem:[#allocation3 + $0x158] sm:$0xff] %vm2809_vm5, %v9229_v30 }
  0xcc   : > { %2856 = vst.msk [vmem:[#allocation3 + $0x168] sm:$0xff] %vm2809_vm5, %v9229_v30  ;;  %2857 = vst.msk [vmem:[#allocation3 + $0x170] sm:$0xff] %vm2809_vm5, %v9229_v30 }
  0xcd   : > { %2859 = vst.msk [vmem:[#allocation3 + $0x180] sm:$0xff] %vm2809_vm5, %v9229_v30  ;;  %2860 = vst.msk [vmem:[#allocation3 + $0x188] sm:$0xff] %vm2809_vm5, %v9229_v30 }
  0xce   : > { %2862 = vst.msk [vmem:[#allocation3 + $0x198] sm:$0xff] %vm2809_vm5, %v9229_v30  ;;  %2863 = vst.msk [vmem:[#allocation3 + $0x1a0] sm:$0xff] %vm2809_vm5, %v9229_v30 }
  0xcf   : > { %2819 = vst.msk [vmem:[#allocation3 + $0x40] sm:$0x3] %vm2812_vm6, %v9229_v30  ;;  %2813 = vst.msk [vmem:[#allocation3 + $0x10] sm:$0x3] %vm2812_vm6, %v9229_v30 }
  0xd0   : > { %5519 = vmatmul.mubr.msk.bf16.gmra.mrb[8].mxu0 %vm310_vm1, %v6991_v19  ;;  %2816 = vst.msk [vmem:[#allocation3 + $0x28] sm:$0x3] %vm2812_vm6, %v9229_v30  ;;  %2822 = vst.msk [vmem:[#allocation3 + $0x58] sm:$0x3] %vm2812_vm6, %v9229_v30 }
  0xd1   : > { %5522 = vmatprep.mubr.msk.bf16.mxu0 %vm310_vm1, %v6996_v27  ;;  %2825 = vst.msk [vmem:[#allocation3 + $0x70] sm:$0x3] %vm2812_vm6, %v9229_v30  ;;  %2828 = vst.msk [vmem:[#allocation3 + $0x88] sm:$0x3] %vm2812_vm6, %v9229_v30 }
  0xd2   : > { %5421 = vmatmul.mubr.msk.bf16.gmra.mrb[12].mxu1 %vm310_vm1, %v7104_v47  ;;  %2831 = vst.msk [vmem:[#allocation3 + $0xa0] sm:$0x3] %vm2812_vm6, %v9229_v30  ;;  %2834 = vst.msk [vmem:[#allocation3 + $0xb8] sm:$0x3] %vm2812_vm6, %v9229_v30 }
  0xd3   : > { %5424 = vmatprep.mubr.msk.bf16.mxu1 %vm310_vm1, %v9218_v6  ;;  %2837 = vst.msk [vmem:[#allocation3 + $0xd0] sm:$0x3] %vm2812_vm6, %v9229_v30  ;;  %2840 = vst.msk [vmem:[#allocation3 + $0xe8] sm:$0x3] %vm2812_vm6, %v9229_v30 }
  0xd4   : > { %2843 = vst.msk [vmem:[#allocation3 + $0x100] sm:$0x3] %vm2812_vm6, %v9229_v30  ;;  %2846 = vst.msk [vmem:[#allocation3 + $0x118] sm:$0x3] %vm2812_vm6, %v9229_v30 }
  0xd5   : > { %2849 = vst.msk [vmem:[#allocation3 + $0x130] sm:$0x3] %vm2812_vm6, %v9229_v30  ;;  %2852 = vst.msk [vmem:[#allocation3 + $0x148] sm:$0x3] %vm2812_vm6, %v9229_v30 }
  0xd6   : > { %2855 = vst.msk [vmem:[#allocation3 + $0x160] sm:$0x3] %vm2812_vm6, %v9229_v30  ;;  %2858 = vst.msk [vmem:[#allocation3 + $0x178] sm:$0x3] %vm2812_vm6, %v9229_v30 }
  0xd7   : > { %2861 = vst.msk [vmem:[#allocation3 + $0x190] sm:$0x3] %vm2812_vm6, %v9229_v30  ;;  %2864 = vst.msk [vmem:[#allocation3 + $0x1a8] sm:$0x3] %vm2812_vm6, %v9229_v30 }
  0xd8   : > { %5523 = vmatmul.mubr.msk.bf16.gmra.mrb[12].mxu0 %vm310_vm1, %v7001_v58 }
  0xd9   : > { %5526 = vmatprep.mubr.msk.bf16.mxu0 %vm310_vm1, %v7010_v40 }
  0xda   : > { %5425 = vmatmul.mubr.msk.bf16.gmra.mrb[16].mxu1 %vm310_vm1, %v7112_v5 }
  0xdb   : > { %5428 = vmatprep.mubr.msk.bf16.mxu1 %vm310_vm1, %v9219_v22 }
  0xe0   : > { %5527 = vmatmul.mubr.msk.bf16.gmra.mrb[16].mxu0 %vm310_vm1, %v7015_v43 }
  0xe1   : > { %5530 = vmatprep.mubr.msk.bf16.mxu0 %vm310_vm1, %v7022_v25 }
  0xe2   : > { %5429 = vmatmul.mubr.msk.bf16.gmra.mrb[20].mxu1 %vm310_vm1, %v7120_v21 }
  0xe3   : > { %5432 = vmatprep.mubr.msk.bf16.mxu1 %vm310_vm1, %v6900_v39 }
  0xe8   : > { %5531 = vmatmul.mubr.msk.bf16.gmra.mrb[20].mxu0 %vm310_vm1, %v7036_v42 }
  0xe9   : > { %5534 = vmatprep.mubr.msk.bf16.mxu0 %vm310_vm1, %v7044_v63 }
  0xea   : > { %5433 = vmatmul.mubr.msk.bf16.gmra.mrb[24].mxu1 %vm310_vm1, %v7128_v32 }
  0xeb   : > { %5436 = vmatprep.mubr.msk.bf16.mxu1 %vm310_vm1, %v6910_v10 }
  0xf0   : > { %5535 = vmatmul.mubr.msk.bf16.gmra.mrb[24].mxu0 %vm310_vm1, %v7051_v46 }
  0xf1   : > { %5538 = vmatprep.mubr.msk.bf16.mxu0 %vm310_vm1, %v7069_v37 }
  0xf2   : > { %5437 = vmatmul.mubr.msk.bf16.gmra.mrb[28].mxu1 %vm310_vm1, %v7140_v55 }
  0xf8   : > { %5539 = vmatmul.mubr.msk.bf16.gmra.mrb[28].mxu0 %vm310_vm1, %v7237_v33 }
  0xf9   : > { %5544 = vmatprep.mubr.msk.bf16.mxu0 %vm310_vm1, %v9223_v2  ;;  %v6281_v2 = vld [vmem:[%s9091_s4] sm:$0xff]  }
 0x100   : > { %5545 = vmatmul.mubr.msk.bf16.vlgmr.msra.gmra.mrb[0].mxu0 %vm310_vm1, %v9224_v53 }
 0x101   : > { %5577 = vmatpush3.bf16.msra.mxu0 %v2083_v26  ;;  %5548 = vmatprep.mubr.msk.bf16.mxu0 %vm310_vm1, %v9225_v15  ;;  %v6286_v26 = vld [vmem:[%s9091_s4 + $0x58] sm:$0xff]  }
 0x102   : > { %5981 = vmatprep.subr.msk.bf16.mxu0 %vm703_vm0, %v2292_v49  ;;  %v6285_v49 = vld [vmem:[%s9091_s4 + $0x10] sm:$0xff]  }
 0x108   : > { %5549 = vmatmul.mubr.msk.bf16.gmra.mrb[4].mxu0 %vm310_vm1, %v9226_v16 }
 0x109   : > { %5552 = vmatprep.mubr.msk.bf16.mxu0 %vm310_vm1, %v9227_v61 }
 0x110   : > { %5553 = vmatmul.mubr.msk.bf16.gmra.mrb[8].mxu0 %vm310_vm1, %v9228_v52 }
 0x111   : > { %5556 = vmatprep.mubr.msk.bf16.mxu0 %vm310_vm1, %v6893_v12 }
 0x118   : > { %5557 = vmatmul.mubr.msk.bf16.gmra.mrb[12].mxu0 %vm310_vm1, %v6902_v7 }
 0x119   : > { %5560 = vmatprep.mubr.msk.bf16.mxu0 %vm310_vm1, %v6904_v62 }
 0x120   : > { %5561 = vmatmul.mubr.msk.bf16.gmra.mrb[16].mxu0 %vm310_vm1, %v6906_v1 }
 0x121   : > { %5564 = vmatprep.mubr.msk.bf16.mxu0 %vm310_vm1, %v6912_v54 }
 0x128   : > { %5565 = vmatmul.mubr.msk.bf16.gmra.mrb[20].mxu0 %vm310_vm1, %v6914_v34 }
 0x129   : > { %5568 = vmatprep.mubr.msk.bf16.mxu0 %vm310_vm1, %v7042_v4 }
 0x130   : > { %5569 = vmatmul.mubr.msk.bf16.gmra.mrb[24].mxu0 %vm310_vm1, %v7049_v3 }
 0x131   : > { %5572 = vmatprep.mubr.msk.bf16.mxu0 %vm310_vm1, %v7071_v13 }
 0x138   : > { %5573 = vmatmul.mubr.msk.bf16.gmra.mrb[28].mxu0 %vm310_vm1, %v7154_v38 }
 0x139   : > { %5578 = vmatprep.mubr.msk.bf16.mxu0 %vm310_vm1, %v9215_v41  ;;  %v451_v41 = vld [vmem:[#allocation2 + $0x1a0] sm:$0xff] }
 0x140   : > { %5579 = vmatmul.mubr.msk.bf16.vlgmr.msra.gmra.mrb[0].mxu0 %vm310_vm1, %v7085_v31  ;;  %v450_v31 = vld [vmem:[#allocation2 + $0x198] sm:$0xff] }
 0x141   : > { %5611 = vmatpush3.bf16.msra.mxu0 %v2297_v57  ;;  %5582 = vmatprep.mubr.msk.bf16.mxu0 %vm310_vm1, %v9216_v36  ;;  %v2493_v36 = vrot.slane %v451_v41, 2  ;;  %v6292_v57 = vld [vmem:[%s9091_s4 + $0x70] sm:$0xff]  }
 0x142   : > { %5982 = vmatprep.subr.msk.bf16.mxu0 %vm703_vm0, %v457_v29 }
 0x148   : > { %5583 = vmatmul.mubr.msk.bf16.gmra.mrb[4].mxu0 %vm310_vm1, %v7096_v35  ;;  %v2492_v35 = vrot.slane %v450_v31, 2 }
 0x149   : > { %5586 = vmatprep.mubr.msk.bf16.mxu0 %vm310_vm1, %v9217_v51 }
 0x14a   : > { %v7347_v51 = vsel %vm1080_vm3, %v2492_v35, %v2493_v36 }
 0x150   : > { %5587 = vmatmul.mubr.msk.bf16.gmra.mrb[8].mxu0 %vm310_vm1, %v7104_v47  ;;  %v452_v47 = vld [vmem:[#allocation2 + $0x1a8] sm:$0x3] }
 0x151   : > { %5590 = vmatprep.mubr.msk.bf16.mxu0 %vm310_vm1, %v9218_v6  ;;  %v2078_v6 = vpack.c.bf16 %v451_v41, %v450_v31 }
 0x158   : > { %5591 = vmatmul.mubr.msk.bf16.gmra.mrb[12].mxu0 %vm310_vm1, %v7112_v5 }
 0x159   : > { %5594 = vmatprep.mubr.msk.bf16.mxu0 %vm310_vm1, %v9219_v22 }
 0x160   : > { %5595 = vmatmul.mubr.msk.bf16.gmra.mrb[16].mxu0 %vm310_vm1, %v7120_v21  ;;  %v2504_v21 = vsel %vm703_vm0, %v457_v29, 0  ;;  %v6293_v29 = vld [vmem:[%s9091_s4 + $0x30] sm:$0xff]  }
 0x161   : > { %5598 = vmatprep.mubr.msk.bf16.mxu0 %vm310_vm1, %v6900_v39  ;;  %v2495_v39 = vrot.slane %v452_v47, 2 }
 0x163   : > { %v7350_v5 = vsel %vm1080_vm3, %v2493_v36, %v2495_v39 }
 0x168   : > { %5599 = vmatmul.mubr.msk.bf16.gmra.mrb[20].mxu0 %vm310_vm1, %v7128_v32 }
 0x169   : > { %5602 = vmatprep.mubr.msk.bf16.mxu0 %vm310_vm1, %v6910_v10  ;;  %v2499_v10 = vpack.c.bf16 %v7350_v5, %v7347_v51 }
 0x170   : > { %5603 = vmatmul.mubr.msk.bf16.gmra.mrb[24].mxu0 %vm310_vm1, %v7140_v55 }
 0x171   : > { %5606 = vmatprep.mubr.msk.bf16.mxu0 %vm310_vm1, %v7152_v50 }
 0x178   : > { %5607 = vmatmul.mubr.msk.bf16.gmra.mrb[28].mxu0 %vm310_vm1, %v2078_v6 }
 0x179   : > { %5612 = vmatprep.mubr.msk.bf16.mxu0 %vm310_vm1, %v6947_v28  ;;  %v2281_v28 = vrot.slane %v450_v31, 1 }
 0x180   : > { %5613 = vmatmul.mubr.msk.bf16.vlgmr.msra.gmra.mrb[0].mxu0 %vm310_vm1, %v6964_v48  ;;  %v2282_v48 = vrot.slane %v451_v41, 1  ;;  %v7637_v41 = vld [vmem:[%s9089_s2] ss:$0 sm:$0xff] }
 0x181   : > { %5645 = vmatpush3.bf16.msra.mxu0 %v2504_v21  ;;  %5616 = vmatprep.mubr.msk.bf16.mxu0 %vm310_vm1, %v6969_v56  ;;  %v2284_v56 = vrot.slane %v452_v47, 1  ;;  %v7643_v47 = vld [vmem:[%s9090_s3] ss:$0 sm:$0xff] }
 0x188   : > { %5617 = vmatmul.mubr.msk.bf16.gmra.mrb[4].mxu0 %vm310_vm1, %v6974_v45  ;;  %v2283_v45 = vsel %vm522_vm4, %v2281_v28, %v2282_v48 }
 0x189   : > { %5620 = vmatprep.mubr.msk.bf16.mxu0 %vm310_vm1, %v6991_v19  ;;  %v2285_v19 = vsel %vm522_vm4, %v2282_v48, %v2284_v56 }
 0x190   : > { %5621 = vmatmul.mubr.msk.bf16.gmra.mrb[8].mxu0 %vm310_vm1, %v6996_v27  ;;  %v2288_v27 = vpack.c.bf16 %v2285_v19, %v2283_v45 }
 0x191   : > { %5624 = vmatprep.mubr.msk.bf16.mxu0 %vm310_vm1, %v7001_v58  ;;  %v7401_v58 = vpop.f32.mrb[0].mxu1 }
 0x198   : > { %5625 = vmatmul.mubr.msk.bf16.gmra.mrb[12].mxu0 %vm310_vm1, %v7010_v40  ;;  %v7405_v40 = vpop.f32.mrb[1].mxu1 }
 0x199   : > { %5628 = vmatprep.mubr.msk.bf16.mxu0 %vm310_vm1, %v7015_v43  ;;  %v7407_v43 = vpop.f32.mrb[2].mxu1 }
 0x1a0   : > { %5629 = vmatmul.mubr.msk.bf16.gmra.mrb[16].mxu0 %vm310_vm1, %v7022_v25  ;;  %v7409_v25 = vpop.f32.mrb[3].mxu1 }
 0x1a1   : > { %5632 = vmatprep.mubr.msk.bf16.mxu0 %vm310_vm1, %v7036_v42  ;;  %v7413_v42 = vpop.f32.mrb[4].mxu1 }
 0x1a8   : > { %5633 = vmatmul.mubr.msk.bf16.gmra.mrb[20].mxu0 %vm310_vm1, %v7044_v63 }
 0x1a9   : > { %5636 = vmatprep.mubr.msk.bf16.mxu0 %vm310_vm1, %v7051_v46 }
 0x1b0   : > { %5637 = vmatmul.mubr.msk.bf16.gmra.mrb[24].mxu0 %vm310_vm1, %v7069_v37 }
 0x1b1   : > { %5640 = vmatprep.mubr.msk.bf16.mxu0 %vm310_vm1, %v7237_v33  ;;  %v6280_v33 = vld [vmem:[%s9091_s4 + $0x40] sm:$0xff]  }
 0x1b2   : > { %5128 = vmatprep.subr.bf16.mxu1 %v6280_v33  ;;  %v7656_v33 = vld [vmem:[#allocation3] sm:$0xff] }
 0x1b3   : > { %5129 = vmatpush3.bf16.msra.mxu1 %v6281_v2  ;;  %v7658_v2 = vld [vmem:[#allocation3 + $0x8] sm:$0xff] }
 0x1b4   : > { %5130 = vmatprep.subr.bf16.mxu1 %v6282_v8 }
 0x1b7   : > { %5131 = vmatpush3.bf16.msra.mxu1 %v6283_v18 }
 0x1b8   : > { %5641 = vmatmul.mubr.msk.bf16.gmra.mrb[28].mxu0 %vm310_vm1, %v2288_v27  ;;  %5132 = vmatprep.subr.bf16.mxu1 %v6284_v20  ;;  %v7662_v20 = vld [vmem:[#allocation3 + $0x10] sm:$0x3] }
 0x1b9   : > { %5646 = vmatprep.mubr.msk.bf16.mxu0 %vm310_vm1, %v9224_v53  ;;  %v6287_v53 = vld [vmem:[%s9091_s4 + $0x18] sm:$0xff]  }
 0x1bb   : > { %5133 = vmatpush3.bf16.msra.mxu1 %v6285_v49  ;;  %v6294_v49 = vld [vmem:[%s9091_s4 + $0x78] sm:$0xff]  }
 0x1bc   : > { %5134 = vmatprep.subr.bf16.mxu1 %v6286_v26  ;;  %v6295_v26 = vld [vmem:[%s9091_s4 + $0x38] sm:$0xff]  }
 0x1bf   : > { %5135 = vmatpush3.bf16.msra.mxu1 %v6287_v53 }
 0x1c0   : > { %5647 = vmatmul.mubr.msk.bf16.vlgmr.msra.gmra.mrb[0].mxu0 %vm310_vm1, %v9225_v15  ;;  %v6288_v15 = vld [vmem:[%s9091_s4 + $0x60] sm:$0xff]  }
 0x1c1   : > { %5650 = vmatprep.mubr.msk.bf16.mxu0 %vm310_vm1, %v9226_v16  ;;  %5136 = vmatprep.subr.bf16.mxu1 %v6288_v15  ;;  %v6289_v16 = vld [vmem:[%s9091_s4 + $0x20] sm:$0xff]  }
 0x1c3   : > { %5137 = vmatpush3.bf16.msra.mxu1 %v6289_v16 }
 0x1c8   : > { %5651 = vmatmul.mubr.msk.bf16.gmra.mrb[4].mxu0 %vm310_vm1, %v9227_v61  ;;  %v6290_v61 = vld [vmem:[%s9091_s4 + $0x68] sm:$0xff]  }
 0x1c9   : > { %5654 = vmatprep.mubr.msk.bf16.mxu0 %vm310_vm1, %v9228_v52  ;;  %v6291_v52 = vld [vmem:[%s9091_s4 + $0x28] sm:$0xff]   ;;  %5138 = vmatprep.subr.bf16.mxu1 %v6290_v61 }
 0x1ca   : > { %5139 = vmatpush3.bf16.msra.mxu1 %v6291_v52 }
 0x1cb   : > { %5140 = vmatprep.subr.bf16.mxu1 %v6292_v57  ;;  %v3000_v57 = vrot.slane %v7656_v33, 1 }
 0x1ce   : > { %5141 = vmatpush3.bf16.msra.mxu1 %v6293_v29 }
 0x1cf   : > { %5142 = vmatprep.subr.bf16.mxu1 %v6294_v49 }
 0x1d0   : > { %5655 = vmatmul.mubr.msk.bf16.gmra.mrb[8].mxu0 %vm310_vm1, %v6893_v12  ;;  %v7417_v12 = vpop.f32.mrb[5].mxu1 }
 0x1d1   : > { %5658 = vmatprep.mubr.msk.bf16.mxu0 %vm310_vm1, %v6902_v7  ;;  %v7419_v63 = vpop.f32.mrb[6].mxu1 }
 0x1d2   : > { %v7421_v46 = vpop.f32.mrb[7].mxu1  ;;  %5143 = vmatpush3.bf16.msra.mxu1 %v6295_v26 }
 0x1d3   : > { %v7425_v7 = vpop.f32.mrb[8].mxu1 }
 0x1d8   : > { %5659 = vmatmul.mubr.msk.bf16.gmra.mrb[12].mxu0 %vm310_vm1, %v6904_v62  ;;  %v7429_v62 = vpop.f32.mrb[9].mxu1 }
 0x1d9   : > { %5662 = vmatprep.mubr.msk.bf16.mxu0 %vm310_vm1, %v6906_v1  ;;  %v7431_v37 = vpop.f32.mrb[10].mxu1 }
 0x1da   : > { %v7433_v22 = vpop.f32.mrb[11].mxu1 }
 0x1db   : > { %v7437_v1 = vpop.f32.mrb[12].mxu1 }
 0x1e0   : > { %5663 = vmatmul.mubr.msk.bf16.gmra.mrb[16].mxu0 %vm310_vm1, %v6912_v54  ;;  %v7441_v54 = vpop.f32.mrb[13].mxu1 }
 0x1e1   : > { %5666 = vmatprep.mubr.msk.bf16.mxu0 %vm310_vm1, %v6914_v34  ;;  %v7443_v32 = vpop.f32.mrb[14].mxu1 }
 0x1e2   : > { %v7445_v55 = vpop.f32.mrb[15].mxu1 }
 0x1e3   : > { %v7449_v34 = vpop.f32.mrb[16].mxu1 }
 0x1e8   : > { %5667 = vmatmul.mubr.msk.bf16.gmra.mrb[20].mxu0 %vm310_vm1, %v7042_v4  ;;  %v7453_v4 = vpop.f32.mrb[17].mxu1 }
 0x1e9   : > { %5670 = vmatprep.mubr.msk.bf16.mxu0 %vm310_vm1, %v7049_v3  ;;  %v7455_v50 = vpop.f32.mrb[18].mxu1 }
 0x1ea   : > { %v7457_v24 = vpop.f32.mrb[19].mxu1 }
 0x1eb   : > { %v7460_v3 = vpop.f32.mrb[20].mxu1 }
 0x1ec   : > { %v7462_v23 = vpop.f32.mrb[21].mxu1 }
 0x1ed   : > { %v7464_v0 = vpop.f32.mrb[22].mxu1 }
 0x1f0   : > { %5671 = vmatmul.mubr.msk.bf16.gmra.mrb[24].mxu0 %vm310_vm1, %v7071_v13  ;;  %v7466_v13 = vpop.f32.mrb[23].mxu1 }
 0x1f1   : > { %5674 = vmatprep.mubr.msk.bf16.mxu0 %vm310_vm1, %v7154_v38  ;;  %v7468_v60 = vpop.f32.mrb[24].mxu1 }
 0x1f2   : > { %v7470_v17 = vpop.f32.mrb[25].mxu1 }
 0x1f3   : > { %v7472_v38 = vpop.f32.mrb[26].mxu1 }
 0x1f4   : > { %v7474_v44 = vpop.f32.mrb[27].mxu1 }
 0x1f5   : > { %v7476_v11 = vpop.f32.mrb[28].mxu1 }
 0x1f6   : > { %v7478_v59 = vpop.f32.mrb[29].mxu1 }
 0x1f7   : > { %v7480_v14 = vpop.f32.mrb[30].mxu1 }
 0x1f8   : > { %5675 = vmatmul.mubr.msk.bf16.gmra.mrb[28].mxu0 %vm310_vm1, %v2499_v10  ;;  %v7482_v9 = vpop.f32.mrb[31].mxu1 }
 0x293   : > { %v5648_v31 = vpop.f32.mrb[0].mxu0 }
 0x294   : > { %v5718_v35 = vadd.f32 %v5648_v31, %v7401_v58  ;;  %v2540_v36 = vpop.f32.mrb[1].mxu0 }
 0x295   : > { %v5719_v51 = vadd.f32 %v2540_v36, %v7405_v40  ;;  %v5649_v39 = vpop.f32.mrb[2].mxu0 }
 0x296   : > { %v2708_v5 = vmul.f32 %v5718_v35, %v7637_v41  ;;  %v5720_v6 = vadd.f32 %v5649_v39, %v7407_v43  ;;  %v2543_v10 = vpop.f32.mrb[3].mxu0  ;;  %v3001_v35 = vrot.slane %v7658_v2, 1 }
 0x297   : > { %v2706_v21 = vmul.f32 %v5719_v51, %v7637_v41  ;;  %v5721_v28 = vadd.f32 %v2543_v10, %v7409_v25 }
 0x298   : > { %v2747_v48 = vadd.f32 %v7643_v47, %v2708_v5  ;;  %v2709_v56 = vmul.f32 %v5720_v6, %v7637_v41 }
 0x299   : > { %v2745_v45 = vadd.f32 %v7643_v47, %v2706_v21  ;;  %v2707_v19 = vmul.f32 %v5721_v28, %v7637_v41 }
 0x29a   : > { %v2779_v27 = vmax.f32 %v2747_v48, 0.0  ;;  %v2748_v58 = vadd.f32 %v7643_v47, %v2709_v56  ;;  %v3002_v48 = vsel %vm522_vm4, %v3000_v57, %v3001_v35 }
 0x29b   : > { %v2777_v40 = vmax.f32 %v2745_v45, 0.0  ;;  %v2746_v30 = vadd.f32 %v7643_v47, %v2707_v19  ;;  %v5652_v43 = vpop.f32.mrb[4].mxu0 }
 0x29c   : > { %2868 = vst.msk [vmem:[#allocation3 + $0x31] sm:$0xff] %vm2809_vm5, %v2779_v27  ;;  %v2780_v25 = vmax.f32 %v2748_v58, 0.0  ;;  %v5722_v8 = vadd.f32 %v5652_v43, %v7413_v42  ;;  %v2556_v18 = vpop.f32.mrb[5].mxu0 }
 0x29d   : > { %2866 = vst.msk [vmem:[#allocation3 + $0x19] sm:$0xff] %vm2809_vm5, %v2777_v40  ;;  %v2778_v53 = vmax.f32 %v2746_v30, 0.0  ;;  %v5723_v15 = vadd.f32 %v2556_v18, %v7417_v12  ;;  %v5653_v16 = vpop.f32.mrb[6].mxu0  ;;  %v3003_v12 = vrot.slane %v7662_v20, 1  ;;  %v6296_v40 = vld [vmem:[%s9091_s4 + $0xc0] sm:$0xff]  }
 0x29e   : > { %2869 = vst.msk [vmem:[#allocation3 + $0x39] sm:$0xff] %vm2809_vm5, %v2780_v25  ;;  %v2712_v42 = vmul.f32 %v5722_v8, %v7637_v41  ;;  %v5724_v61 = vadd.f32 %v5653_v16, %v7419_v63  ;;  %v2559_v52 = vpop.f32.mrb[7].mxu0  ;;  %5240 = vmatprep.subr.bf16.mxu1 %v6296_v40 }
 0x29f   : > { %2867 = vst.msk [vmem:[#allocation3 + $0x21] sm:$0xff] %vm2809_vm5, %v2778_v53  ;;  %v2710_v29 = vmul.f32 %v5723_v15, %v7637_v41  ;;  %v5725_v31 = vadd.f32 %v2559_v52, %v7421_v46  ;;  %v3004_v56 = vsel %vm522_vm4, %v3001_v35, %v3003_v12 }
 0x2a0   : > { %v2751_v36 = vadd.f32 %v7643_v47, %v2712_v42  ;;  %v2713_v51 = vmul.f32 %v5724_v61, %v7637_v41  ;;  %v6031_v42 = vpack.i.bf16 %v3004_v56, %v3002_v48 }
 0x2a1   : > { %v2749_v63 = vadd.f32 %v7643_v47, %v2710_v29  ;;  %v2711_v39 = vmul.f32 %v5725_v31, %v7637_v41 }
 0x2a2   : > { %v2783_v5 = vmax.f32 %v2751_v36, 0.0  ;;  %v2752_v6 = vadd.f32 %v7643_v47, %v2713_v51 }
 0x2a3   : > { %v2781_v10 = vmax.f32 %v2749_v63, 0.0  ;;  %v2750_v21 = vadd.f32 %v7643_v47, %v2711_v39  ;;  %v5656_v46 = vpop.f32.mrb[8].mxu0  ;;  %v7687_v28 = vld [vmem:[#allocation3 + $0x30] sm:$0xff] }
 0x2a4   : > { %2872 = vst.msk [vmem:[#allocation3 + $0x61] sm:$0xff] %vm2809_vm5, %v2783_v5  ;;  %v2784_v45 = vmax.f32 %v2752_v6, 0.0  ;;  %v5726_v19 = vadd.f32 %v5656_v46, %v7425_v7  ;;  %v2572_v27 = vpop.f32.mrb[9].mxu0  ;;  %v7693_v58 = vld [vmem:[#allocation3 + $0x18] sm:$0xff]  ;;  %v3010_v49 = vrot.slane %v7687_v28, 1 }
 0x2a5   : > { %2870 = vst.msk [vmem:[#allocation3 + $0x49] sm:$0xff] %vm2809_vm5, %v2781_v10  ;;  %v2782_v30 = vmax.f32 %v2750_v21, 0.0  ;;  %v5727_v43 = vadd.f32 %v2572_v27, %v7429_v62  ;;  %v5657_v25 = vpop.f32.mrb[10].mxu0  ;;  %v7700_v8 = vld [vmem:[#allocation3 + $0x38] sm:$0xff]  ;;  %v3005_v18 = vrot.slane %v7693_v58, 1 }
 0x2a6   : > { %2873 = vst.msk [vmem:[#allocation3 + $0x69] sm:$0xff] %vm2809_vm5, %v2784_v45  ;;  %v2716_v7 = vmul.f32 %v5726_v19, %v7637_v41  ;;  %v5728_v26 = vadd.f32 %v5657_v25, %v7431_v37  ;;  %v2575_v53 = vpop.f32.mrb[11].mxu0  ;;  %v6036_v15 = vpack.i.bf16 %v7700_v8, %v7687_v28  ;;  %v7709_v16 = vld [vmem:[#allocation3 + $0x20] sm:$0xff]  ;;  %v7711_v62 = vld [vmem:[#allocation3 + $0x28] sm:$0x3]  ;;  %v3011_v36 = vrot.slane %v7700_v8, 1 }
 0x2a7   : > { %v7713_v61 = vld [vmem:[#allocation3 + $0x40] sm:$0x3]  ;;  %2871 = vst.msk [vmem:[#allocation3 + $0x51] sm:$0xff] %vm2809_vm5, %v2782_v30  ;;  %v2714_v52 = vmul.f32 %v5727_v43, %v7637_v41  ;;  %v5729_v57 = vadd.f32 %v2575_v53, %v7433_v22  ;;  %v6026_v37 = vpack.i.bf16 %v7709_v16, %v7693_v58  ;;  %v3006_v29 = vrot.slane %v7709_v16, 1 }
 0x2a8   : > { %v2755_v31 = vadd.f32 %v7643_v47, %v2716_v7  ;;  %v2717_v35 = vmul.f32 %v5728_v26, %v7637_v41  ;;  %6037 = vrot.lane.b32.xlu1 %v6036_v15, %s6388_s29  ;;  %v3008_v12 = vrot.slane %v7711_v62, 1  ;;  %v3013_v39 = vrot.slane %v7713_v61, 1 }
 0x2a9   : > { %v2753_v51 = vadd.f32 %v7643_v47, %v2714_v52  ;;  %v2715_v22 = vmul.f32 %v5729_v57, %v7637_v41  ;;  %6027 = vrot.lane.b32.xlu0 %v6026_v37, %s6388_s29  ;;  %v7730_v63 = vsel %vm522_vm4, %v3005_v18, %v3006_v29  ;;  %v7738_v21 = vsel %vm522_vm4, %v3010_v49, %v3011_v36 }
 0x2aa   : > { %9230 = vst [vmem:[#allocation15_spill] sm:$0xff] %v7730_v63  ;;  %v2787_v5 = vmax.f32 %v2755_v31, 0.0  ;;  %v2756_v6 = vadd.f32 %v7643_v47, %v2717_v35  ;;  %v7735_v10 = vsel %vm522_vm4, %v3006_v29, %v3008_v12  ;;  %9232 = vst [vmem:[#allocation17_spill] sm:$0xff] %v7738_v21  ;;  %v7744_v19 = vsel %vm522_vm4, %v3011_v36, %v3013_v39 }
 0x2ab   : > { %9231 = vst [vmem:[#allocation16_spill] sm:$0xff] %v7735_v10  ;;  %v2785_v46 = vmax.f32 %v2753_v51, 0.0  ;;  %v2754_v48 = vadd.f32 %v7643_v47, %v2715_v22  ;;  %v5660_v56 = vpop.f32.mrb[12].mxu0  ;;  %v6041_v45 = vpack.i.bf16 %v7735_v10, %v7730_v63  ;;  %9233 = vst [vmem:[#allocation22_spill] sm:$0xff] %v7744_v19  ;;  %v7746_v27 = vld [vmem:[#allocation3 + $0x60] sm:$0xff]  ;;  %v6051_v26 = vpack.i.bf16 %v7744_v19, %v7738_v21 }
 0x2ac   : > { %2876 = vst.msk [vmem:[#allocation3 + $0x91] sm:$0xff] %vm2809_vm5, %v2787_v5  ;;  %v2788_v40 = vmax.f32 %v2756_v6, 0.0  ;;  %v5730_v30 = vadd.f32 %v5660_v56, %v7437_v1  ;;  %v2588_v43 = vpop.f32.mrb[13].mxu0  ;;  %v7750_v25 = vld [vmem:[#allocation3 + $0x48] sm:$0xff]  ;;  %v3020_v1 = vrot.slane %v7746_v27, 1 }
 0x2ad   : > { %2874 = vst.msk [vmem:[#allocation3 + $0x79] sm:$0xff] %vm2809_vm5, %v2785_v46  ;;  %v2786_v18 = vmax.f32 %v2754_v48, 0.0  ;;  %v5731_v49 = vadd.f32 %v2588_v43, %v7441_v54  ;;  %6042 = vrot.lane.b32.xlu1 %v6041_v45, %s6388_s29  ;;  %v5661_v7 = vpop.f32.mrb[14].mxu0  ;;  %6032 = vrot.lane.b32.xlu0 %v6031_v42, %s6388_s29  ;;  %v7758_v53 = vld [vmem:[#allocation3 + $0x68] sm:$0xff]  ;;  %v7760_v15 = vld [vmem:[#allocation3 + $0x70] sm:$0x3] }
 0x2ae   : > { %2877 = vst.msk [vmem:[#allocation3 + $0x99] sm:$0xff] %vm2809_vm5, %v2788_v40  ;;  %v2720_v52 = vmul.f32 %v5730_v30, %v7637_v41  ;;  %v5732_v54 = vadd.f32 %v5661_v7, %v7443_v32  ;;  %v2591_v57 = vpop.f32.mrb[15].mxu0  ;;  %v7766_v37 = vld [vmem:[#allocation3 + $0x50] sm:$0xff]  ;;  %v7768_v29 = vld [vmem:[#allocation3 + $0x58] sm:$0x3]  ;;  %v3015_v42 = vrot.slane %v7750_v25, 1  ;;  %v6056_v5 = vpack.i.bf16 %v7758_v53, %v7746_v27 }
 0x2af   : > { %v3021_v31 = vrot.slane %v7758_v53, 1  ;;  %2875 = vst.msk [vmem:[#allocation3 + $0x81] sm:$0xff] %vm2809_vm5, %v2786_v18  ;;  %v2718_v35 = vmul.f32 %v5731_v49, %v7637_v41  ;;  %v5733_v12 = vadd.f32 %v2591_v57, %v7445_v55  ;;  %v6046_v36 = vpack.i.bf16 %v7766_v37, %v7750_v25 }
 0x2b0   : > { %v3016_v32 = vrot.slane %v7766_v37, 1  ;;  %v2759_v51 = vadd.f32 %v7643_v47, %v2720_v52  ;;  %v2721_v22 = vmul.f32 %v5732_v54, %v7637_v41  ;;  %v3018_v39 = vrot.slane %v7768_v29, 1 }
 0x2b1   : > { %v2757_v6 = vadd.f32 %v7643_v47, %v2718_v35  ;;  %v2719_v46 = vmul.f32 %v5733_v12, %v7637_v41  ;;  %6052 = vrot.lane.b32.xlu1 %v6051_v26, %s6388_s29  ;;  %6047 = vrot.lane.b32.xlu0 %v6046_v36, %s6388_s29  ;;  %v3023_v48 = vrot.slane %v7760_v15, 1  ;;  %v7796_v30 = vsel %vm522_vm4, %v3020_v1, %v3021_v31 }
 0x2b2   : > { %v7788_v55 = vsel %vm522_vm4, %v3015_v42, %v3016_v32  ;;  %v2791_v56 = vmax.f32 %v2759_v51, 0.0  ;;  %v2760_v45 = vadd.f32 %v7643_v47, %v2721_v22  ;;  %v7793_v40 = vsel %vm522_vm4, %v3016_v32, %v3018_v39  ;;  %9236 = vst [vmem:[#allocation11_spill] sm:$0xff] %v7796_v30 }
 0x2b3   : > { %9234 = vst [vmem:[#allocation25_spill] sm:$0xff] %v7788_v55  ;;  %9235 = vst [vmem:[#allocation27_spill] sm:$0xff] %v7793_v40  ;;  %v2789_v43 = vmax.f32 %v2757_v6, 0.0  ;;  %v2758_v18 = vadd.f32 %v7643_v47, %v2719_v46  ;;  %v5664_v49 = vpop.f32.mrb[16].mxu0  ;;  %v6061_v7 = vpack.i.bf16 %v7793_v40, %v7788_v55  ;;  %v7802_v26 = vsel %vm522_vm4, %v3021_v31, %v3023_v48  ;;  %v7804_v52 = vld [vmem:[#allocation3 + $0x90] sm:$0xff] }
 0x2b4   : > { %9237 = vst [vmem:[#allocation19_spill] sm:$0xff] %v7802_v26  ;;  %2880 = vst.msk [vmem:[#allocation3 + $0xc1] sm:$0xff] %vm2809_vm5, %v2791_v56  ;;  %v2792_v54 = vmax.f32 %v2760_v45, 0.0  ;;  %v5734_v57 = vadd.f32 %v5664_v49, %v7449_v34  ;;  %v2604_v42 = vpop.f32.mrb[17].mxu0  ;;  %v7808_v1 = vld [vmem:[#allocation3 + $0x78] sm:$0xff]  ;;  %v6071_v31 = vpack.i.bf16 %v7802_v26, %v7796_v30  ;;  %v3030_v34 = vrot.slane %v7804_v52, 1 }
 0x2b5   : > { %2878 = vst.msk [vmem:[#allocation3 + $0xa9] sm:$0xff] %vm2809_vm5, %v2789_v43  ;;  %v2790_v35 = vmax.f32 %v2758_v18, 0.0  ;;  %v5735_v12 = vadd.f32 %v2604_v42, %v7453_v4  ;;  %6062 = vrot.lane.b32.xlu1 %v6061_v7, %s6388_s29  ;;  %v5665_v36 = vpop.f32.mrb[18].mxu0  ;;  %6057 = vrot.lane.b32.xlu0 %v6056_v5, %s6388_s29  ;;  %v7816_v32 = vld [vmem:[#allocation3 + $0x98] sm:$0xff]  ;;  %v7818_v51 = vld [vmem:[#allocation3 + $0xa0] sm:$0x3] }
 0x2b6   : > { %9238 = vst [vmem:[#allocation21_spill] sm:$0xff] %v7816_v32  ;;  %2881 = vst.msk [vmem:[#allocation3 + $0xc9] sm:$0xff] %vm2809_vm5, %v2792_v54  ;;  %v2724_v22 = vmul.f32 %v5734_v57, %v7637_v41  ;;  %v5736_v4 = vadd.f32 %v5665_v36, %v7455_v50  ;;  %v2607_v39 = vpop.f32.mrb[19].mxu0  ;;  %v7824_v6 = vld [vmem:[#allocation3 + $0x80] sm:$0xff]  ;;  %v7826_v46 = vld [vmem:[#allocation3 + $0x88] sm:$0x3]  ;;  %v6076_v54 = vpack.i.bf16 %v7816_v32, %v7804_v52 }
 0x2b7   : > { %v3025_v5 = vrot.slane %v7808_v1, 1  ;;  %v3031_v48 = vrot.slane %v7816_v32, 1  ;;  %2879 = vst.msk [vmem:[#allocation3 + $0xb1] sm:$0xff] %vm2809_vm5, %v2790_v35  ;;  %v2722_v56 = vmul.f32 %v5735_v12, %v7637_v41  ;;  %v5737_v45 = vadd.f32 %v2607_v39, %v7457_v24 }
 0x2b8   : > { %v6066_v43 = vpack.i.bf16 %v7824_v6, %v7808_v1  ;;  %v3026_v50 = vrot.slane %v7824_v6, 1  ;;  %v2763_v18 = vadd.f32 %v7643_v47, %v2724_v22  ;;  %v2725_v49 = vmul.f32 %v5736_v4, %v7637_v41 }
 0x2b9   : > { %v3028_v7 = vrot.slane %v7826_v46, 1  ;;  %v2761_v57 = vadd.f32 %v7643_v47, %v2722_v56  ;;  %v2723_v42 = vmul.f32 %v5737_v45, %v7637_v41  ;;  %6072 = vrot.lane.b32.xlu1 %v6071_v31, %s6388_s29  ;;  %v3033_v35 = vrot.slane %v7818_v51, 1 }
 0x2ba   : > { %6067 = vrot.lane.b32.xlu0 %v6066_v43, %s6388_s29  ;;  %v7846_v24 = vsel %vm522_vm4, %v3025_v5, %v3026_v50  ;;  %v2795_v12 = vmax.f32 %v2763_v18, 0.0  ;;  %v2764_v36 = vadd.f32 %v7643_v47, %v2725_v49  ;;  %v7854_v4 = vsel %vm522_vm4, %v3030_v34, %v3031_v48 }
 0x2bb   : > { %9239 = vst [vmem:[#allocation23_spill] sm:$0xff] %v7846_v24  ;;  %v7851_v22 = vsel %vm522_vm4, %v3026_v50, %v3028_v7  ;;  %9241 = vst [vmem:[#allocation26_spill] sm:$0xff] %v7854_v4  ;;  %v2793_v39 = vmax.f32 %v2761_v57, 0.0  ;;  %v2762_v56 = vadd.f32 %v7643_v47, %v2723_v42  ;;  %v5668_v31 = vpop.f32.mrb[20].mxu0  ;;  %v7860_v5 = vsel %vm522_vm4, %v3031_v48, %v3033_v35  ;;  %v7862_v43 = vld [vmem:[#allocation3 + $0xc0] sm:$0xff] }
 0x2bc   : > { %9240 = vst [vmem:[#allocation24_spill] sm:$0xff] %v7851_v22  ;;  %v6081_v45 = vpack.i.bf16 %v7851_v22, %v7846_v24  ;;  %9242 = vst [vmem:[#allocation7_spill] sm:$0xff] %v7860_v5  ;;  %v2796_v18 = vmax.f32 %v2764_v36, 0.0  ;;  %v5738_v50 = vadd.f32 %v5668_v31, %v7460_v3  ;;  %v2620_v49 = vpop.f32.mrb[21].mxu0  ;;  %v7866_v34 = vld [vmem:[#allocation3 + $0xa8] sm:$0xff]  ;;  %v6091_v48 = vpack.i.bf16 %v7860_v5, %v7854_v4 }
 0x2bd   : > { %9243 = vst [vmem:[#allocation8_spill] sm:$0xff] %v7862_v43  ;;  %2884 = vst.msk [vmem:[#allocation3 + $0xf1] sm:$0xff] %vm2809_vm5, %v2795_v12  ;;  %v2794_v7 = vmax.f32 %v2762_v56, 0.0  ;;  %v5739_v57 = vadd.f32 %v2620_v49, %v7462_v23  ;;  %v5669_v42 = vpop.f32.mrb[22].mxu0  ;;  %v7874_v35 = vld [vmem:[#allocation3 + $0xc8] sm:$0xff]  ;;  %v3040_v3 = vrot.slane %v7862_v43, 1 }
 0x2be   : > { %2882 = vst.msk [vmem:[#allocation3 + $0xd9] sm:$0xff] %vm2809_vm5, %v2793_v39  ;;  %6082 = vrot.lane.b32.xlu1 %v6081_v45, %s6388_s29  ;;  %6077 = vrot.lane.b32.xlu0 %v6076_v54, %s6388_s29  ;;  %9244 = vst [vmem:[#allocation9_spill] sm:$0xff] %v7874_v35  ;;  %v7876_v12 = vld [vmem:[#allocation3 + $0xd0] sm:$0x3]  ;;  %v2728_v36 = vmul.f32 %v5738_v50, %v7637_v41  ;;  %v5740_v23 = vadd.f32 %v5669_v42, %v7464_v0  ;;  %v2623_v39 = vpop.f32.mrb[23].mxu0  ;;  %v3035_v54 = vrot.slane %v7866_v34, 1 }
 0x2bf   : > { %2885 = vst.msk [vmem:[#allocation3 + $0xf9] sm:$0xff] %vm2809_vm5, %v2796_v18  ;;  %v7882_v56 = vld [vmem:[#allocation3 + $0xb0] sm:$0xff]  ;;  %v7884_v31 = vld [vmem:[#allocation3 + $0xb8] sm:$0x3]  ;;  %v3041_v45 = vrot.slane %v7874_v35, 1  ;;  %2883 = vst.msk [vmem:[#allocation3 + $0xe1] sm:$0xff] %vm2809_vm5, %v2794_v7  ;;  %v2726_v49 = vmul.f32 %v5739_v57, %v7637_v41  ;;  %v5741_v5 = vadd.f32 %v2623_v39, %v7466_v13  ;;  %v6096_v22 = vpack.i.bf16 %v7874_v35, %v7862_v43 }
 0x2c0   : > { %9245 = vst [vmem:[#allocation10_spill] sm:$0xff] %v7882_v56  ;;  %v6086_v18 = vpack.i.bf16 %v7882_v56, %v7866_v34  ;;  %v3036_v0 = vrot.slane %v7882_v56, 1  ;;  %v2767_v50 = vadd.f32 %v7643_v47, %v2728_v36  ;;  %v2729_v42 = vmul.f32 %v5740_v23, %v7637_v41 }
 0x2c1   : > { %v3038_v4 = vrot.slane %v7884_v31, 1  ;;  %v2765_v7 = vadd.f32 %v7643_v47, %v2726_v49  ;;  %v2727_v57 = vmul.f32 %v5741_v5, %v7637_v41  ;;  %v3043_v36 = vrot.slane %v7876_v12, 1 }
 0x2c2   : > { %6092 = vrot.lane.b32.xlu1 %v6091_v48, %s6388_s29  ;;  %6087 = vrot.lane.b32.xlu0 %v6086_v18, %s6388_s29  ;;  %v7904_v13 = vsel %vm522_vm4, %v3035_v54, %v3036_v0  ;;  %v2799_v39 = vmax.f32 %v2767_v50, 0.0  ;;  %v2768_v23 = vadd.f32 %v7643_v47, %v2729_v42  ;;  %v7912_v26 = vsel %vm522_vm4, %v3040_v3, %v3041_v45 }
 0x2c3   : > { %9246 = vst [vmem:[#allocation12_spill] sm:$0xff] %v7904_v13  ;;  %v7909_v24 = vsel %vm522_vm4, %v3036_v0, %v3038_v4  ;;  %9248 = vst [vmem:[#allocation14_spill] sm:$0xff] %v7912_v26  ;;  %v2797_v49 = vmax.f32 %v2765_v7, 0.0  ;;  %v2766_v5 = vadd.f32 %v7643_v47, %v2727_v57  ;;  %v5672_v48 = vpop.f32.mrb[24].mxu0  ;;  %v7918_v54 = vsel %vm522_vm4, %v3041_v45, %v3043_v36 }
 0x2c4   : > { %9247 = vst [vmem:[#allocation13_spill] sm:$0xff] %v7909_v24  ;;  %v6101_v18 = vpack.i.bf16 %v7909_v24, %v7904_v13  ;;  %9249 = vst [vmem:[#allocation18_spill] sm:$0xff] %v7918_v54  ;;  %v7920_v30 = vld [vmem:[#allocation3 + $0xf0] sm:$0xff]  ;;  %v2800_v50 = vmax.f32 %v2768_v23, 0.0  ;;  %v5742_v4 = vadd.f32 %v5672_v48, %v7468_v60  ;;  %v2636_v0 = vpop.f32.mrb[25].mxu0  ;;  %v6111_v45 = vpack.i.bf16 %v7918_v54, %v7912_v26 }
 0x2c5   : > { %9250 = vst [vmem:[#allocation20_spill] sm:$0xff] %v7920_v30  ;;  %2888 = vst.msk [vmem:[#allocation3 + $0x121] sm:$0xff] %vm2809_vm5, %v2799_v39  ;;  %v7924_v3 = vld [vmem:[#allocation3 + $0xd8] sm:$0xff]  ;;  %v2798_v42 = vmax.f32 %v2766_v5, 0.0  ;;  %v5743_v7 = vadd.f32 %v2636_v0, %v7470_v17  ;;  %v5673_v57 = vpop.f32.mrb[26].mxu0  ;;  %v3050_v60 = vrot.slane %v7920_v30, 1 }
 0x2c6   : > { %2886 = vst.msk [vmem:[#allocation3 + $0x109] sm:$0xff] %vm2809_vm5, %v2797_v49  ;;  %6102 = vrot.lane.b32.xlu1 %v6101_v18, %s6388_s29  ;;  %6097 = vrot.lane.b32.xlu0 %v6096_v22, %s6388_s29  ;;  %v7932_v36 = vld [vmem:[#allocation3 + $0xf8] sm:$0xff]  ;;  %v7934_v39 = vld [vmem:[#allocation3 + $0x100] sm:$0x3]  ;;  %2889 = vst.msk [vmem:[#allocation3 + $0x129] sm:$0xff] %vm2809_vm5, %v2800_v50  ;;  %v2732_v23 = vmul.f32 %v5742_v4, %v7637_v41  ;;  %v5744_v17 = vadd.f32 %v5673_v57, %v7472_v38  ;;  %v2639_v49 = vpop.f32.mrb[27].mxu0 }
 0x2c7   : > { %9251 = vst [vmem:[#allocation28_spill] sm:$0xff] %v7932_v36  ;;  %v7940_v5 = vld [vmem:[#allocation3 + $0xe0] sm:$0xff]  ;;  %v7942_v48 = vld [vmem:[#allocation3 + $0xe8] sm:$0x3]  ;;  %v3045_v22 = vrot.slane %v7924_v3, 1  ;;  %v3051_v18 = vrot.slane %v7932_v36, 1  ;;  %v2730_v0 = vmul.f32 %v5743_v7, %v7637_v41  ;;  %v5745_v54 = vadd.f32 %v2639_v49, %v7474_v44 }
 0x2c8   : > { %9252 = vst [vmem:[#allocation29_spill] sm:$0xff] %v7940_v5  ;;  %2887 = vst.msk [vmem:[#allocation3 + $0x111] sm:$0xff] %vm2809_vm5, %v2798_v42  ;;  %v6106_v50 = vpack.i.bf16 %v7940_v5, %v7924_v3  ;;  %v3046_v38 = vrot.slane %v7940_v5, 1  ;;  %v2771_v4 = vadd.f32 %v7643_v47, %v2732_v23  ;;  %v2733_v57 = vmul.f32 %v5744_v17, %v7637_v41 }
 0x2c9   : > { %v3048_v26 = vrot.slane %v7942_v48, 1  ;;  %v6116_v24 = vpack.i.bf16 %v7932_v36, %v7920_v30  ;;  %v2769_v42 = vadd.f32 %v7643_v47, %v2730_v0  ;;  %v2731_v7 = vmul.f32 %v5745_v54, %v7637_v41 }
 0x2ca   : > { %6112 = vrot.lane.b32.xlu1 %v6111_v45, %s6388_s29  ;;  %6107 = vrot.lane.b32.xlu0 %v6106_v50, %s6388_s29  ;;  %v7962_v44 = vsel %vm522_vm4, %v3045_v22, %v3046_v38  ;;  %v3053_v23 = vrot.slane %v7934_v39, 1  ;;  %v2803_v49 = vmax.f32 %v2771_v4, 0.0  ;;  %v2772_v17 = vadd.f32 %v7643_v47, %v2733_v57 }
 0x2cb   : > { %9253 = vst [vmem:[#allocation30_spill] sm:$0xff] %v7962_v44  ;;  %v7967_v13 = vsel %vm522_vm4, %v3046_v38, %v3048_v26  ;;  %v7970_v40 = vsel %vm522_vm4, %v3050_v60, %v3051_v18  ;;  %v2801_v0 = vmax.f32 %v2769_v42, 0.0  ;;  %v2770_v54 = vadd.f32 %v7643_v47, %v2731_v7  ;;  %v5676_v45 = vpop.f32.mrb[28].mxu0 }
 0x2cc   : > { %9254 = vst [vmem:[#allocation31_spill] sm:$0xff] %v7967_v13  ;;  %9255 = vst [vmem:[#allocation32_spill] sm:$0xff] %v7970_v40  ;;  %v6121_v50 = vpack.i.bf16 %v7967_v13, %v7962_v44  ;;  %v7976_v22 = vsel %vm522_vm4, %v3051_v18, %v3053_v23  ;;  %v7978_v55 = vld [vmem:[#allocation3 + $0x120] sm:$0xff]  ;;  %v2804_v4 = vmax.f32 %v2772_v17, 0.0  ;;  %v5746_v26 = vadd.f32 %v5676_v45, %v7476_v11  ;;  %v2652_v38 = vpop.f32.mrb[29].mxu0 }
 0x2cd   : > { %9256 = vst [vmem:[#allocation33_spill] sm:$0xff] %v7976_v22  ;;  %2892 = vst.msk [vmem:[#allocation3 + $0x151] sm:$0xff] %vm2809_vm5, %v2803_v49  ;;  %v7982_v60 = vld [vmem:[#allocation3 + $0x108] sm:$0xff]  ;;  %v2802_v57 = vmax.f32 %v2770_v54, 0.0  ;;  %v5747_v42 = vadd.f32 %v2652_v38, %v7478_v59  ;;  %v5677_v7 = vpop.f32.mrb[30].mxu0  ;;  %v6131_v18 = vpack.i.bf16 %v7976_v22, %v7970_v40  ;;  %v3060_v11 = vrot.slane %v7978_v55, 1 }
 0x2ce   : > { %2890 = vst.msk [vmem:[#allocation3 + $0x139] sm:$0xff] %vm2809_vm5, %v2801_v0  ;;  %6122 = vrot.lane.b32.xlu1 %v6121_v50, %s6388_s29  ;;  %6117 = vrot.lane.b32.xlu0 %v6116_v24, %s6388_s29  ;;  %v7990_v23 = vld [vmem:[#allocation3 + $0x128] sm:$0xff]  ;;  %v7992_v49 = vld [vmem:[#allocation3 + $0x130] sm:$0x3]  ;;  %2893 = vst.msk [vmem:[#allocation3 + $0x159] sm:$0xff] %vm2809_vm5, %v2804_v4  ;;  %v2736_v17 = vmul.f32 %v5746_v26, %v7637_v41  ;;  %v5748_v59 = vadd.f32 %v5677_v7, %v7480_v14  ;;  %v2655_v0 = vpop.f32.mrb[31].mxu0 }
 0x2cf   : > { %9257 = vst [vmem:[#allocation34_spill] sm:$0xff] %v7990_v23  ;;  %v7998_v54 = vld [vmem:[#allocation3 + $0x110] sm:$0xff]  ;;  %v8000_v45 = vld [vmem:[#allocation3 + $0x118] sm:$0x3]  ;;  %v3055_v24 = vrot.slane %v7982_v60, 1  ;;  %v3061_v50 = vrot.slane %v7990_v23, 1  ;;  %v2734_v38 = vmul.f32 %v5747_v42, %v7637_v41  ;;  %v5749_v22 = vadd.f32 %v2655_v0, %v7482_v9 }
 0x2d0   : > { %2891 = vst.msk [vmem:[#allocation3 + $0x141] sm:$0xff] %vm2809_vm5, %v2802_v57  ;;  %v6126_v4 = vpack.i.bf16 %v7998_v54, %v7982_v60  ;;  %v3056_v14 = vrot.slane %v7998_v54, 1  ;;  %v2775_v26 = vadd.f32 %v7643_v47, %v2736_v17  ;;  %v2737_v7 = vmul.f32 %v5748_v59, %v7637_v41 }
 0x2d1   : > { %v3058_v40 = vrot.slane %v8000_v45, 1  ;;  %v6136_v13 = vpack.i.bf16 %v7990_v23, %v7978_v55  ;;  %v2773_v57 = vadd.f32 %v7643_v47, %v2734_v38  ;;  %v2735_v42 = vmul.f32 %v5749_v22, %v7637_v41 }
 0x2d2   : > { %6132 = vrot.lane.b32.xlu1 %v6131_v18, %s6388_s29  ;;  %6127 = vrot.lane.b32.xlu0 %v6126_v4, %s6388_s29  ;;  %v8020_v9 = vsel %vm522_vm4, %v3055_v24, %v3056_v14  ;;  %v3063_v17 = vrot.slane %v7992_v49, 1  ;;  %v2807_v0 = vmax.f32 %v2775_v26, 0.0  ;;  %v2776_v59 = vadd.f32 %v7643_v47, %v2737_v7 }
 0x2d3   : > { %9258 = vst [vmem:[#allocation35_spill] sm:$0xff] %v8020_v9  ;;  %v8025_v44 = vsel %vm522_vm4, %v3056_v14, %v3058_v40  ;;  %v8028_v19 = vsel %vm522_vm4, %v3060_v11, %v3061_v50  ;;  %v2805_v38 = vmax.f32 %v2773_v57, 0.0  ;;  %v2774_v41 = vadd.f32 %v7643_v47, %v2735_v42 }
 0x2d4   : > { %9259 = vst [vmem:[#allocation36_spill] sm:$0xff] %v8025_v44  ;;  %9260 = vst [vmem:[#allocation37_spill] sm:$0xff] %v8028_v19  ;;  %v6141_v22 = vpack.i.bf16 %v8025_v44, %v8020_v9  ;;  %v8034_v18 = vsel %vm522_vm4, %v3061_v50, %v3063_v17  ;;  %v2808_v24 = vmax.f32 %v2776_v59, 0.0  ;;  %v8054_v57 = vld [vmem:[#allocation3 + $0x150] sm:$0xff]  ;;  %v3108_v63 = vrot.slane %v7826_v46, 2 }
 0x2d5   : > { %9261 = vst [vmem:[#allocation38_spill] sm:$0xff] %v8034_v18  ;;  %2896 = vst.msk [vmem:[#allocation3 + $0x181] sm:$0xff] %vm2809_vm5, %v2807_v0  ;;  %v8037_v4 = vld [vmem:[#allocation3 + $0x138] sm:$0xff]  ;;  %v2806_v40 = vmax.f32 %v2774_v41, 0.0  ;;  %v8044_v47 = vld [vmem:[#allocation3 + $0x160] sm:$0x3]  ;;  %v6151_v50 = vpack.i.bf16 %v8034_v18, %v8028_v19 }
 0x2d6   : > { %2894 = vst.msk [vmem:[#allocation3 + $0x169] sm:$0xff] %vm2809_vm5, %v2805_v38  ;;  %6142 = vrot.lane.b32.xlu1 %v6141_v22, %s6388_s29  ;;  %6137 = vrot.lane.b32.xlu0 %v6136_v13, %s6388_s29  ;;  %v8042_v11 = vld [vmem:[#allocation3 + $0x158] sm:$0xff]  ;;  %2897 = vst.msk [vmem:[#allocation3 + $0x189] sm:$0xff] %vm2809_vm5, %v2808_v24  ;;  %v3065_v7 = vrot.slane %v8037_v4, 1  ;;  %v3073_v59 = vrot.slane %v8044_v47, 1  ;;  %v3070_v22 = vrot.slane %v8054_v57, 1 }
 0x2d7   : > { %9262 = vst [vmem:[#allocation39_spill] sm:$0xff] %v8042_v11  ;;  %v8049_v14 = vld [vmem:[#allocation3 + $0x140] sm:$0xff]  ;;  %v8051_v26 = vld [vmem:[#allocation3 + $0x148] sm:$0x3]  ;;  %9263 = vst [vmem:[#allocation40_spill] sm:$0xff] %v8054_v57  ;;  %v3071_v42 = vrot.slane %v8042_v11, 1 }
 0x2d8   : > { %2895 = vst.msk [vmem:[#allocation3 + $0x171] sm:$0xff] %vm2809_vm5, %v2806_v40  ;;  %v6146_v13 = vpack.i.bf16 %v8049_v14, %v8037_v4  ;;  %v3066_v17 = vrot.slane %v8049_v14, 1  ;;  %v3068_v0 = vrot.slane %v8051_v26, 1  ;;  %v6156_v40 = vpack.i.bf16 %v8042_v11, %v8054_v57 }
 0x2d9   : > { %v8077_v18 = vsel %vm522_vm4, %v3070_v22, %v3071_v42  ;;  %v3090_v22 = vrot.slane %v7687_v28, 2  ;;  %v3121_v10 = vrot.slane %v7874_v35, 2 }
 0x2da   : > { %6152 = vrot.lane.b32.xlu1 %v6151_v50, %s6388_s29  ;;  %6147 = vrot.lane.b32.xlu0 %v6146_v13, %s6388_s29  ;;  %v8066_v38 = vsel %vm522_vm4, %v3065_v7, %v3066_v17  ;;  %v8069_v41 = vsel %vm522_vm4, %v3066_v17, %v3068_v0  ;;  %9266 = vst [vmem:[#allocation43_spill] sm:$0xff] %v8077_v18  ;;  %v3091_v7 = vrot.slane %v7700_v8, 2  ;;  %v3093_v17 = vrot.slane %v7713_v61, 2 }
 0x2db   : > { %9264 = vst [vmem:[#allocation41_spill] sm:$0xff] %v8066_v38  ;;  %9265 = vst [vmem:[#allocation42_spill] sm:$0xff] %v8069_v41  ;;  %v6161_v24 = vpack.i.bf16 %v8069_v41, %v8066_v38  ;;  %v8080_v50 = vsel %vm522_vm4, %v3071_v42, %v3073_v59  ;;  %v3086_v0 = vrot.slane %v7709_v16, 2  ;;  %v3088_v41 = vrot.slane %v7711_v62, 2 }
 0x2dc   : > { %9267 = vst [vmem:[#allocation44_spill] sm:$0xff] %v8080_v50  ;;  %v6171_v42 = vpack.i.bf16 %v8080_v50, %v8077_v18  ;;  %v3085_v38 = vrot.slane %v7693_v58, 2  ;;  %v8106_v28 = vsel %vm1080_vm3, %v3090_v22, %v3091_v7  ;;  %v8109_v50 = vsel %vm1080_vm3, %v3091_v7, %v3093_v17  ;;  %v8127_v17 = vld [vmem:[#allocation3 + $0x180] sm:$0xff] }
 0x2dd   : > { %v8083_v13 = vld [vmem:[#allocation3 + $0x168] sm:$0xff]  ;;  %v8123_v21 = vsel %vm1080_vm3, %v3086_v0, %v3088_v41  ;;  %v3103_v22 = vrot.slane %v7760_v15, 2  ;;  %v3095_v41 = vrot.slane %v7750_v25, 2 }
 0x2de   : > { %6162 = vrot.lane.b32.xlu1 %v6161_v24, %s6388_s29  ;;  %6157 = vrot.lane.b32.xlu0 %v6156_v40, %s6388_s29  ;;  %v3075_v24 = vrot.slane %v8083_v13, 1  ;;  %v8103_v19 = vld [vmem:[#allocation3 + $0x188] sm:$0xff]  ;;  %v8112_v18 = vsel %vm1080_vm3, %v3085_v38, %v3086_v0  ;;  %v3101_v38 = vrot.slane %v7758_v53, 2  ;;  %v6191_v0 = vpack.i.bf16 %v8109_v50, %v8106_v28 }
 0x2df   : > { %v8093_v59 = vld [vmem:[#allocation3 + $0x170] sm:$0xff]  ;;  %v8095_v8 = vld [vmem:[#allocation3 + $0x178] sm:$0x3]  ;;  %v6186_v15 = vpack.i.bf16 %v8123_v21, %v8112_v18 }
 0x2e0   : > { %v6166_v61 = vpack.i.bf16 %v8093_v59, %v8083_v13  ;;  %v3076_v40 = vrot.slane %v8093_v59, 1  ;;  %v3078_v62 = vrot.slane %v8095_v8, 1 }
 0x2e2   : > { %6172 = vrot.lane.b32.xlu1 %v6171_v42, %s6388_s29  ;;  %6167 = vrot.lane.b32.xlu0 %v6166_v61, %s6388_s29  ;;  %v8117_v44 = vsel %vm522_vm4, %v3075_v24, %v3076_v40  ;;  %v8120_v9 = vsel %vm522_vm4, %v3076_v40, %v3078_v62  ;;  %v3096_v42 = vrot.slane %v7766_v37, 2  ;;  %v6176_v61 = vpack.i.bf16 %v8103_v19, %v8127_v17 }
 0x2e3   : > { %9268 = vst [vmem:[#allocation45_spill] sm:$0xff] %v8117_v44  ;;  %9269 = vst [vmem:[#allocation46_spill] sm:$0xff] %v8120_v9  ;;  %v6181_v7 = vpack.i.bf16 %v8120_v9, %v8117_v44  ;;  %v3098_v24 = vrot.slane %v7768_v29, 2  ;;  %v3100_v40 = vrot.slane %v7746_v27, 2  ;;  %v8147_v9 = vsel %vm1080_vm3, %v3101_v38, %v3103_v22 }
 0x2e4   : > { %v8150_v27 = vsel %vm1080_vm3, %v3095_v41, %v3096_v42  ;;  %v3111_v29 = vrot.slane %v7816_v32, 2  ;;  %v3106_v44 = vrot.slane %v7824_v6, 2  ;;  %v3105_v22 = vrot.slane %v7808_v1, 2 }
 0x2e5   : > { %v8144_v62 = vsel %vm1080_vm3, %v3100_v40, %v3101_v38  ;;  %v3110_v40 = vrot.slane %v7804_v52, 2  ;;  %v3123_v38 = vrot.slane %v7876_v12, 2  ;;  %v3120_v12 = vrot.slane %v7862_v43, 2 }
 0x2e6   : > { %6182 = vrot.lane.b32.xlu1 %v6181_v7, %s6388_s29  ;;  %6177 = vrot.lane.b32.xlu0 %v6176_v61, %s6388_s29  ;;  %v8154_v7 = vsel %vm1080_vm3, %v3096_v42, %v3098_v24  ;;  %v3113_v61 = vrot.slane %v7818_v51, 2  ;;  %v3116_v42 = vrot.slane %v7882_v56, 2  ;;  %v3118_v51 = vrot.slane %v7884_v31, 2 }
 0x2e7   : > { %v6201_v24 = vpack.i.bf16 %v8147_v9, %v8144_v62  ;;  %v6196_v46 = vpack.i.bf16 %v8154_v7, %v8150_v27  ;;  %v8172_v41 = vsel %vm1080_vm3, %v3110_v40, %v3111_v29  ;;  %v8182_v35 = vsel %vm1080_vm3, %v3106_v44, %v3108_v63  ;;  %v8201_v40 = vld [vmem:[#allocation3 + $0x190] sm:$0x3] }
 0x2e8   : > { %v3115_v31 = vrot.slane %v7866_v34, 2  ;;  %v8186_v56 = vsel %vm1080_vm3, %v3120_v12, %v3121_v10  ;;  %v8189_v32 = vsel %vm1080_vm3, %v3121_v10, %v3123_v38  ;;  %v3131_v63 = vrot.slane %v7932_v36, 2 }
 0x2e9   : > { %9270 = vst [vmem:[#allocation47_spill] sm:$0xff] %v8186_v56  ;;  %9271 = vst [vmem:[#allocation48_spill] sm:$0xff] %v8189_v32  ;;  %v3141_v43 = vrot.slane %v7990_v23, 2  ;;  %v3148_v23 = vrot.slane %v8051_v26, 2 }
 0x2ea   : > { %6192 = vrot.lane.b32.xlu1 %v6191_v0, %s6388_s29  ;;  %6187 = vrot.lane.b32.xlu0 %v6186_v15, %s6388_s29  ;;  %v8176_v0 = vsel %vm1080_vm3, %v3111_v29, %v3113_v61  ;;  %v8179_v15 = vsel %vm1080_vm3, %v3105_v22, %v3106_v44  ;;  %v8194_v29 = vsel %vm1080_vm3, %v3115_v31, %v3116_v42  ;;  %v3133_v44 = vrot.slane %v7934_v39, 2 }
 0x2eb   : > { %v8197_v61 = vsel %vm1080_vm3, %v3116_v42, %v3118_v51  ;;  %v6211_v10 = vpack.i.bf16 %v8176_v0, %v8172_v41  ;;  %v6206_v38 = vpack.i.bf16 %v8182_v35, %v8179_v15  ;;  %v3130_v22 = vrot.slane %v7920_v30, 2 }
 0x2ec   : > { %v3232_v42 = vrot.slane %v8127_v17, 2  ;;  %v3233_v51 = vrot.slane %v8103_v19, 2  ;;  %v6221_v39 = vpack.i.bf16 %v8189_v32, %v8186_v56  ;;  %v6216_v12 = vpack.i.bf16 %v8197_v61, %v8194_v29 }
 0x2ed   : > { %v3235_v31 = vrot.slane %v8201_v40, 2  ;;  %v8220_v36 = vsel %vm1080_vm3, %v3130_v22, %v3131_v63  ;;  %v3125_v30 = vrot.slane %v7924_v3, 2  ;;  %v3143_v32 = vrot.slane %v7992_v49, 2 }
 0x2ee   : > { %6202 = vrot.lane.b32.xlu1 %v6201_v24, %s6388_s29  ;;  %6197 = vrot.lane.b32.xlu0 %v6196_v46, %s6388_s29  ;;  %v3126_v24 = vrot.slane %v7940_v5, 2  ;;  %v3128_v46 = vrot.slane %v7942_v48, 2  ;;  %v8223_v48 = vsel %vm1080_vm3, %v3131_v63, %v3133_v44  ;;  %v8227_v5 = vsel %vm1080_vm3, %v3232_v42, %v3233_v51 }
 0x2ef   : > { %9272 = vst [vmem:[#allocation49_spill] sm:$0xff] %v8227_v5  ;;  %v3136_v56 = vrot.slane %v7998_v54, 2  ;;  %v3138_v44 = vrot.slane %v8000_v45, 2  ;;  %v3140_v42 = vrot.slane %v7978_v55, 2  ;;  %v3135_v49 = vrot.slane %v7982_v60, 2 }
 0x2f0   : > { %v8239_v63 = vsel %vm1080_vm3, %v3126_v24, %v3128_v46  ;;  %v8256_v45 = vsel %vm1080_vm3, %v3141_v43, %v3143_v32  ;;  %v3146_v22 = vrot.slane %v8049_v14, 2  ;;  %v3150_v32 = vrot.slane %v8054_v57, 2 }
 0x2f1   : > { %v8253_v46 = vsel %vm1080_vm3, %v3140_v42, %v3141_v43  ;;  %v3145_v43 = vrot.slane %v8037_v4, 2  ;;  %v3198_v57 = vrot.slane %v8201_v40, 1 }
 0x2f2   : > { %6212 = vrot.lane.b32.xlu1 %v6211_v10, %s6388_s29  ;;  %6207 = vrot.lane.b32.xlu0 %v6206_v38, %s6388_s29  ;;  %v8233_v10 = vsel %vm1080_vm3, %v3233_v51, %v3235_v31  ;;  %v8236_v38 = vsel %vm1080_vm3, %v3125_v30, %v3126_v24  ;;  %v6231_v30 = vpack.i.bf16 %v8223_v48, %v8220_v36 }
 0x2f3   : > { %9273 = vst [vmem:[#allocation50_spill] sm:$0xff] %v8233_v10  ;;  %v6226_v24 = vpack.i.bf16 %v8239_v63, %v8236_v38  ;;  %v8259_v51 = vsel %vm1080_vm3, %v3135_v49, %v3136_v56  ;;  %v8262_v31 = vsel %vm1080_vm3, %v3136_v56, %v3138_v44  ;;  %v6241_v56 = vpack.i.bf16 %v8256_v45, %v8253_v46 }
 0x2f4   : > { %v6236_v44 = vpack.i.bf16 %v8262_v31, %v8259_v51  ;;  %v8283_v26 = vsel %vm1080_vm3, %v3145_v43, %v3146_v22  ;;  %v3156_v49 = vrot.slane %v8093_v59, 2 }
 0x2f6   : > { %6222 = vrot.lane.b32.xlu1 %v6221_v39, %s6388_s29  ;;  %6217 = vrot.lane.b32.xlu0 %v6216_v12, %s6388_s29  ;;  %v3151_v39 = vrot.slane %v8042_v11, 2  ;;  %v3153_v12 = vrot.slane %v8044_v47, 2  ;;  %v3196_v11 = vrot.slane %v8103_v19, 1 }
 0x2f8   : > { %v8277_v47 = vsel %vm1080_vm3, %v3150_v32, %v3151_v39  ;;  %v8280_v42 = vsel %vm1080_vm3, %v3151_v39, %v3153_v12  ;;  %v3155_v39 = vrot.slane %v8083_v13, 2  ;;  %v3195_v12 = vrot.slane %v8127_v17, 1 }
 0x2f9   : > { %v6251_v32 = vpack.i.bf16 %v8280_v42, %v8277_v47 }
 0x2fa   : > { %6232 = vrot.lane.b32.xlu1 %v6231_v30, %s6388_s29  ;;  %6227 = vrot.lane.b32.xlu0 %v6226_v24, %s6388_s29  ;;  %v8287_v30 = vsel %vm1080_vm3, %v3146_v22, %v3148_v23  ;;  %v3158_v24 = vrot.slane %v8095_v8, 2  ;;  %v8301_v8 = vsel %vm1080_vm3, %v3155_v39, %v3156_v49  ;;  %v8307_v40 = vsel %vm522_vm4, %v3195_v12, %v3196_v11 }
 0x2fb   : > { %v6246_v23 = vpack.i.bf16 %v8287_v30, %v8283_v26  ;;  %9274 = vst [vmem:[#allocation51_spill] sm:$0xff] %v8307_v40  ;;  %v8310_v22 = vsel %vm522_vm4, %v3196_v11, %v3198_v57  ;;  %v3083_v11 = vrot.slane %v7662_v20, 2  ;;  %v3080_v57 = vrot.slane %v7656_v33, 2  ;;  %v8332_v20 = vld [vmem:[#allocation3 + $0x1a0] sm:$0xff] }
 0x2fc   : > { %v8304_v19 = vsel %vm1080_vm3, %v3156_v49, %v3158_v24  ;;  %9275 = vst [vmem:[#allocation52_spill] sm:$0xff] %v8310_v22  ;;  %v6256_v43 = vpack.i.bf16 %v8310_v22, %v8307_v40  ;;  %9277 = vst [vmem:[#allocation54_spill] sm:$0xff] %v8332_v20  ;;  %v8334_v22 = vld [vmem:[#allocation3 + $0x1a8] sm:$0x3] }
 0x2fd   : > { %v6261_v17 = vpack.i.bf16 %v8304_v19, %v8301_v8  ;;  %9278 = vst [vmem:[#allocation55_spill] sm:$0xff] %v8334_v22 }
 0x2fe   : > { %6242 = vrot.lane.b32.xlu1 %v6241_v56, %s6388_s29  ;;  %6237 = vrot.lane.b32.xlu0 %v6236_v44, %s6388_s29  ;;  %v6271_v56 = vpack.i.bf16 %v8233_v10, %v8227_v5  ;;  %v3081_v44 = vrot.slane %v7658_v2, 2  ;;  %v8330_v10 = vld [vmem:[#allocation3 + $0x198] sm:$0xff] }
 0x2ff   : > { %9276 = vst [vmem:[#allocation53_spill] sm:$0xff] %v8330_v10 }
 0x300   : > { %v3082_v39 = vsel %vm1080_vm3, %v3080_v57, %v3081_v44  ;;  %v3084_v12 = vsel %vm1080_vm3, %v3081_v44, %v3083_v11  ;;  %v3240_v57 = vrot.slane %v8330_v10, 1  ;;  %v3241_v11 = vrot.slane %v8332_v20, 1 }
 0x302   : > { %6252 = vrot.lane.b32.xlu1 %v6251_v32, %s6388_s29  ;;  %6247 = vrot.lane.b32.xlu0 %v6246_v23, %s6388_s29 }
 0x306   : > { %6262 = vrot.lane.b32.xlu1 %v6261_v17, %s6388_s29  ;;  %6257 = vrot.lane.b32.xlu0 %v6256_v43, %s6388_s29 }
 0x30a   : > { %6272 = vrot.lane.b32.xlu1 %v6271_v56, %s6388_s29 }
 0x31a   : > { %v6038_v49 = vpop.permute.xlu1 %6037 }
 0x31b   : > { %v6028_v24 = vpop.permute.xlu0 %6027  ;;  %v6040_v17 = vunpack.i.h.bf16 %v6038_v49  ;;  %v6039_v43 = vunpack.i.l.bf16 %v6038_v49 }
 0x31c   : > { %v6030_v32 = vunpack.i.h.bf16 %v6028_v24  ;;  %v6029_v23 = vunpack.i.l.bf16 %v6028_v24 }
 0x31d   : > { %v3588_v49 = vsel %vm2809_vm5, %v8112_v18, %v6039_v43 }
 0x31e   : > { %v3586_v5 = vsel %vm2809_vm5, %v3082_v39, %v6029_v23  ;;  %v3587_v56 = vsel %vm2809_vm5, %v3084_v12, %v6030_v32  ;;  %v3589_v39 = vsel %vm2809_vm5, %v8123_v21, %v6040_v17  ;;  %v3243_v12 = vrot.slane %v8334_v22, 1  ;;  %v6316_v32 = vld [vmem:[#allocation3 + $0x8] sm:$0xff]  ;;  %v6317_v23 = vld [vmem:[#allocation3] sm:$0xff]  ;;  %v6298_v21 = vld [vmem:[%s9091_s4 + $0xc8] sm:$0xff]  }
 0x31f   : > { %v6033_v33 = vpop.permute.xlu0 %6032  ;;  %v3655_v2 = vpack.c.bf16 %v3587_v56, %v3586_v5  ;;  %v6043_v40 = vpop.permute.xlu1 %6042 }
 0x320   : > { %v6035_v44 = vunpack.i.h.bf16 %v6033_v33  ;;  %v6034_v24 = vunpack.i.l.bf16 %v6033_v33  ;;  %v6297_v33 = vld [vmem:[%s9091_s4 + $0x80] sm:$0xff]   ;;  %v3244_v18 = vsel %vm522_vm4, %v3241_v11, %v3243_v12  ;;  %v6045_v17 = vunpack.i.h.bf16 %v6043_v40 }
 0x321   : > { %4088 = vmatprep.mubr.bf16.mxu1 %v3655_v2  ;;  %v3242_v2 = vsel %vm522_vm4, %v3240_v57, %v3241_v11  ;;  %v6044_v43 = vunpack.i.l.bf16 %v6043_v40  ;;  %v6299_v57 = vld [vmem:[%s9091_s4 + $0x88] sm:$0xff]  }
 0x322   : > { %v3555_v5 = vsel %vm2809_vm5, %v6316_v32, %v6035_v44  ;;  %v3554_v56 = vsel %vm2809_vm5, %v6317_v23, %v6034_v24  ;;  %v3660_v44 = vpack.c.bf16 %v3589_v39, %v3588_v49  ;;  %v6266_v24 = vpack.i.bf16 %v3244_v18, %v3242_v2  ;;  %v6301_v23 = vld [vmem:[%s9091_s4 + $0x90] sm:$0xff]   ;;  %v6318_v18 = vld [vmem:[#allocation3 + $0x30] sm:$0xff] }
 0x323   : > { %v3654_v20 = vpack.c.bf16 %v3555_v5, %v3554_v56  ;;  %v6048_v10 = vpop.permute.xlu0 %6047  ;;  %v6300_v5 = vld [vmem:[%s9091_s4 + $0xd0] sm:$0xff]   ;;  %v3556_v40 = vsel %vm2809_vm5, %v7693_v58, %v6044_v43  ;;  %v6319_v43 = vld [vmem:[#allocation3 + $0x38] sm:$0xff] }
 0x324   : > { %v6050_v32 = vunpack.i.h.bf16 %v6048_v10  ;;  %v6049_v22 = vunpack.i.l.bf16 %v6048_v10  ;;  %6267 = vrot.lane.b32.xlu0 %v6266_v24, %s6388_s29  ;;  %v3557_v10 = vsel %vm2809_vm5, %v7709_v16, %v6045_v17  ;;  %v6302_v16 = vld [vmem:[%s9091_s4 + $0xd8] sm:$0xff]  }
 0x325   : > { %4089 = vmatmul.mubr.bf16.vlgmr.msra.gmra.mrb[32].mxu1 %v3654_v20  ;;  %v6053_v20 = vpop.permute.xlu1 %6052  ;;  %v3659_v12 = vpack.c.bf16 %v3557_v10, %v3556_v40 }
 0x326   : > { %5241 = vmatpush3.bf16.msra.mxu1 %v6297_v33  ;;  %4096 = vmatprep.mubr.bf16.mxu1 %v3660_v44  ;;  %v3590_v11 = vsel %vm2809_vm5, %v8106_v28, %v6049_v22  ;;  %v3591_v49 = vsel %vm2809_vm5, %v8109_v50, %v6050_v32  ;;  %v6055_v56 = vunpack.i.h.bf16 %v6053_v20  ;;  %v6054_v58 = vunpack.i.l.bf16 %v6053_v20  ;;  %v6304_v32 = vld [vmem:[%s9091_s4 + $0xe0] sm:$0xff]  }
 0x327   : > { %5242 = vmatprep.subr.bf16.mxu1 %v6298_v21  ;;  %v6058_v39 = vpop.permute.xlu0 %6057  ;;  %v3664_v33 = vpack.c.bf16 %v3591_v49, %v3590_v11  ;;  %v6303_v21 = vld [vmem:[%s9091_s4 + $0x98] sm:$0xff]   ;;  %v6305_v20 = vld [vmem:[%s9091_s4 + $0xa0] sm:$0xff]  }
 0x328   : > { %v6060_v2 = vunpack.i.h.bf16 %v6058_v39  ;;  %v6059_v22 = vunpack.i.l.bf16 %v6058_v39  ;;  %v3558_v17 = vsel %vm2809_vm5, %v6318_v18, %v6054_v58  ;;  %v3559_v44 = vsel %vm2809_vm5, %v6319_v43, %v6055_v56  ;;  %v6307_v58 = vld [vmem:[%s9091_s4 + $0xa8] sm:$0xff]  }
 0x329   : > { %v6063_v24 = vpop.permute.xlu1 %6062  ;;  %v8386_v10 = vpack.c.bf16 %v3559_v44, %v3558_v17 }
 0x32a   : > { %5243 = vmatpush3.bf16.msra.mxu1 %v6299_v57  ;;  %v3592_v57 = vsel %vm2809_vm5, %v8150_v27, %v6059_v22  ;;  %v6065_v11 = vunpack.i.h.bf16 %v6063_v24  ;;  %v6064_v49 = vunpack.i.l.bf16 %v6063_v24  ;;  %v6310_v24 = vld [vmem:[%s9091_s4 + $0xf8] sm:$0xff]  }
 0x32b   : > { %5244 = vmatprep.subr.bf16.mxu1 %v6300_v5  ;;  %v3593_v5 = vsel %vm2809_vm5, %v8154_v7, %v6060_v2  ;;  %v6308_v2 = vld [vmem:[%s9091_s4 + $0xf0] sm:$0xff]  }
 0x32c   : > { %v6068_v40 = vpop.permute.xlu0 %6067  ;;  %v3668_v39 = vpack.c.bf16 %v3593_v5, %v3592_v57 }
 0x32d   : > { %4097 = vmatmul.mubr.bf16.gmra.mrb[36].mxu1 %v3659_v12  ;;  %v6306_v12 = vld [vmem:[%s9091_s4 + $0xe8] sm:$0xff]   ;;  %v6069_v56 = vunpack.i.l.bf16 %v6068_v40  ;;  %v6073_v22 = vpop.permute.xlu1 %6072 }
 0x32e   : > { %4104 = vmatprep.mubr.bf16.mxu1 %v3664_v33  ;;  %5245 = vmatpush3.bf16.msra.mxu1 %v6301_v23  ;;  %v6070_v23 = vunpack.i.h.bf16 %v6068_v40  ;;  %v3560_v33 = vsel %vm2809_vm5, %v7750_v25, %v6064_v49  ;;  %v6309_v25 = vld [vmem:[%s9091_s4 + $0xb0] sm:$0xff]   ;;  %v6074_v44 = vunpack.i.l.bf16 %v6073_v22  ;;  %v6311_v40 = vld [vmem:[%s9091_s4 + $0xb8] sm:$0xff]  }
 0x32f   : > { %5246 = vmatprep.subr.bf16.mxu1 %v6302_v16  ;;  %v3561_v16 = vsel %vm2809_vm5, %v7766_v37, %v6065_v11  ;;  %v6075_v37 = vunpack.i.h.bf16 %v6073_v22 }
 0x330   : > { %v3595_v18 = vsel %vm2809_vm5, %v8147_v9, %v6070_v23  ;;  %v6078_v17 = vpop.permute.xlu0 %6077  ;;  %v8409_v43 = vpack.c.bf16 %v3561_v16, %v3560_v33 }
 0x331   : > { %v6080_v57 = vunpack.i.h.bf16 %v6078_v17  ;;  %v6079_v5 = vunpack.i.l.bf16 %v6078_v17  ;;  %v3563_v49 = vsel %vm2809_vm5, %v7758_v53, %v6075_v37 }
 0x332   : > { %5247 = vmatpush3.bf16.msra.mxu1 %v6303_v21  ;;  %v3594_v21 = vsel %vm2809_vm5, %v8144_v62, %v6069_v56 }
 0x333   : > { %5248 = vmatprep.subr.bf16.mxu1 %v6304_v32  ;;  %v3672_v32 = vpack.c.bf16 %v3595_v18, %v3594_v21  ;;  %v3596_v23 = vsel %vm2809_vm5, %v8179_v15, %v6079_v5  ;;  %v3597_v56 = vsel %vm2809_vm5, %v8182_v35, %v6080_v57 }
 0x334   : > { %v3676_v53 = vpack.c.bf16 %v3597_v56, %v3596_v23 }
 0x335   : > { %4105 = vmatmul.mubr.bf16.gmra.mrb[40].mxu1 %v8386_v10 }
 0x336   : > { %4112 = vmatprep.mubr.bf16.mxu1 %v3668_v39  ;;  %5249 = vmatpush3.bf16.msra.mxu1 %v6305_v20  ;;  %v6320_v20 = vld [vmem:[#allocation3 + $0x60] sm:$0xff]  ;;  %v8427_v39 = vld [vmem:[%s9091_s4 + $0x100] sm:$0xff]  }
 0x337   : > { %5250 = vmatprep.subr.bf16.mxu1 %v6306_v12  ;;  %v3562_v11 = vsel %vm2809_vm5, %v6320_v20, %v6074_v44  ;;  %v6083_v12 = vpop.permute.xlu1 %6082 }
 0x338   : > { %v8433_v33 = vpack.c.bf16 %v3563_v49, %v3562_v11  ;;  %v6085_v16 = vunpack.i.h.bf16 %v6083_v12 }
 0x33a   : > { %5251 = vmatpush3.bf16.msra.mxu1 %v6307_v58  ;;  %v6088_v58 = vpop.permute.xlu0 %6087  ;;  %v3565_v17 = vsel %vm2809_vm5, %v7824_v6, %v6085_v16  ;;  %v9279_v6 = vld [vmem:[#allocation21_spill] sm:$0xff] }
 0x33b   : > { %5252 = vmatprep.subr.bf16.mxu1 %v6308_v2  ;;  %v6084_v2 = vunpack.i.l.bf16 %v6083_v12  ;;  %v6090_v22 = vunpack.i.h.bf16 %v6088_v58  ;;  %v6089_v21 = vunpack.i.l.bf16 %v6088_v58 }
 0x33d   : > { %4113 = vmatmul.mubr.bf16.gmra.mrb[44].mxu1 %v8409_v43  ;;  %v3564_v18 = vsel %vm2809_vm5, %v7808_v1, %v6084_v2  ;;  %v3598_v37 = vsel %vm2809_vm5, %v8172_v41, %v6089_v21  ;;  %v3599_v44 = vsel %vm2809_vm5, %v8176_v0, %v6090_v22 }
 0x33e   : > { %4120 = vmatprep.mubr.bf16.mxu1 %v3672_v32  ;;  %5253 = vmatpush3.bf16.msra.mxu1 %v6309_v25  ;;  %v6093_v25 = vpop.permute.xlu1 %6092  ;;  %v6098_v32 = vpop.permute.xlu0 %6097 }
 0x33f   : > { %5254 = vmatprep.subr.bf16.mxu1 %v6310_v24  ;;  %v8445_v24 = vpack.c.bf16 %v3565_v17, %v3564_v18  ;;  %v6095_v57 = vunpack.i.h.bf16 %v6093_v25  ;;  %v6094_v5 = vunpack.i.l.bf16 %v6093_v25  ;;  %v6100_v20 = vunpack.i.h.bf16 %v6098_v32  ;;  %v9280_v17 = vld [vmem:[#allocation10_spill] sm:$0xff] }
 0x340   : > { %v6099_v11 = vunpack.i.l.bf16 %v6098_v32 }
 0x341   : > { %v3566_v1 = vsel %vm2809_vm5, %v7804_v52, %v6094_v5  ;;  %v3567_v49 = vsel %vm2809_vm5, %v9279_v6, %v6095_v57  ;;  %v3601_v56 = vsel %vm2809_vm5, %v8197_v61, %v6100_v20  ;;  %v9282_v57 = vld [vmem:[#allocation48_spill] sm:$0xff] }
 0x342   : > { %5255 = vmatpush3.bf16.msra.mxu1 %v6311_v40  ;;  %v3680_v40 = vpack.c.bf16 %v3599_v44, %v3598_v37  ;;  %v6103_v12 = vpop.permute.xlu1 %6102  ;;  %v3600_v23 = vsel %vm2809_vm5, %v8194_v29, %v6099_v11  ;;  %v6108_v58 = vpop.permute.xlu0 %6107  ;;  %v8456_v16 = vpack.c.bf16 %v3567_v49, %v3566_v1  ;;  %v9281_v44 = vld [vmem:[#allocation47_spill] sm:$0xff] }
 0x343   : > { %5678 = vmatprep.subr.bf16.mxu1 %v8427_v39  ;;  %v6105_v2 = vunpack.i.h.bf16 %v6103_v12  ;;  %v3684_v22 = vpack.c.bf16 %v3601_v56, %v3600_v23  ;;  %v6110_v21 = vunpack.i.h.bf16 %v6108_v58  ;;  %v6109_v18 = vunpack.i.l.bf16 %v6108_v58  ;;  %v9284_v56 = vld [vmem:[#allocation9_spill] sm:$0xff] }
 0x345   : > { %4121 = vmatmul.mubr.bf16.gmra.mrb[48].mxu1 %v8433_v33  ;;  %v3569_v25 = vsel %vm2809_vm5, %v9280_v17, %v6105_v2  ;;  %v3602_v32 = vsel %vm2809_vm5, %v9281_v44, %v6109_v18  ;;  %v3603_v5 = vsel %vm2809_vm5, %v9282_v57, %v6110_v21 }
 0x346   : > { %4128 = vmatprep.mubr.bf16.mxu1 %v3676_v53  ;;  %v6104_v53 = vunpack.i.l.bf16 %v6103_v12  ;;  %v6113_v37 = vpop.permute.xlu1 %6112  ;;  %v3688_v6 = vpack.c.bf16 %v3603_v5, %v3602_v32 }
 0x347   : > { %v6115_v11 = vunpack.i.h.bf16 %v6113_v37  ;;  %v6114_v1 = vunpack.i.l.bf16 %v6113_v37 }
 0x348   : > { %v3568_v52 = vsel %vm2809_vm5, %v7866_v34, %v6104_v53  ;;  %v9283_v34 = vld [vmem:[#allocation8_spill] sm:$0xff] }
 0x349   : > { %v8467_v20 = vpack.c.bf16 %v3569_v25, %v3568_v52  ;;  %v3570_v23 = vsel %vm2809_vm5, %v9283_v34, %v6114_v1  ;;  %v3571_v58 = vsel %vm2809_vm5, %v9284_v56, %v6115_v11 }
 0x34a   : > { %v6123_v2 = vpop.permute.xlu1 %6122  ;;  %v8478_v18 = vpack.c.bf16 %v3571_v58, %v3570_v23 }
 0x34b   : > { %v6125_v52 = vunpack.i.h.bf16 %v6123_v2  ;;  %v6124_v17 = vunpack.i.l.bf16 %v6123_v2 }
 0x34d   : > { %4129 = vmatmul.mubr.bf16.gmra.mrb[52].mxu1 %v8445_v24  ;;  %v3572_v5 = vsel %vm2809_vm5, %v7924_v3, %v6124_v17  ;;  %v9286_v3 = vld [vmem:[#allocation20_spill] sm:$0xff] }
 0x34e   : > { %4136 = vmatprep.mubr.bf16.mxu1 %v3680_v40  ;;  %v6118_v40 = vpop.permute.xlu0 %6117  ;;  %v6133_v1 = vpop.permute.xlu1 %6132 }
 0x34f   : > { %v6120_v49 = vunpack.i.h.bf16 %v6118_v40  ;;  %v6119_v12 = vunpack.i.l.bf16 %v6118_v40  ;;  %v9285_v40 = vld [vmem:[#allocation29_spill] sm:$0xff]  ;;  %v6135_v23 = vunpack.i.h.bf16 %v6133_v1  ;;  %v6134_v56 = vunpack.i.l.bf16 %v6133_v1 }
 0x350   : > { %v3573_v11 = vsel %vm2809_vm5, %v9285_v40, %v6125_v52 }
 0x351   : > { %v3604_v53 = vsel %vm2809_vm5, %v8236_v38, %v6119_v12  ;;  %v8489_v34 = vpack.c.bf16 %v3573_v11, %v3572_v5 }
 0x352   : > { %v6128_v21 = vpop.permute.xlu0 %6127  ;;  %v6143_v17 = vpop.permute.xlu1 %6142 }
 0x353   : > { %v6130_v37 = vunpack.i.h.bf16 %v6128_v21  ;;  %v6129_v32 = vunpack.i.l.bf16 %v6128_v21  ;;  %v9287_v21 = vld [vmem:[#allocation28_spill] sm:$0xff]  ;;  %v6145_v40 = vunpack.i.h.bf16 %v6143_v17  ;;  %v6144_v11 = vunpack.i.l.bf16 %v6143_v17 }
 0x354   : > { %v3575_v52 = vsel %vm2809_vm5, %v9287_v21, %v6135_v23 }
 0x355   : > { %4137 = vmatmul.mubr.bf16.gmra.mrb[56].mxu1 %v8456_v16  ;;  %v3577_v23 = vsel %vm2809_vm5, %v7998_v54, %v6145_v40  ;;  %v9288_v54 = vld [vmem:[#allocation34_spill] sm:$0xff] }
 0x356   : > { %4144 = vmatprep.mubr.bf16.mxu1 %v3684_v22  ;;  %v3605_v22 = vsel %vm2809_vm5, %v8239_v63, %v6120_v49  ;;  %v3607_v49 = vsel %vm2809_vm5, %v8223_v48, %v6130_v37  ;;  %v6138_v12 = vpop.permute.xlu0 %6137 }
 0x357   : > { %v3692_v25 = vpack.c.bf16 %v3605_v22, %v3604_v53  ;;  %v6140_v2 = vunpack.i.h.bf16 %v6138_v12  ;;  %v6139_v53 = vunpack.i.l.bf16 %v6138_v12  ;;  %v3574_v22 = vsel %vm2809_vm5, %v9286_v3, %v6134_v56  ;;  %v6153_v56 = vpop.permute.xlu1 %6152 }
 0x358   : > { %v8500_v5 = vpack.c.bf16 %v3575_v52, %v3574_v22  ;;  %v3576_v12 = vsel %vm2809_vm5, %v7982_v60, %v6144_v11  ;;  %v6155_v22 = vunpack.i.h.bf16 %v6153_v56  ;;  %v6154_v21 = vunpack.i.l.bf16 %v6153_v56 }
 0x359   : > { %v3609_v37 = vsel %vm2809_vm5, %v8262_v31, %v6140_v2  ;;  %v8511_v3 = vpack.c.bf16 %v3577_v23, %v3576_v12 }
 0x35a   : > { %v3578_v60 = vsel %vm2809_vm5, %v7978_v55, %v6154_v21 }
 0x35d   : > { %4145 = vmatmul.mubr.bf16.gmra.mrb[60].mxu1 %v8467_v20 }
 0x35e   : > { %4152 = vmatprep.mubr.bf16.mxu1 %v3688_v6  ;;  %v3606_v6 = vsel %vm2809_vm5, %v8220_v36, %v6129_v32  ;;  %v6148_v32 = vpop.permute.xlu0 %6147 }
 0x35f   : > { %v3696_v58 = vpack.c.bf16 %v3607_v49, %v3606_v6  ;;  %v6150_v6 = vunpack.i.h.bf16 %v6148_v32  ;;  %v6149_v49 = vunpack.i.l.bf16 %v6148_v32  ;;  %v6163_v32 = vpop.permute.xlu1 %6162 }
 0x360   : > { %v6164_v12 = vunpack.i.l.bf16 %v6163_v32 }
 0x361   : > { %v3611_v2 = vsel %vm2809_vm5, %v8256_v45, %v6150_v6 }
 0x362   : > { %v3580_v55 = vsel %vm2809_vm5, %v8037_v4, %v6164_v12  ;;  %v9289_v4 = vld [vmem:[#allocation40_spill] sm:$0xff] }
 0x365   : > { %4153 = vmatmul.mubr.bf16.gmra.mrb[64].mxu1 %v8478_v18 }
 0x366   : > { %4160 = vmatprep.mubr.bf16.mxu1 %v3692_v25  ;;  %v3608_v25 = vsel %vm2809_vm5, %v8259_v51, %v6139_v53  ;;  %v6158_v53 = vpop.permute.xlu0 %6157 }
 0x367   : > { %v3700_v1 = vpack.c.bf16 %v3609_v37, %v3608_v25  ;;  %v6160_v17 = vunpack.i.h.bf16 %v6158_v53  ;;  %v6159_v25 = vunpack.i.l.bf16 %v6158_v53  ;;  %v3579_v37 = vsel %vm2809_vm5, %v9288_v54, %v6155_v22  ;;  %v6173_v53 = vpop.permute.xlu1 %6172 }
 0x368   : > { %v8522_v6 = vpack.c.bf16 %v3579_v37, %v3578_v60  ;;  %v6174_v60 = vunpack.i.l.bf16 %v6173_v53 }
 0x369   : > { %v3612_v40 = vsel %vm2809_vm5, %v8283_v26, %v6159_v25  ;;  %v3613_v11 = vsel %vm2809_vm5, %v8287_v30, %v6160_v17  ;;  %v6175_v25 = vunpack.i.h.bf16 %v6173_v53 }
 0x36a   : > { %v3708_v23 = vpack.c.bf16 %v3613_v11, %v3612_v40  ;;  %v9290_v40 = vld [vmem:[#allocation39_spill] sm:$0xff] }
 0x36b   : > { %v3583_v11 = vsel %vm2809_vm5, %v9290_v40, %v6175_v25 }
 0x36d   : > { %4161 = vmatmul.mubr.bf16.gmra.mrb[68].mxu1 %v8489_v34 }
 0x36e   : > { %4168 = vmatprep.mubr.bf16.mxu1 %v3696_v58  ;;  %v3610_v58 = vsel %vm2809_vm5, %v8253_v46, %v6149_v49  ;;  %v6165_v49 = vunpack.i.h.bf16 %v6163_v32 }
 0x36f   : > { %v3704_v52 = vpack.c.bf16 %v3611_v2, %v3610_v58 }
 0x370   : > { %v3581_v2 = vsel %vm2809_vm5, %v8049_v14, %v6165_v49  ;;  %v3582_v14 = vsel %vm2809_vm5, %v9289_v4, %v6174_v60  ;;  %v9291_v60 = vld [vmem:[#allocation16_spill] sm:$0xff] }
 0x371   : > { %v8533_v17 = vpack.c.bf16 %v3581_v2, %v3580_v55 }
 0x375   : > { %4169 = vmatmul.mubr.bf16.gmra.mrb[72].mxu1 %v8500_v5 }
 0x376   : > { %4176 = vmatprep.mubr.bf16.mxu1 %v3700_v1  ;;  %v6168_v1 = vpop.permute.xlu0 %6167 }
 0x377   : > { %v6170_v56 = vunpack.i.h.bf16 %v6168_v1  ;;  %v6169_v58 = vunpack.i.l.bf16 %v6168_v1  ;;  %v6183_v1 = vpop.permute.xlu1 %6182 }
 0x379   : > { %v3614_v22 = vsel %vm2809_vm5, %v8277_v47, %v6169_v58  ;;  %v3615_v21 = vsel %vm2809_vm5, %v8280_v42, %v6170_v56  ;;  %v6185_v56 = vunpack.i.h.bf16 %v6183_v1  ;;  %v6184_v58 = vunpack.i.l.bf16 %v6183_v1 }
 0x37a   : > { %v3712_v54 = vpack.c.bf16 %v3615_v21, %v3614_v22 }
 0x37b   : > { %v3584_v2 = vsel %vm2809_vm5, %v8083_v13, %v6184_v58  ;;  %v3585_v53 = vsel %vm2809_vm5, %v8093_v59, %v6185_v56  ;;  %v6193_v4 = vpop.permute.xlu1 %6192  ;;  %v6313_v59 = vld [vmem:[%s9091_s4 + $0x108] sm:$0xff]  }
 0x37c   : > { %v8551_v21 = vpack.c.bf16 %v3585_v53, %v3584_v2  ;;  %v6194_v40 = vunpack.i.l.bf16 %v6193_v4  ;;  %v9295_v2 = vld [vmem:[#allocation25_spill] sm:$0xff] }
 0x37d   : > { %4177 = vmatmul.mubr.bf16.gmra.mrb[76].mxu1 %v8511_v3 }
 0x37e   : > { %4184 = vmatprep.mubr.bf16.mxu1 %v3704_v52  ;;  %v6178_v52 = vpop.permute.xlu0 %6177 }
 0x37f   : > { %v6180_v37 = vunpack.i.h.bf16 %v6178_v52  ;;  %v6179_v32 = vunpack.i.l.bf16 %v6178_v52 }
 0x381   : > { %v3616_v49 = vsel %vm2809_vm5, %v8301_v8, %v6179_v32  ;;  %v3617_v12 = vsel %vm2809_vm5, %v8304_v19, %v6180_v37  ;;  %v9292_v37 = vld [vmem:[#allocation15_spill] sm:$0xff] }
 0x382   : > { %v3716_v55 = vpack.c.bf16 %v3617_v12, %v3616_v49  ;;  %v6188_v22 = vpop.permute.xlu0 %6187  ;;  %v9294_v49 = vld [vmem:[#allocation22_spill] sm:$0xff] }
 0x383   : > { %v6190_v52 = vunpack.i.h.bf16 %v6188_v22  ;;  %v6189_v25 = vunpack.i.l.bf16 %v6188_v22  ;;  %v9296_v22 = vld [vmem:[#allocation27_spill] sm:$0xff] }
 0x385   : > { %4185 = vmatmul.mubr.bf16.gmra.mrb[80].mxu1 %v8522_v6  ;;  %v3618_v32 = vsel %vm2809_vm5, %v9292_v37, %v6189_v25  ;;  %v6203_v25 = vpop.permute.xlu1 %6202 }
 0x386   : > { %4192 = vmatprep.mubr.bf16.mxu1 %v3708_v23  ;;  %v8544_v23 = vpack.c.bf16 %v3583_v11, %v3582_v14  ;;  %v6195_v14 = vunpack.i.h.bf16 %v6193_v4  ;;  %v9293_v11 = vld [vmem:[#allocation17_spill] sm:$0xff]  ;;  %v6198_v56 = vpop.permute.xlu0 %6197  ;;  %v6204_v37 = vunpack.i.l.bf16 %v6203_v25 }
 0x387   : > { %v3620_v1 = vsel %vm2809_vm5, %v9293_v11, %v6194_v40  ;;  %v9299_v11 = vld [vmem:[#allocation23_spill] sm:$0xff] }
 0x388   : > { %v3621_v12 = vsel %vm2809_vm5, %v9294_v49, %v6195_v14  ;;  %v9300_v49 = vld [vmem:[#allocation24_spill] sm:$0xff] }
 0x389   : > { %v3661_v58 = vpack.c.bf16 %v3621_v12, %v3620_v1 }
 0x38d   : > { %4193 = vmatmul.mubr.bf16.gmra.mrb[84].mxu1 %v8533_v17 }
 0x38e   : > { %4200 = vmatprep.mubr.bf16.mxu1 %v3712_v54  ;;  %v3619_v54 = vsel %vm2809_vm5, %v9291_v60, %v6190_v52 }
 0x38f   : > { %v3656_v13 = vpack.c.bf16 %v3619_v54, %v3618_v32  ;;  %v6205_v54 = vunpack.i.h.bf16 %v6203_v25  ;;  %v9297_v32 = vld [vmem:[#allocation11_spill] sm:$0xff] }
 0x390   : > { %v3624_v4 = vsel %vm2809_vm5, %v9297_v32, %v6204_v37  ;;  %v9304_v37 = vld [vmem:[#allocation13_spill] sm:$0xff] }
 0x395   : > { %4201 = vmatmul.mubr.bf16.gmra.mrb[88].mxu1 %v8544_v23 }
 0x396   : > { %4208 = vmatprep.mubr.bf16.mxu1 %v3716_v55  ;;  %v6199_v55 = vunpack.i.l.bf16 %v6198_v56 }
 0x398   : > { %v3622_v53 = vsel %vm2809_vm5, %v9295_v2, %v6199_v55  ;;  %v9302_v2 = vld [vmem:[#allocation7_spill] sm:$0xff] }
 0x39d   : > { %4209 = vmatmul.mubr.bf16.gmra.mrb[92].mxu1 %v8551_v21 }
 0x39e   : > { %4249 = vmatprep.mubr.bf16.mxu1 %v8386_v10  ;;  %v6314_v10 = vld [vmem:[%s9091_s4 + $0x110] sm:$0xff]  }
 0x3a5   : > { %4250 = vmatmul.mubr.bf16.vlgmr.msra.gmra.mrb[96].mxu1 %v3656_v13 }
 0x3a6   : > { %5679 = vmatpush3.bf16.msra.mxu1 %v8427_v39  ;;  %4257 = vmatprep.mubr.bf16.mxu1 %v8409_v43  ;;  %v6315_v39 = vld [vmem:[%s9091_s4 + $0x118] sm:$0xff]   ;;  %v6200_v43 = vunpack.i.h.bf16 %v6198_v56 }
 0x3a7   : > { %5680 = vmatprep.subr.bf16.mxu1 %v6313_v59 }
 0x3a8   : > { %v3623_v52 = vsel %vm2809_vm5, %v9296_v22, %v6200_v43  ;;  %v9301_v43 = vld [vmem:[#allocation26_spill] sm:$0xff] }
 0x3a9   : > { %v3665_v60 = vpack.c.bf16 %v3623_v52, %v3622_v53 }
 0x3aa   : > { %5681 = vmatpush3.bf16.msra.mxu1 %v6313_v59  ;;  %v6208_v59 = vpop.permute.xlu0 %6207 }
 0x3ab   : > { %5682 = vmatprep.subr.bf16.mxu1 %v6314_v10  ;;  %v6210_v40 = vunpack.i.h.bf16 %v6208_v59 }
 0x3ad   : > { %4258 = vmatmul.mubr.bf16.gmra.mrb[100].mxu1 %v3661_v58  ;;  %v3627_v12 = vsel %vm2809_vm5, %v9300_v49, %v6210_v40  ;;  %v9306_v40 = vld [vmem:[#allocation18_spill] sm:$0xff] }
 0x3ae   : > { %4265 = vmatprep.mubr.bf16.mxu1 %v8433_v33  ;;  %5683 = vmatpush3.bf16.msra.mxu1 %v6314_v10  ;;  %v9298_v33 = vld [vmem:[#allocation19_spill] sm:$0xff]  ;;  %v6209_v10 = vunpack.i.l.bf16 %v6208_v59  ;;  %v9305_v59 = vld [vmem:[#allocation14_spill] sm:$0xff] }
 0x3af   : > { %5684 = vmatprep.subr.bf16.mxu1 %v6315_v39  ;;  %v3625_v13 = vsel %vm2809_vm5, %v9298_v33, %v6205_v54 }
 0x3b0   : > { %v3669_v14 = vpack.c.bf16 %v3625_v13, %v3624_v4  ;;  %v3626_v1 = vsel %vm2809_vm5, %v9299_v11, %v6209_v10 }
 0x3b1   : > { %v3673_v56 = vpack.c.bf16 %v3627_v12, %v3626_v1  ;;  %v9307_v12 = vld [vmem:[#allocation30_spill] sm:$0xff] }
 0x3b2   : > { %5685 = vmatpush3.bf16.msra.mxu1 %v6315_v39 }
 0x3b5   : > { %4266 = vmatmul.mubr.bf16.gmra.mrb[104].mxu1 %v3665_v60  ;;  %v9303_v60 = vld [vmem:[#allocation12_spill] sm:$0xff] }
 0x3b6   : > { %4273 = vmatprep.mubr.bf16.mxu1 %v8445_v24  ;;  %v6213_v24 = vpop.permute.xlu1 %6212 }
 0x3b7   : > { %v6215_v58 = vunpack.i.h.bf16 %v6213_v24  ;;  %v6214_v39 = vunpack.i.l.bf16 %v6213_v24 }
 0x3b9   : > { %v3628_v55 = vsel %vm2809_vm5, %v9301_v43, %v6214_v39  ;;  %v3629_v53 = vsel %vm2809_vm5, %v9302_v2, %v6215_v58  ;;  %v9309_v2 = vld [vmem:[#allocation32_spill] sm:$0xff] }
 0x3ba   : > { %v3677_v22 = vpack.c.bf16 %v3629_v53, %v3628_v55 }
 0x3bd   : > { %4274 = vmatmul.mubr.bf16.gmra.mrb[108].mxu1 %v3669_v14 }
 0x3be   : > { %4281 = vmatprep.mubr.bf16.mxu1 %v8456_v16  ;;  %v6218_v16 = vpop.permute.xlu0 %6217 }
 0x3bf   : > { %v6220_v52 = vunpack.i.h.bf16 %v6218_v16  ;;  %v6219_v25 = vunpack.i.l.bf16 %v6218_v16  ;;  %v9310_v16 = vld [vmem:[#allocation33_spill] sm:$0xff] }
 0x3c1   : > { %v3630_v54 = vsel %vm2809_vm5, %v9303_v60, %v6219_v25  ;;  %v3631_v32 = vsel %vm2809_vm5, %v9304_v37, %v6220_v52 }
 0x3c2   : > { %v3681_v4 = vpack.c.bf16 %v3631_v32, %v3630_v54  ;;  %v9311_v54 = vld [vmem:[#allocation35_spill] sm:$0xff]  ;;  %v9312_v32 = vld [vmem:[#allocation36_spill] sm:$0xff] }
 0x3c5   : > { %4282 = vmatmul.mubr.bf16.gmra.mrb[112].mxu1 %v3673_v56  ;;  %v9308_v56 = vld [vmem:[#allocation31_spill] sm:$0xff] }
 0x3c6   : > { %4289 = vmatprep.mubr.bf16.mxu1 %v8467_v20  ;;  %v6223_v20 = vpop.permute.xlu1 %6222 }
 0x3c7   : > { %v6225_v33 = vunpack.i.h.bf16 %v6223_v20  ;;  %v6224_v13 = vunpack.i.l.bf16 %v6223_v20 }
 0x3c9   : > { %v3632_v14 = vsel %vm2809_vm5, %v9305_v59, %v6224_v13  ;;  %v3633_v10 = vsel %vm2809_vm5, %v9306_v40, %v6225_v33 }
 0x3ca   : > { %v3685_v11 = vpack.c.bf16 %v3633_v10, %v3632_v14  ;;  %v9313_v14 = vld [vmem:[#allocation37_spill] sm:$0xff]  ;;  %v9314_v10 = vld [vmem:[#allocation38_spill] sm:$0xff] }
 0x3cd   : > { %4290 = vmatmul.mubr.bf16.gmra.mrb[116].mxu1 %v3677_v22 }
 0x3ce   : > { %4297 = vmatprep.mubr.bf16.mxu1 %v8478_v18  ;;  %v6228_v18 = vpop.permute.xlu0 %6227 }
 0x3cf   : > { %v6230_v1 = vunpack.i.h.bf16 %v6228_v18  ;;  %v6229_v49 = vunpack.i.l.bf16 %v6228_v18 }
 0x3d1   : > { %v3634_v24 = vsel %vm2809_vm5, %v9307_v12, %v6229_v49  ;;  %v3635_v58 = vsel %vm2809_vm5, %v9308_v56, %v6230_v1 }
 0x3d2   : > { %v3689_v39 = vpack.c.bf16 %v3635_v58, %v3634_v24 }
 0x3d5   : > { %4298 = vmatmul.mubr.bf16.gmra.mrb[120].mxu1 %v3681_v4 }
 0x3d6   : > { %4305 = vmatprep.mubr.bf16.mxu1 %v8489_v34  ;;  %v6233_v34 = vpop.permute.xlu1 %6232 }
 0x3d7   : > { %v6235_v43 = vunpack.i.h.bf16 %v6233_v34  ;;  %v6234_v55 = vunpack.i.l.bf16 %v6233_v34 }
 0x3d9   : > { %v3636_v53 = vsel %vm2809_vm5, %v9309_v2, %v6234_v55  ;;  %v3637_v22 = vsel %vm2809_vm5, %v9310_v16, %v6235_v43  ;;  %v9316_v55 = vld [vmem:[#allocation42_spill] sm:$0xff] }
 0x3da   : > { %v3693_v52 = vpack.c.bf16 %v3637_v22, %v3636_v53 }
 0x3dd   : > { %4306 = vmatmul.mubr.bf16.gmra.mrb[124].mxu1 %v3685_v11 }
 0x3de   : > { %4313 = vmatprep.mubr.bf16.mxu1 %v8500_v5  ;;  %v6238_v5 = vpop.permute.xlu0 %6237 }
 0x3df   : > { %v6240_v25 = vunpack.i.h.bf16 %v6238_v5  ;;  %v6239_v60 = vunpack.i.l.bf16 %v6238_v5 }
 0x3e1   : > { %v3638_v37 = vsel %vm2809_vm5, %v9311_v54, %v6239_v60  ;;  %v3639_v20 = vsel %vm2809_vm5, %v9312_v32, %v6240_v25 }
 0x3e2   : > { %v3697_v4 = vpack.c.bf16 %v3639_v20, %v3638_v37  ;;  %v6248_v18 = vpop.permute.xlu0 %6247 }
 0x3e3   : > { %v6250_v56 = vunpack.i.h.bf16 %v6248_v18  ;;  %v6249_v58 = vunpack.i.l.bf16 %v6248_v18 }
 0x3e5   : > { %4314 = vmatmul.mubr.bf16.gmra.mrb[128].mxu1 %v3689_v39  ;;  %v9315_v39 = vld [vmem:[#allocation41_spill] sm:$0xff]  ;;  %v3643_v2 = vsel %vm2809_vm5, %v9316_v55, %v6250_v56 }
 0x3e6   : > { %4321 = vmatprep.mubr.bf16.mxu1 %v8511_v3  ;;  %v6243_v3 = vpop.permute.xlu1 %6242  ;;  %v3642_v43 = vsel %vm2809_vm5, %v9315_v39, %v6249_v58  ;;  %v6258_v22 = vpop.permute.xlu0 %6257 }
 0x3e7   : > { %v6245_v33 = vunpack.i.h.bf16 %v6243_v3  ;;  %v6244_v13 = vunpack.i.l.bf16 %v6243_v3  ;;  %v3705_v60 = vpack.c.bf16 %v3643_v2, %v3642_v43  ;;  %v6259_v20 = vunpack.i.l.bf16 %v6258_v22 }
 0x3e9   : > { %v3640_v40 = vsel %vm2809_vm5, %v9313_v14, %v6244_v13  ;;  %v9318_v13 = vld [vmem:[#allocation44_spill] sm:$0xff] }
 0x3ea   : > { %v6253_v53 = vpop.permute.xlu1 %6252  ;;  %v6268_v14 = vpop.permute.xlu0 %6267 }
 0x3eb   : > { %v6255_v54 = vunpack.i.h.bf16 %v6253_v53  ;;  %v6254_v37 = vunpack.i.l.bf16 %v6253_v53  ;;  %v6270_v58 = vunpack.i.h.bf16 %v6268_v14  ;;  %v9319_v53 = vld [vmem:[#allocation53_spill] sm:$0xff] }
 0x3ed   : > { %4322 = vmatmul.mubr.bf16.gmra.mrb[132].mxu1 %v3693_v52 }
 0x3ee   : > { %4329 = vmatprep.mubr.bf16.mxu1 %v8522_v6  ;;  %v3641_v6 = vsel %vm2809_vm5, %v9314_v10, %v6245_v33 }
 0x3ef   : > { %v3701_v24 = vpack.c.bf16 %v3641_v6, %v3640_v40  ;;  %v6263_v40 = vpop.permute.xlu1 %6262  ;;  %v6321_v6 = vld [vmem:[#allocation3 + $0x180] sm:$0xff] }
 0x3f0   : > { %v3650_v18 = vsel %vm2809_vm5, %v6321_v6, %v6259_v20  ;;  %v6265_v39 = vunpack.i.h.bf16 %v6263_v40  ;;  %v6264_v43 = vunpack.i.l.bf16 %v6263_v40 }
 0x3f3   : > { %v6273_v20 = vpop.permute.xlu1 %6272 }
 0x3f4   : > { %v6275_v40 = vunpack.i.h.bf16 %v6273_v20 }
 0x3f5   : > { %4330 = vmatmul.mubr.bf16.gmra.mrb[136].mxu1 %v3697_v4  ;;  %v9317_v4 = vld [vmem:[#allocation43_spill] sm:$0xff] }
 0x3f6   : > { %4337 = vmatprep.mubr.bf16.mxu1 %v8533_v17  ;;  %v3644_v33 = vsel %vm2809_vm5, %v9317_v4, %v6254_v37  ;;  %v9322_v37 = vld [vmem:[#allocation46_spill] sm:$0xff] }
 0x3f8   : > { %v5144_v59 = vpop.f32.mrb[32].mxu1 }
 0x3f9   : > { %v5145_v11 = vpop.f32.mrb[33].mxu1 }
 0x3fa   : > { %v8624_v1 = vadd.f32 %v5145_v11, %v5144_v59  ;;  %v5147_v49 = vpop.f32.mrb[34].mxu1  ;;  %v3645_v59 = vsel %vm2809_vm5, %v9318_v13, %v6255_v54  ;;  %v6322_v11 = vld [vmem:[#allocation3 + $0x188] sm:$0xff] }
 0x3fb   : > { %v5148_v12 = vpop.f32.mrb[35].mxu1  ;;  %v3709_v56 = vpack.c.bf16 %v3645_v59, %v3644_v33 }
 0x3fc   : > { %v8626_v34 = vadd.f32 %v5148_v12, %v5147_v49 }
 0x3fd   : > { %4338 = vmatmul.mubr.bf16.gmra.mrb[140].mxu1 %v3701_v24 }
 0x3fe   : > { %4345 = vmatprep.mubr.bf16.mxu1 %v8544_v23  ;;  %v6260_v23 = vunpack.i.h.bf16 %v6258_v22  ;;  %v9320_v22 = vld [vmem:[#allocation54_spill] sm:$0xff] }
 0x400   : > { %v5150_v17 = vpop.f32.mrb[36].mxu1  ;;  %v3651_v49 = vsel %vm2809_vm5, %v6322_v11, %v6260_v23  ;;  %v3647_v23 = vsel %vm2809_vm5, %v9322_v37, %v6265_v39  ;;  %v9323_v11 = vld [vmem:[#allocation51_spill] sm:$0xff]  ;;  %v3663_v37 = vpack.c.bf16 %v8154_v7, %v8150_v27  ;;  %v3675_v7 = vpack.c.bf16 %v8176_v0, %v8172_v41 }
 0x401   : > { %v5151_v16 = vpop.f32.mrb[37].mxu1  ;;  %v3714_v2 = vpack.c.bf16 %v3651_v49, %v3650_v18 }
 0x402   : > { %v8633_v5 = vadd.f32 %v5151_v16, %v5150_v17  ;;  %v5153_v52 = vpop.f32.mrb[38].mxu1  ;;  %v6269_v17 = vunpack.i.l.bf16 %v6268_v14 }
 0x403   : > { %v5154_v25 = vpop.f32.mrb[39].mxu1 }
 0x404   : > { %v8635_v32 = vadd.f32 %v5154_v25, %v5153_v52  ;;  %v3652_v16 = vsel %vm2809_vm5, %v9319_v53, %v6269_v17  ;;  %v3653_v52 = vsel %vm2809_vm5, %v9320_v22, %v6270_v58 }
 0x405   : > { %4346 = vmatmul.mubr.bf16.gmra.mrb[144].mxu1 %v3705_v60  ;;  %v9321_v60 = vld [vmem:[#allocation45_spill] sm:$0xff]  ;;  %v3718_v13 = vpack.c.bf16 %v3653_v52, %v3652_v16  ;;  %v3658_v16 = vpack.c.bf16 %v8109_v50, %v8106_v28 }
 0x406   : > { %4353 = vmatprep.mubr.bf16.mxu1 %v8551_v21  ;;  %v3646_v54 = vsel %vm2809_vm5, %v9321_v60, %v6264_v43 }
 0x407   : > { %v3713_v14 = vpack.c.bf16 %v3647_v23, %v3646_v54 }
 0x408   : > { %v5156_v3 = vpop.f32.mrb[40].mxu1 }
 0x409   : > { %v5157_v10 = vpop.f32.mrb[41].mxu1 }
 0x40a   : > { %v8644_v12 = vadd.f32 %v5157_v10, %v5156_v3  ;;  %v5159_v24 = vpop.f32.mrb[42].mxu1  ;;  %v6274_v10 = vunpack.i.l.bf16 %v6273_v20 }
 0x40b   : > { %v5160_v21 = vpop.f32.mrb[43].mxu1 }
 0x40c   : > { %v8646_v55 = vadd.f32 %v5160_v21, %v5159_v24  ;;  %v3648_v49 = vsel %vm2809_vm5, %v9323_v11, %v6274_v10  ;;  %v9324_v24 = vld [vmem:[#allocation52_spill] sm:$0xff]  ;;  %v3679_v11 = vpack.c.bf16 %v8197_v61, %v8194_v29  ;;  %v3691_v29 = vpack.c.bf16 %v8223_v48, %v8220_v36 }
 0x40d   : > { %4354 = vmatmul.mubr.bf16.gmra.mrb[148].mxu1 %v3709_v56  ;;  %v3649_v21 = vsel %vm2809_vm5, %v9324_v24, %v6275_v40 }
 0x40e   : > { %4361 = vmatprep.mubr.bf16.mxu1 %v3714_v2  ;;  %v3717_v43 = vpack.c.bf16 %v3649_v21, %v3648_v49 }
 0x410   : > { %v5162_v25 = vpop.f32.mrb[44].mxu1 }
 0x411   : > { %v5163_v3 = vpop.f32.mrb[45].mxu1 }
 0x412   : > { %v8656_v4 = vadd.f32 %v5163_v3, %v5162_v25  ;;  %v5165_v33 = vpop.f32.mrb[46].mxu1  ;;  %v3667_v3 = vpack.c.bf16 %v8147_v9, %v8144_v62 }
 0x413   : > { %v5166_v59 = vpop.f32.mrb[47].mxu1 }
 0x414   : > { %v8658_v6 = vadd.f32 %v5166_v59, %v5165_v33 }
 0x415   : > { %4362 = vmatmul.mubr.bf16.gmra.mrb[152].mxu1 %v3713_v14  ;;  %v3671_v14 = vpack.c.bf16 %v8182_v35, %v8179_v15  ;;  %v3683_v35 = vpack.c.bf16 %v9282_v57, %v9281_v44 }
 0x416   : > { %4369 = vmatprep.mubr.bf16.mxu1 %v3718_v13 }
 0x418   : > { %v5168_v18 = vpop.f32.mrb[48].mxu1 }
 0x419   : > { %v5169_v56 = vpop.f32.mrb[49].mxu1 }
 0x41a   : > { %v8664_v58 = vadd.f32 %v5169_v56, %v5168_v18  ;;  %v5171_v17 = vpop.f32.mrb[50].mxu1  ;;  %v3687_v56 = vpack.c.bf16 %v8239_v63, %v8236_v38  ;;  %v3699_v38 = vpack.c.bf16 %v8256_v45, %v8253_v46 }
 0x41b   : > { %v5172_v39 = vpop.f32.mrb[51].mxu1 }
 0x41c   : > { %v8666_v2 = vadd.f32 %v5172_v39, %v5171_v17 }
 0x41d   : > { %4370 = vmatmul.mubr.bf16.gmra.mrb[156].mxu1 %v3717_v43 }
 0x41e   : > { %5686 = vmatprep.mubr.msk.bf16.mxu1 %vm2809_vm5, %v3658_v16  ;;  %v3695_v16 = vpack.c.bf16 %v8262_v31, %v8259_v51  ;;  %v3707_v51 = vpack.c.bf16 %v8280_v42, %v8277_v47  ;;  %v9325_v31 = vld [vmem:[#allocation55_spill] sm:$0xff]  ;;  %v9326_v42 = vld [vmem:[#allocation50_spill] sm:$0xff] }
 0x420   : > { %v5174_v52 = vpop.f32.mrb[52].mxu1 }
 0x421   : > { %v5175_v25 = vpop.f32.mrb[53].mxu1 }
 0x422   : > { %v8671_v60 = vadd.f32 %v5175_v25, %v5174_v52  ;;  %v5177_v54 = vpop.f32.mrb[54].mxu1 }
 0x423   : > { %v5178_v23 = vpop.f32.mrb[55].mxu1 }
 0x424   : > { %v8675_v20 = vadd.f32 %v5178_v23, %v5177_v54 }
 0x425   : > { %5687 = vmatmul.mubr.msk.bf16.vlgmr.msra.gmra.mrb[160].mxu1 %vm2809_vm5, %v3663_v37  ;;  %v3703_v37 = vpack.c.bf16 %v8287_v30, %v8283_v26  ;;  %v3246_v26 = vrot.slane %v9320_v22, 2 }
 0x426   : > { %5690 = vmatprep.mubr.msk.bf16.mxu1 %vm2809_vm5, %v3667_v3  ;;  %v3248_v3 = vrot.slane %v9325_v31, 2 }
 0x428   : > { %v5180_v50 = vpop.f32.mrb[56].mxu1 }
 0x429   : > { %v5181_v28 = vpop.f32.mrb[57].mxu1 }
 0x42a   : > { %v8681_v33 = vadd.f32 %v5181_v28, %v5180_v50  ;;  %v5183_v13 = vpop.f32.mrb[58].mxu1 }
 0x42b   : > { %v5184_v59 = vpop.f32.mrb[59].mxu1 }
 0x42c   : > { %v8685_v27 = vadd.f32 %v5184_v59, %v5183_v13  ;;  %v3245_v13 = vrot.slane %v9319_v53, 2  ;;  %v3711_v59 = vpack.c.bf16 %v8304_v19, %v8301_v8 }
 0x42d   : > { %5691 = vmatmul.mubr.msk.bf16.gmra.mrb[164].mxu1 %vm2809_vm5, %v3671_v14  ;;  %v9327_v14 = vld [vmem:[#allocation49_spill] sm:$0xff] }
 0x42e   : > { %5694 = vmatprep.mubr.msk.bf16.mxu1 %vm2809_vm5, %v3675_v7  ;;  %v9328_v7 = vpack.c.bf16 %v9326_v42, %v9327_v14 }
 0x430   : > { %v5186_v9 = vpop.f32.mrb[60].mxu1 }
 0x431   : > { %v5187_v62 = vpop.f32.mrb[61].mxu1 }
 0x432   : > { %v8691_v40 = vadd.f32 %v5187_v62, %v5186_v9  ;;  %v5189_v10 = vpop.f32.mrb[62].mxu1  ;;  %v3247_v9 = vsel %vm1080_vm3, %v3245_v13, %v3246_v26  ;;  %v3249_v62 = vsel %vm1080_vm3, %v3246_v26, %v3248_v3 }
 0x433   : > { %v5190_v18 = vpop.f32.mrb[63].mxu1  ;;  %v3719_v22 = vpack.c.bf16 %v3249_v62, %v3247_v9 }
 0x434   : > { %v8695_v49 = vadd.f32 %v5190_v18, %v5189_v10 }
 0x435   : > { %5695 = vmatmul.mubr.msk.bf16.gmra.mrb[168].mxu1 %vm2809_vm5, %v3679_v11 }
 0x436   : > { %5698 = vmatprep.mubr.msk.bf16.mxu1 %vm2809_vm5, %v3683_v35 }
 0x438   : > { %v5192_v41 = vpop.f32.mrb[64].mxu1 }
 0x439   : > { %v5193_v0 = vpop.f32.mrb[65].mxu1 }
 0x43a   : > { %v8701_v15 = vadd.f32 %v5193_v0, %v5192_v41  ;;  %v5195_v24 = vpop.f32.mrb[66].mxu1 }
 0x43b   : > { %v5196_v21 = vpop.f32.mrb[67].mxu1 }
 0x43c   : > { %v8705_v17 = vadd.f32 %v5196_v21, %v5195_v24 }
 0x43d   : > { %5699 = vmatmul.mubr.msk.bf16.gmra.mrb[172].mxu1 %vm2809_vm5, %v3687_v56 }
 0x43e   : > { %5702 = vmatprep.mubr.msk.bf16.mxu1 %vm2809_vm5, %v3691_v29 }
 0x440   : > { %v5198_v61 = vpop.f32.mrb[68].mxu1 }
 0x441   : > { %v5199_v44 = vpop.f32.mrb[69].mxu1 }
 0x442   : > { %v8711_v57 = vadd.f32 %v5199_v44, %v5198_v61  ;;  %v5201_v39 = vpop.f32.mrb[70].mxu1 }
 0x443   : > { %v5202_v43 = vpop.f32.mrb[71].mxu1 }
 0x444   : > { %v8715_v52 = vadd.f32 %v5202_v43, %v5201_v39 }
 0x445   : > { %5703 = vmatmul.mubr.msk.bf16.gmra.mrb[176].mxu1 %vm2809_vm5, %v3695_v16 }
 0x446   : > { %5706 = vmatprep.mubr.msk.bf16.mxu1 %vm2809_vm5, %v3699_v38 }
 0x448   : > { %v5204_v36 = vpop.f32.mrb[72].mxu1 }
 0x449   : > { %v5205_v48 = vpop.f32.mrb[73].mxu1 }
 0x44a   : > { %v8721_v63 = vadd.f32 %v5205_v48, %v5204_v36  ;;  %v5207_v25 = vpop.f32.mrb[74].mxu1 }
 0x44b   : > { %v5208_v54 = vpop.f32.mrb[75].mxu1 }
 0x44c   : > { %v8725_v23 = vadd.f32 %v5208_v54, %v5207_v25 }
 0x44d   : > { %5707 = vmatmul.mubr.msk.bf16.gmra.mrb[180].mxu1 %vm2809_vm5, %v3703_v37 }
 0x44e   : > { %5710 = vmatprep.mubr.msk.bf16.mxu1 %vm2809_vm5, %v3707_v51 }
 0x450   : > { %v5210_v46 = vpop.f32.mrb[76].mxu1 }
 0x451   : > { %v5211_v45 = vpop.f32.mrb[77].mxu1 }
 0x452   : > { %v8732_v50 = vadd.f32 %v5211_v45, %v5210_v46  ;;  %v5213_v28 = vpop.f32.mrb[78].mxu1 }
 0x453   : > { %v5214_v30 = vpop.f32.mrb[79].mxu1 }
 0x454   : > { %v8738_v47 = vadd.f32 %v5214_v30, %v5213_v28 }
 0x455   : > { %5711 = vmatmul.mubr.msk.bf16.gmra.mrb[184].mxu1 %vm2809_vm5, %v3711_v59 }
 0x456   : > { %5714 = vmatprep.mubr.msk.bf16.mxu1 %vm2809_vm5, %v9328_v7 }
 0x458   : > { %v5216_v53 = vpop.f32.mrb[80].mxu1 }
 0x459   : > { %v5217_v10 = vpop.f32.mrb[81].mxu1 }
 0x45a   : > { %v8747_v18 = vadd.f32 %v5217_v10, %v5216_v53  ;;  %v5219_v11 = vpop.f32.mrb[82].mxu1 }
 0x45b   : > { %v5220_v8 = vpop.f32.mrb[83].mxu1 }
 0x45c   : > { %v8749_v19 = vadd.f32 %v5220_v8, %v5219_v11 }
 0x45d   : > { %5715 = vmatmul.mubr.msk.bf16.gmra.mrb[188].mxu1 %vm2809_vm5, %v3719_v22 }
 0x460   : > { %v5222_v35 = vpop.f32.mrb[84].mxu1 }
 0x461   : > { %v5223_v41 = vpop.f32.mrb[85].mxu1 }
 0x462   : > { %v8752_v0 = vadd.f32 %v5223_v41, %v5222_v35  ;;  %v5225_v24 = vpop.f32.mrb[86].mxu1 }
 0x463   : > { %v5226_v21 = vpop.f32.mrb[87].mxu1 }
 0x464   : > { %v8754_v56 = vadd.f32 %v5226_v21, %v5225_v24 }
 0x468   : > { %v5228_v29 = vpop.f32.mrb[88].mxu1 }
 0x469   : > { %v5229_v61 = vpop.f32.mrb[89].mxu1 }
 0x46a   : > { %v8756_v44 = vadd.f32 %v5229_v61, %v5228_v29  ;;  %v5231_v39 = vpop.f32.mrb[90].mxu1 }
 0x46b   : > { %v5232_v43 = vpop.f32.mrb[91].mxu1 }
 0x46c   : > { %v8758_v16 = vadd.f32 %v5232_v43, %v5231_v39 }
 0x470   : > { %v5234_v38 = vpop.f32.mrb[92].mxu1 }
 0x471   : > { %v5235_v36 = vpop.f32.mrb[93].mxu1 }
 0x472   : > { %v8760_v48 = vadd.f32 %v5235_v36, %v5234_v38  ;;  %v5237_v25 = vpop.f32.mrb[94].mxu1 }
 0x473   : > { %v5238_v54 = vpop.f32.mrb[95].mxu1 }
 0x474   : > { %v8762_v37 = vadd.f32 %v5238_v54, %v5237_v25 }
 0x478   : > { %v5256_v51 = vpop.f32.mrb[96].mxu1 }
 0x479   : > { %v5257_v46 = vpop.f32.mrb[97].mxu1 }
 0x47a   : > { %v5258_v45 = vadd.f32 %v5257_v46, %v5256_v51  ;;  %v5259_v31 = vpop.f32.mrb[98].mxu1 }
 0x47b   : > { %v5260_v3 = vpop.f32.mrb[99].mxu1 }
 0x47c   : > { %v5261_v28 = vadd.f32 %v5260_v3, %v5259_v31  ;;  %v8765_v13 = vadd.f32 %v5258_v45, %v8624_v1 }
 0x47e   : > { %v8768_v26 = vadd.f32 %v5261_v28, %v8626_v34 }
 0x480   : > { %v5262_v30 = vpop.f32.mrb[100].mxu1 }
 0x481   : > { %v5263_v59 = vpop.f32.mrb[101].mxu1 }
 0x482   : > { %v5264_v42 = vadd.f32 %v5263_v59, %v5262_v30  ;;  %v5265_v14 = vpop.f32.mrb[102].mxu1 }
 0x483   : > { %v5266_v7 = vpop.f32.mrb[103].mxu1 }
 0x484   : > { %v5267_v9 = vadd.f32 %v5266_v7, %v5265_v14  ;;  %v8771_v62 = vadd.f32 %v5264_v42, %v8633_v5 }
 0x486   : > { %v8774_v53 = vadd.f32 %v5267_v9, %v8635_v32 }
 0x488   : > { %v5268_v10 = vpop.f32.mrb[104].mxu1 }
 0x489   : > { %v5269_v22 = vpop.f32.mrb[105].mxu1 }
 0x48a   : > { %v5270_v11 = vadd.f32 %v5269_v22, %v5268_v10  ;;  %v5271_v1 = vpop.f32.mrb[106].mxu1 }
 0x48b   : > { %v5272_v8 = vpop.f32.mrb[107].mxu1 }
 0x48c   : > { %v5273_v35 = vadd.f32 %v5272_v8, %v5271_v1  ;;  %v8777_v34 = vadd.f32 %v5270_v11, %v8644_v12 }
 0x48e   : > { %v8780_v41 = vadd.f32 %v5273_v35, %v8646_v55 }
 0x490   : > { %v5274_v24 = vpop.f32.mrb[108].mxu1 }
 0x491   : > { %v5275_v21 = vpop.f32.mrb[109].mxu1 }
 0x492   : > { %v5276_v29 = vadd.f32 %v5275_v21, %v5274_v24  ;;  %v5277_v5 = vpop.f32.mrb[110].mxu1 }
 0x493   : > { %v5278_v61 = vpop.f32.mrb[111].mxu1 }
 0x494   : > { %v5279_v39 = vadd.f32 %v5278_v61, %v5277_v5  ;;  %v8783_v32 = vadd.f32 %v5276_v29, %v8656_v4 }
 0x496   : > { %v8786_v43 = vadd.f32 %v5279_v39, %v8658_v6 }
 0x498   : > { %v5280_v38 = vpop.f32.mrb[112].mxu1 }
 0x499   : > { %v5281_v36 = vpop.f32.mrb[113].mxu1 }
 0x49a   : > { %v5282_v25 = vadd.f32 %v5281_v36, %v5280_v38  ;;  %v5283_v12 = vpop.f32.mrb[114].mxu1 }
 0x49b   : > { %v5284_v54 = vpop.f32.mrb[115].mxu1 }
 0x49c   : > { %v5285_v51 = vadd.f32 %v5284_v54, %v5283_v12  ;;  %v8789_v55 = vadd.f32 %v5282_v25, %v8664_v58 }
 0x49e   : > { %v8792_v46 = vadd.f32 %v5285_v51, %v8666_v2 }
 0x4a0   : > { %v5286_v45 = vpop.f32.mrb[116].mxu1 }
 0x4a1   : > { %v5287_v31 = vpop.f32.mrb[117].mxu1 }
 0x4a2   : > { %v5288_v3 = vadd.f32 %v5287_v31, %v5286_v45  ;;  %v5289_v4 = vpop.f32.mrb[118].mxu1 }
 0x4a3   : > { %v5290_v28 = vpop.f32.mrb[119].mxu1 }
 0x4a4   : > { %v5291_v30 = vadd.f32 %v5290_v28, %v5289_v4  ;;  %v8795_v6 = vadd.f32 %v5288_v3, %v8671_v60 }
 0x4a6   : > { %v8798_v59 = vadd.f32 %v5291_v30, %v8675_v20 }
 0x4a8   : > { %v5292_v42 = vpop.f32.mrb[120].mxu1 }
 0x4a9   : > { %v5293_v14 = vpop.f32.mrb[121].mxu1 }
 0x4aa   : > { %v5294_v7 = vadd.f32 %v5293_v14, %v5292_v42  ;;  %v5295_v58 = vpop.f32.mrb[122].mxu1 }
 0x4ab   : > { %v5296_v9 = vpop.f32.mrb[123].mxu1 }
 0x4ac   : > { %v5297_v10 = vadd.f32 %v5296_v9, %v5295_v58  ;;  %v8801_v2 = vadd.f32 %v5294_v7, %v8681_v33 }
 0x4ae   : > { %v8804_v22 = vadd.f32 %v5297_v10, %v8685_v27 }
 0x4b0   : > { %v5298_v11 = vpop.f32.mrb[124].mxu1 }
 0x4b1   : > { %v5299_v1 = vpop.f32.mrb[125].mxu1 }
 0x4b2   : > { %v5300_v8 = vadd.f32 %v5299_v1, %v5298_v11  ;;  %v5301_v60 = vpop.f32.mrb[126].mxu1 }
 0x4b3   : > { %v5302_v35 = vpop.f32.mrb[127].mxu1 }
 0x4b4   : > { %v5303_v24 = vadd.f32 %v5302_v35, %v5301_v60  ;;  %v8807_v20 = vadd.f32 %v5300_v8, %v8691_v40 }
 0x4b6   : > { %v8810_v21 = vadd.f32 %v5303_v24, %v8695_v49 }
 0x4b8   : > { %v5304_v29 = vpop.f32.mrb[128].mxu1 }
 0x4b9   : > { %v5305_v5 = vpop.f32.mrb[129].mxu1 }
 0x4ba   : > { %v5306_v61 = vadd.f32 %v5305_v5, %v5304_v29  ;;  %v5307_v33 = vpop.f32.mrb[130].mxu1 }
 0x4bb   : > { %v5308_v39 = vpop.f32.mrb[131].mxu1 }
 0x4bc   : > { %v5309_v38 = vadd.f32 %v5308_v39, %v5307_v33  ;;  %v8813_v27 = vadd.f32 %v5306_v61, %v8701_v15 }
 0x4be   : > { %v8816_v36 = vadd.f32 %v5309_v38, %v8705_v17 }
 0x4c0   : > { %v5310_v25 = vpop.f32.mrb[132].mxu1 }
 0x4c1   : > { %v5311_v12 = vpop.f32.mrb[133].mxu1 }
 0x4c2   : > { %v5312_v54 = vadd.f32 %v5311_v12, %v5310_v25  ;;  %v5313_v40 = vpop.f32.mrb[134].mxu1 }
 0x4c3   : > { %v5314_v51 = vpop.f32.mrb[135].mxu1 }
 0x4c4   : > { %v5315_v45 = vadd.f32 %v5314_v51, %v5313_v40  ;;  %v8819_v49 = vadd.f32 %v5312_v54, %v8711_v57 }
 0x4c6   : > { %v8822_v31 = vadd.f32 %v5315_v45, %v8715_v52 }
 0x4c8   : > { %v5316_v3 = vpop.f32.mrb[136].mxu1 }
 0x4c9   : > { %v5317_v4 = vpop.f32.mrb[137].mxu1 }
 0x4ca   : > { %v5318_v28 = vadd.f32 %v5317_v4, %v5316_v3  ;;  %v5319_v15 = vpop.f32.mrb[138].mxu1 }
 0x4cb   : > { %v5320_v30 = vpop.f32.mrb[139].mxu1 }
 0x4cc   : > { %v5321_v42 = vadd.f32 %v5320_v30, %v5319_v15  ;;  %v8825_v17 = vadd.f32 %v5318_v28, %v8721_v63 }
 0x4ce   : > { %v8828_v14 = vadd.f32 %v5321_v42, %v8725_v23 }
 0x4d0   : > { %v5322_v7 = vpop.f32.mrb[140].mxu1 }
 0x4d1   : > { %v5323_v58 = vpop.f32.mrb[141].mxu1 }
 0x4d2   : > { %v5324_v9 = vadd.f32 %v5323_v58, %v5322_v7  ;;  %v5325_v57 = vpop.f32.mrb[142].mxu1 }
 0x4d3   : > { %v5326_v10 = vpop.f32.mrb[143].mxu1 }
 0x4d4   : > { %v5327_v11 = vadd.f32 %v5326_v10, %v5325_v57  ;;  %v8831_v52 = vadd.f32 %v5324_v9, %v8732_v50  ;;  %v8870_v10 = vld [vmem:[%s9093_s6] ss:$0 sm:$0xff] }
 0x4d6   : > { %v8834_v1 = vadd.f32 %v5327_v11, %v8738_v47 }
 0x4d8   : > { %v5328_v8 = vpop.f32.mrb[144].mxu1 }
 0x4d9   : > { %v5329_v60 = vpop.f32.mrb[145].mxu1 }
 0x4da   : > { %v5330_v35 = vadd.f32 %v5329_v60, %v5328_v8  ;;  %v5331_v63 = vpop.f32.mrb[146].mxu1 }
 0x4db   : > { %v5332_v24 = vpop.f32.mrb[147].mxu1 }
 0x4dc   : > { %v5333_v29 = vadd.f32 %v5332_v24, %v5331_v63  ;;  %v8837_v23 = vadd.f32 %v5330_v35, %v8747_v18 }
 0x4de   : > { %v8840_v5 = vadd.f32 %v5333_v29, %v8749_v19 }
 0x4e0   : > { %v5334_v61 = vpop.f32.mrb[148].mxu1 }
 0x4e1   : > { %v5335_v33 = vpop.f32.mrb[149].mxu1 }
 0x4e2   : > { %v5336_v39 = vadd.f32 %v5335_v33, %v5334_v61  ;;  %v5337_v50 = vpop.f32.mrb[150].mxu1 }
 0x4e3   : > { %v5338_v38 = vpop.f32.mrb[151].mxu1 }
 0x4e4   : > { %v5339_v25 = vadd.f32 %v5338_v38, %v5337_v50  ;;  %v8843_v47 = vadd.f32 %v5336_v39, %v8752_v0 }
 0x4e6   : > { %v8846_v12 = vadd.f32 %v5339_v25, %v8754_v56 }
 0x4e8   : > { %v5340_v54 = vpop.f32.mrb[152].mxu1 }
 0x4e9   : > { %v5341_v40 = vpop.f32.mrb[153].mxu1 }
 0x4ea   : > { %v5342_v18 = vadd.f32 %v5341_v40, %v5340_v54  ;;  %v5343_v51 = vpop.f32.mrb[154].mxu1 }
 0x4eb   : > { %v5344_v45 = vpop.f32.mrb[155].mxu1 }
 0x4ec   : > { %v5345_v19 = vadd.f32 %v5344_v45, %v5343_v51  ;;  %v8849_v3 = vadd.f32 %v5342_v18, %v8756_v44  ;;  %v8864_v44 = vld [vmem:[%s9092_s5] ss:$0 sm:$0xff] }
 0x4ee   : > { %v8852_v4 = vadd.f32 %v5345_v19, %v8758_v16 }
 0x4f0   : > { %v5346_v28 = vpop.f32.mrb[156].mxu1 }
 0x4f1   : > { %v5347_v0 = vpop.f32.mrb[157].mxu1 }
 0x4f2   : > { %v5348_v15 = vadd.f32 %v5347_v0, %v5346_v28  ;;  %v5349_v30 = vpop.f32.mrb[158].mxu1 }
 0x4f3   : > { %v5350_v56 = vpop.f32.mrb[159].mxu1 }
 0x4f4   : > { %v5351_v42 = vadd.f32 %v5350_v56, %v5349_v30  ;;  %v8855_v7 = vadd.f32 %v5348_v15, %v8760_v48 }
 0x4f6   : > { %v8858_v58 = vadd.f32 %v5351_v42, %v8762_v37 }
 0x4f8   : > { %v5688_v9 = vpop.f32.mrb[160].mxu1 }
 0x4f9   : > { %v4421_v16 = vadd.f32 %v5688_v9, %v8771_v62  ;;  %v4412_v57 = vpop.f32.mrb[161].mxu1 }
 0x4fa   : > { %v4413_v48 = vadd.f32 %v4412_v57, %v8765_v13  ;;  %v5689_v11 = vpop.f32.mrb[162].mxu1 }
 0x4fb   : > { %v4548_v37 = vmul.f32 %v8864_v44, %v4421_v16  ;;  %v4424_v8 = vadd.f32 %v5689_v11, %v8774_v53  ;;  %v4415_v60 = vpop.f32.mrb[163].mxu1 }
 0x4fc   : > { %v4546_v35 = vmul.f32 %v8864_v44, %v4413_v48  ;;  %v4416_v62 = vadd.f32 %v4415_v60, %v8768_v26 }
 0x4fd   : > { %v4587_v63 = vadd.f32 %v8870_v10, %v4548_v37  ;;  %v4549_v24 = vmul.f32 %v8864_v44, %v4424_v8 }
 0x4fe   : > { %v4585_v29 = vadd.f32 %v8870_v10, %v4546_v35  ;;  %v4547_v13 = vmul.f32 %v8864_v44, %v4416_v62 }
 0x4ff   : > { %v4619_v61 = vmax.f32 %v4587_v63, 0.0  ;;  %v4588_v33 = vadd.f32 %v8870_v10, %v4549_v24 }
 0x500   : > { %v4617_v39 = vmax.f32 %v4585_v29, 0.0  ;;  %v4586_v50 = vadd.f32 %v8870_v10, %v4547_v13  ;;  %v5692_v53 = vpop.f32.mrb[164].mxu1 }
 0x501   : > { %4651 = vst.msk [vmem:[%s8885_s13 + $0x10] sm:$0xff] %vm2809_vm5, %v4619_v61  ;;  %v4620_v26 = vmax.f32 %v4588_v33, 0.0  ;;  %v4437_v38 = vadd.f32 %v5692_v53, %v8783_v32  ;;  %v4428_v25 = vpop.f32.mrb[165].mxu1 }
 0x502   : > { %4649 = vst.msk [vmem:[%s8885_s13] sm:$0xff] %vm2809_vm5, %v4617_v39  ;;  %v4618_v54 = vmax.f32 %v4586_v50, 0.0  ;;  %v4429_v40 = vadd.f32 %v4428_v25, %v8777_v34  ;;  %v5693_v18 = vpop.f32.mrb[166].mxu1 }
 0x503   : > { %4652 = vst.msk [vmem:[%s8885_s13 + $0x18] sm:$0xff] %vm2809_vm5, %v4620_v26  ;;  %v4552_v51 = vmul.f32 %v8864_v44, %v4437_v38  ;;  %v4440_v45 = vadd.f32 %v5693_v18, %v8786_v43  ;;  %v4431_v19 = vpop.f32.mrb[167].mxu1 }
 0x504   : > { %4650 = vst.msk [vmem:[%s8885_s13 + $0x8] sm:$0xff] %vm2809_vm5, %v4618_v54  ;;  %v4550_v32 = vmul.f32 %v8864_v44, %v4429_v40  ;;  %v4432_v28 = vadd.f32 %v4431_v19, %v8780_v41 }
 0x505   : > { %v4591_v0 = vadd.f32 %v8870_v10, %v4552_v51  ;;  %v4553_v34 = vmul.f32 %v8864_v44, %v4440_v45 }
 0x506   : > { %v4589_v15 = vadd.f32 %v8870_v10, %v4550_v32  ;;  %v4551_v30 = vmul.f32 %v8864_v44, %v4432_v28 }
 0x507   : > { %v4623_v56 = vmax.f32 %v4591_v0, 0.0  ;;  %v4592_v43 = vadd.f32 %v8870_v10, %v4553_v34 }
 0x508   : > { %v4621_v42 = vmax.f32 %v4589_v15, 0.0  ;;  %v4590_v9 = vadd.f32 %v8870_v10, %v4551_v30  ;;  %v5696_v16 = vpop.f32.mrb[168].mxu1 }
 0x509   : > { %4655 = vst.msk [vmem:[%s8885_s13 + $0x30] sm:$0xff] %vm2809_vm5, %v4623_v56  ;;  %v4624_v41 = vmax.f32 %v4592_v43, 0.0  ;;  %v4453_v57 = vadd.f32 %v5696_v16, %v8795_v6  ;;  %v4444_v48 = vpop.f32.mrb[169].mxu1 }
 0x50a   : > { %4653 = vst.msk [vmem:[%s8885_s13 + $0x20] sm:$0xff] %vm2809_vm5, %v4621_v42  ;;  %v4622_v11 = vmax.f32 %v4590_v9, 0.0  ;;  %v4445_v37 = vadd.f32 %v4444_v48, %v8789_v55  ;;  %v5697_v8 = vpop.f32.mrb[170].mxu1 }
 0x50b   : > { %4656 = vst.msk [vmem:[%s8885_s13 + $0x38] sm:$0xff] %vm2809_vm5, %v4624_v41  ;;  %v4556_v60 = vmul.f32 %v8864_v44, %v4453_v57  ;;  %v4456_v35 = vadd.f32 %v5697_v8, %v8798_v59  ;;  %v4447_v62 = vpop.f32.mrb[171].mxu1 }
 0x50c   : > { %4654 = vst.msk [vmem:[%s8885_s13 + $0x28] sm:$0xff] %vm2809_vm5, %v4622_v11  ;;  %v4554_v6 = vmul.f32 %v8864_v44, %v4445_v37  ;;  %v4448_v63 = vadd.f32 %v4447_v62, %v8792_v46 }
 0x50d   : > { %v4595_v24 = vadd.f32 %v8870_v10, %v4556_v60  ;;  %v4557_v55 = vmul.f32 %v8864_v44, %v4456_v35 }
 0x50e   : > { %v4593_v29 = vadd.f32 %v8870_v10, %v4554_v6  ;;  %v4555_v13 = vmul.f32 %v8864_v44, %v4448_v63 }
 0x50f   : > { %v4627_v61 = vmax.f32 %v4595_v24, 0.0  ;;  %v4596_v59 = vadd.f32 %v8870_v10, %v4557_v55 }
 0x510   : > { %v4625_v33 = vmax.f32 %v4593_v29, 0.0  ;;  %v4594_v39 = vadd.f32 %v8870_v10, %v4555_v13  ;;  %v5700_v50 = vpop.f32.mrb[172].mxu1 }
 0x511   : > { %4659 = vst.msk [vmem:[%s8885_s13 + $0x50] sm:$0xff] %vm2809_vm5, %v4627_v61  ;;  %v4628_v46 = vmax.f32 %v4596_v59, 0.0  ;;  %v4469_v53 = vadd.f32 %v5700_v50, %v8807_v20  ;;  %v4460_v26 = vpop.f32.mrb[173].mxu1 }
 0x512   : > { %4657 = vst.msk [vmem:[%s8885_s13 + $0x40] sm:$0xff] %vm2809_vm5, %v4625_v33  ;;  %v4626_v38 = vmax.f32 %v4594_v39, 0.0  ;;  %v4461_v25 = vadd.f32 %v4460_v26, %v8801_v2  ;;  %v5701_v54 = vpop.f32.mrb[174].mxu1 }
 0x513   : > { %4660 = vst.msk [vmem:[%s8885_s13 + $0x58] sm:$0xff] %vm2809_vm5, %v4628_v46  ;;  %v4560_v40 = vmul.f32 %v8864_v44, %v4469_v53  ;;  %v4472_v18 = vadd.f32 %v5701_v54, %v8810_v21  ;;  %v4463_v51 = vpop.f32.mrb[175].mxu1 }
 0x514   : > { %4658 = vst.msk [vmem:[%s8885_s13 + $0x48] sm:$0xff] %vm2809_vm5, %v4626_v38  ;;  %v4558_v20 = vmul.f32 %v8864_v44, %v4461_v25  ;;  %v4464_v45 = vadd.f32 %v4463_v51, %v8804_v22 }
 0x515   : > { %v4599_v19 = vadd.f32 %v8870_v10, %v4560_v40  ;;  %v4561_v2 = vmul.f32 %v8864_v44, %v4472_v18 }
 0x516   : > { %v4597_v32 = vadd.f32 %v8870_v10, %v4558_v20  ;;  %v4559_v28 = vmul.f32 %v8864_v44, %v4464_v45 }
 0x517   : > { %v4631_v0 = vmax.f32 %v4599_v19, 0.0  ;;  %v4600_v21 = vadd.f32 %v8870_v10, %v4561_v2 }
 0x518   : > { %v4629_v34 = vmax.f32 %v4597_v32, 0.0  ;;  %v4598_v15 = vadd.f32 %v8870_v10, %v4559_v28  ;;  %v5704_v30 = vpop.f32.mrb[176].mxu1 }
 0x519   : > { %4663 = vst.msk [vmem:[%s8885_s13 + $0x70] sm:$0xff] %vm2809_vm5, %v4631_v0  ;;  %v4632_v22 = vmax.f32 %v4600_v21, 0.0  ;;  %v4485_v56 = vadd.f32 %v5704_v30, %v8819_v49  ;;  %v4476_v43 = vpop.f32.mrb[177].mxu1 }
 0x51a   : > { %4661 = vst.msk [vmem:[%s8885_s13 + $0x60] sm:$0xff] %vm2809_vm5, %v4629_v34  ;;  %v4630_v42 = vmax.f32 %v4598_v15, 0.0  ;;  %v4477_v9 = vadd.f32 %v4476_v43, %v8813_v27  ;;  %v5705_v16 = vpop.f32.mrb[178].mxu1 }
 0x51b   : > { %4664 = vst.msk [vmem:[%s8885_s13 + $0x78] sm:$0xff] %vm2809_vm5, %v4632_v22  ;;  %v4564_v41 = vmul.f32 %v8864_v44, %v4485_v56  ;;  %v4488_v57 = vadd.f32 %v5705_v16, %v8822_v31  ;;  %v4479_v48 = vpop.f32.mrb[179].mxu1 }
 0x51c   : > { %4662 = vst.msk [vmem:[%s8885_s13 + $0x68] sm:$0xff] %vm2809_vm5, %v4630_v42  ;;  %v4562_v49 = vmul.f32 %v8864_v44, %v4477_v9  ;;  %v4480_v11 = vadd.f32 %v4479_v48, %v8816_v36 }
 0x51d   : > { %v4603_v37 = vadd.f32 %v8870_v10, %v4564_v41  ;;  %v4565_v27 = vmul.f32 %v8864_v44, %v4488_v57 }
 0x51e   : > { %v4601_v8 = vadd.f32 %v8870_v10, %v4562_v49  ;;  %v4563_v60 = vmul.f32 %v8864_v44, %v4480_v11 }
 0x51f   : > { %v4635_v35 = vmax.f32 %v4603_v37, 0.0  ;;  %v4604_v31 = vadd.f32 %v8870_v10, %v4565_v27 }
 0x520   : > { %v4633_v62 = vmax.f32 %v4601_v8, 0.0  ;;  %v4602_v6 = vadd.f32 %v8870_v10, %v4563_v60  ;;  %v5708_v63 = vpop.f32.mrb[180].mxu1 }
 0x521   : > { %4667 = vst.msk [vmem:[%s8885_s13 + $0x90] sm:$0xff] %vm2809_vm5, %v4635_v35  ;;  %v4636_v36 = vmax.f32 %v4604_v31, 0.0  ;;  %v4501_v24 = vadd.f32 %v5708_v63, %v8831_v52  ;;  %v4492_v55 = vpop.f32.mrb[181].mxu1 }
 0x522   : > { %4665 = vst.msk [vmem:[%s8885_s13 + $0x80] sm:$0xff] %vm2809_vm5, %v4633_v62  ;;  %v4634_v29 = vmax.f32 %v4602_v6, 0.0  ;;  %v4493_v13 = vadd.f32 %v4492_v55, %v8825_v17  ;;  %v5709_v61 = vpop.f32.mrb[182].mxu1 }
 0x523   : > { %4668 = vst.msk [vmem:[%s8885_s13 + $0x98] sm:$0xff] %vm2809_vm5, %v4636_v36  ;;  %v4568_v59 = vmul.f32 %v8864_v44, %v4501_v24  ;;  %v4504_v33 = vadd.f32 %v5709_v61, %v8834_v1  ;;  %v4495_v39 = vpop.f32.mrb[183].mxu1 }
 0x524   : > { %4666 = vst.msk [vmem:[%s8885_s13 + $0x88] sm:$0xff] %vm2809_vm5, %v4634_v29  ;;  %v4566_v52 = vmul.f32 %v8864_v44, %v4493_v13  ;;  %v4496_v50 = vadd.f32 %v4495_v39, %v8828_v14 }
 0x525   : > { %v4607_v46 = vadd.f32 %v8870_v10, %v4568_v59  ;;  %v4569_v17 = vmul.f32 %v8864_v44, %v4504_v33 }
 0x526   : > { %v4605_v53 = vadd.f32 %v8870_v10, %v4566_v52  ;;  %v4567_v26 = vmul.f32 %v8864_v44, %v4496_v50 }
 0x527   : > { %v4639_v38 = vmax.f32 %v4607_v46, 0.0  ;;  %v4608_v1 = vadd.f32 %v8870_v10, %v4569_v17 }
 0x528   : > { %v4637_v25 = vmax.f32 %v4605_v53, 0.0  ;;  %v4606_v54 = vadd.f32 %v8870_v10, %v4567_v26  ;;  %v5712_v40 = vpop.f32.mrb[184].mxu1 }
 0x529   : > { %4671 = vst.msk [vmem:[%s8885_s13 + $0xb0] sm:$0xff] %vm2809_vm5, %v4639_v38  ;;  %v4640_v14 = vmax.f32 %v4608_v1, 0.0  ;;  %v4517_v18 = vadd.f32 %v5712_v40, %v8843_v47  ;;  %v4508_v51 = vpop.f32.mrb[185].mxu1 }
 0x52a   : > { %4669 = vst.msk [vmem:[%s8885_s13 + $0xa0] sm:$0xff] %vm2809_vm5, %v4637_v25  ;;  %v4638_v20 = vmax.f32 %v4606_v54, 0.0  ;;  %v4509_v45 = vadd.f32 %v4508_v51, %v8837_v23  ;;  %v5713_v19 = vpop.f32.mrb[186].mxu1 }
 0x52b   : > { %4672 = vst.msk [vmem:[%s8885_s13 + $0xb8] sm:$0xff] %vm2809_vm5, %v4640_v14  ;;  %v4572_v2 = vmul.f32 %v8864_v44, %v4517_v18  ;;  %v4520_v32 = vadd.f32 %v5713_v19, %v8846_v12  ;;  %v4511_v28 = vpop.f32.mrb[187].mxu1 }
 0x52c   : > { %4670 = vst.msk [vmem:[%s8885_s13 + $0xa8] sm:$0xff] %vm2809_vm5, %v4638_v20  ;;  %v4570_v47 = vmul.f32 %v8864_v44, %v4509_v45  ;;  %v4512_v0 = vadd.f32 %v4511_v28, %v8840_v5 }
 0x52d   : > { %v4611_v21 = vadd.f32 %v8870_v10, %v4572_v2  ;;  %v4573_v23 = vmul.f32 %v8864_v44, %v4520_v32 }
 0x52e   : > { %v4609_v34 = vadd.f32 %v8870_v10, %v4570_v47  ;;  %v4571_v15 = vmul.f32 %v8864_v44, %v4512_v0 }
 0x52f   : > { %v4643_v30 = vmax.f32 %v4611_v21, 0.0  ;;  %v4612_v12 = vadd.f32 %v8870_v10, %v4573_v23 }
 0x530   : > { %v4641_v22 = vmax.f32 %v4609_v34, 0.0  ;;  %v4610_v56 = vadd.f32 %v8870_v10, %v4571_v15  ;;  %v5716_v43 = vpop.f32.mrb[188].mxu1 }
 0x531   : > { %4675 = vst.msk [vmem:[%s8885_s13 + $0xd0] sm:$0xff] %vm2809_vm5, %v4643_v30  ;;  %v4644_v5 = vmax.f32 %v4612_v12, 0.0  ;;  %v4533_v42 = vadd.f32 %v5716_v43, %v8855_v7  ;;  %v4524_v9 = vpop.f32.mrb[189].mxu1 }
 0x532   : > { %4673 = vst.msk [vmem:[%s8885_s13 + $0xc0] sm:$0xff] %vm2809_vm5, %v4641_v22  ;;  %v4642_v16 = vmax.f32 %v4610_v56, 0.0  ;;  %v4525_v41 = vadd.f32 %v4524_v9, %v8849_v3  ;;  %v5717_v57 = vpop.f32.mrb[190].mxu1 }
 0x533   : > { %4676 = vst.msk [vmem:[%s8885_s13 + $0xd8] sm:$0xff] %vm2809_vm5, %v4644_v5  ;;  %v4576_v48 = vmul.f32 %v8864_v44, %v4533_v42  ;;  %v4536_v49 = vadd.f32 %v5717_v57, %v8858_v58  ;;  %v4527_v11 = vpop.f32.mrb[191].mxu1 }
 0x534   : > { %4674 = vst.msk [vmem:[%s8885_s13 + $0xc8] sm:$0xff] %vm2809_vm5, %v4642_v16  ;;  %v4574_v7 = vmul.f32 %v8864_v44, %v4525_v41  ;;  %v4528_v37 = vadd.f32 %v4527_v11, %v8852_v4 }
 0x535   : > { %v4615_v27 = vadd.f32 %v8870_v10, %v4576_v48  ;;  %v4577_v3 = vmul.f32 %v8864_v44, %v4536_v49 }
 0x536   : > { %v4613_v8 = vadd.f32 %v8870_v10, %v4574_v7  ;;  %v4575_v60 = vmul.f32 %v8864_v44, %v4528_v37 }
 0x537   : > { %v4647_v58 = vmax.f32 %v4615_v27, 0.0  ;;  %v4616_v35 = vadd.f32 %v8870_v10, %v4577_v3 }
 0x538   : > { %v4645_v31 = vmax.f32 %v4613_v8, 0.0  ;;  %v4614_v4 = vadd.f32 %v8870_v10, %v4575_v60 }
 0x539   : > { %4679 = vst.msk [vmem:[%s8885_s13 + $0xf0] sm:$0xff] %vm2809_vm5, %v4647_v58  ;;  %v4648_v62 = vmax.f32 %v4616_v35, 0.0 }
 0x53a   : > { %4677 = vst.msk [vmem:[%s8885_s13 + $0xe0] sm:$0xff] %vm2809_vm5, %v4645_v31  ;;  %v4646_v44 = vmax.f32 %v4614_v4, 0.0 }
 0x53b   : > { %4680 = vst.msk [vmem:[%s8885_s13 + $0xf8] sm:$0xff] %vm2809_vm5, %v4648_v62 }
 0x53c   : > { %4678 = vst.msk [vmem:[%s8885_s13 + $0xe8] sm:$0xff] %vm2809_vm5, %v4646_v44 }
 0x53d   : > { %6336 = shalt.err (!%p6333_p3)
}
 0x53e   : > { %s6337_s21 = scalar_lea.hbm %s9034_s18, 4096  ;;  %s6341_s9 = scalar_lea.hbm %s9094_s7, 8192 }
 0x53f   : > { %p6338_p4 = scmp.ne.s32.totalorder %s9034_s18, %s6337_s21  ;;  %p6342_p9 = scmp.lt.u32.totalorder %s9034_s18, %s9094_s7 }
 0x540   : > { %p6343_p10 = scmp.lt.u32.totalorder %s6341_s9, %s6337_s21  ;;  %p6345_p12 = scmp.lt.u32.totalorder %s6337_s21, %s9034_s18 }
 0x541   : > { %p6339_p7 = pnand %p6338_p4, %p6470_p5 }
 0x542   : > { %p6344_p11 = por %p6343_p10, %p6342_p9 }
 0x543   : > { %p6340_p8 = pneg %p6339_p7 }
 0x544   : > { %p6346_p13 = por %p6345_p12, %p6344_p11 }
 0x546   : > { %p6347_p0 = pnand %p6346_p13, %p6340_p8 }
 0x548   : > { %6350 = shalt.err (!%p6347_p0)
}
 0x549   : > { %s6390_s16 = smov 128   ;;  %s6391_s17 = smov 8  }
 0x54a   : > { %5983 = dma.vmem_to_hbm [thread:$0]  (%p6470_p5), %s9036_s15, 4096, %s9034_s18, %s9046_s28, %s6390_s16, %s6390_s16, %s6391_s17  }
 0x54b PF: > { %p5989_p1 = scmp.ge.s32.totalorder %s6385_s27, 2  ;;  %s4710_s19 = sand.u32 1, %s6373_s24  }
 0x54c   : > { %s4711_s20 = scalar_lea.sflag [#allocation5], %s4710_s19 }
 0x54d   : > { %p5986_p2 = pnand %p5989_p1, %p6474_p6 }
 0x54f   : > { %6368 = dma.done.wait (!%p5986_p2), %s4711_s20, 4096  }
 0x550   : > { %6370 = vsyncadd (!%p5986_p2), %s4711_s20, 4294963200  ;;  %p17_p3 = scmp.ge.s32.totalorder %s6457_s30, 4   ;;  %s9329_s24 = smov %s6377_s25 }
 0x551   : > { %s9330_s25 = smov %s6381_s26  ;;  %s9331_s26 = smov %s6468_s10 }
 0x552   : > { %s9332_s27 = smov %s6457_s30  ;;  %19 = sbr.rel (!%p17_p3) target bundleno = 3 (0x3), region = 85 }
 0x559   :  { %4716 = vsyncpa [#allocation5], 1 }
 0x55a   :  { %4718 = vsyncpa [#allocation5 + $0x1], 1 }

</bundles_post_ra>
